<compile_context>
chip_gen: v6e
topology: v6e:2x2x1
jax: 0.10.0
libtpu: 0.0.40
codegen_flags: <defaults>
</compile_context>

<pallas_src>
import functools
import math

import jax
import jax.numpy as jnp
from jax.experimental import pallas as pl
from jax.experimental.pallas import tpu as pltpu


def _mm(a, b):
    return jnp.dot(a, b, preferred_element_type=jnp.float32)


def _gate_affine(hid):
    # sigmoid(z) = 0.5*tanh(0.5*z) + 0.5 on the o|f|i lanes, tanh(z) on the g
    # lanes.  One fused EUP tanh per step: act = tanh(z*scale)*scale + offset.
    lane = jax.lax.broadcasted_iota(jnp.int32, (1, 4 * hid), 1)
    is_sig = lane < 3 * hid
    scale = jnp.where(is_sig, 0.5, 1.0).astype(jnp.float32)
    offset = jnp.where(is_sig, 0.5, 0.0).astype(jnp.float32)
    return scale, offset


def _linear_stack(x, layers, relu_last):
    # EmbedLinear stack with nn.ReLU between layers (+ optional trailing relu).
    n = len(layers)
    for idx, (w, b) in enumerate(layers):
        x = _mm(x, w) + b
        if idx < n - 1 or relu_last:
            x = jnp.maximum(x, 0.0)
    return x


# ----------------------------------------------------------------------------
# The fused forward kernel.
#   is_ref   : (N, I_inp)              intensity vectors
#   hkls_ref : (seq*N, hkls_inp)       hkl sequences, time-major rows
#   fs_ref   : (M, 2)                  f rows
#   p_ref    : (P, R, 128)             packed parameter slab (one DMA)
#   out_ref  : (1, H_out)              tanh(last hidden row) of last timestep
# ----------------------------------------------------------------------------
def _fused_forward_kernel(is_ref, hkls_ref, fs_ref, p_ref, out_ref,
                          *, treedef, shapes):
    # ---- unpack parameters from the single packed slab ----------------------
    leaves = [p_ref[k, :r, :c] for k, (r, c) in enumerate(shapes)]
    params = jax.tree_util.tree_unflatten(treedef, leaves)

    Is = is_ref[...]
    hkls_flat = hkls_ref[...]
    fs = fs_ref[...]

    n_seq = Is.shape[0]
    seq_hkls = hkls_flat.shape[0] // n_seq
    m_rows = fs.shape[0]

    # ---- I_network: Linear -> ReLU -> Linear, then outer relu ----------------
    I_embed = _linear_stack(Is, params["I_net"], relu_last=True)        # (N, 6)

    # ---- hkls_network: stacked EmbedLSTM, processed layer-by-layer.
    #      x-projection hoisted to one batched matmul per layer; only h@W_hg
    #      stays in the serial recurrence.  Gate order o|f|i|g (reference).
    n_hkls_layers = len(params["hkls_net"])
    x_flat = hkls_flat                                  # (seq*N, inp) time-major
    last_h = None
    for li, (wx, wh, b) in enumerate(params["hkls_net"]):
        hid = wh.shape[0]
        scale, offset = _gate_affine(hid)
        zx = _mm(x_flat, wx) + b                        # (seq*N, 4H), bias folded
        h = jnp.zeros((n_seq, hid), jnp.float32)
        c = jnp.zeros((n_seq, hid), jnp.float32)
        collect = li < n_hkls_layers - 1
        hs = []
        for t in range(seq_hkls):                       # fully unrolled
            gates = zx[t * n_seq:(t + 1) * n_seq, :] + _mm(h, wh)
            act = jnp.tanh(gates * scale) * scale + offset
            o_t = act[:, :hid]
            f_t = act[:, hid:2 * hid]
            i_t = act[:, 2 * hid:3 * hid]
            g_t = act[:, 3 * hid:]
            c = f_t * c + i_t * g_t
            h = o_t * jnp.tanh(c)
            if collect:
                hs.append(h)
        if collect:
            # nn.ReLU between stacked EmbedLSTMs, applied to the full sequence.
            x_flat = jnp.maximum(jnp.concatenate(hs, axis=0), 0.0)
        last_h = h
    hkls_embed = jnp.maximum(last_h, 0.0)                               # (N, 6)

    # ---- inp_network on concat([I_embed, hkls_embed], 1): split the first
    #      weight (sublane slice) so no lane concat is needed.
    w0, b0 = params["inp_net"][0]
    d_I = I_embed.shape[1]
    x = _mm(I_embed, w0[:d_I, :]) + _mm(hkls_embed, w0[d_I:, :]) + b0
    for (w, b) in params["inp_net"][1:]:
        x = jnp.maximum(x, 0.0)                         # ReLU between layers only
        x = _mm(x, w) + b
    inp_out = x                                                          # (N, main_inp)

    # ---- f_networks: Linear -> ReLU -> Linear, then outer relu ---------------
    f_embeds = [_linear_stack(fs, fp, relu_last=True) for fp in params["f_nets"]]

    # ---- stacked MainLSTM -----------------------------------------------------
    n_main_layers = len(params["main_net"])
    x_seq = jnp.maximum(inp_out, 0.0)                   # (seq_main, inp)
    seq_main = x_seq.shape[0]
    h_final = None
    for li, (lp, f_embed) in enumerate(zip(params["main_net"], f_embeds)):
        wxg, whg, bg, wcr, whr, br = lp
        hid = whg.shape[0]
        scale, offset = _gate_affine(hid)
        zx = _mm(x_seq, wxg) + bg                       # (seq_main, 4H), hoisted
        wh_all = jnp.concatenate([whg, whr], axis=1)    # fuse gate + r recurrent mats
        h = f_embed                                     # (M, hid) init hidden
        c = jnp.zeros((m_rows, hid), jnp.float32)
        collect = li < n_main_layers - 1
        sums = []
        for t in range(seq_main):                       # fully unrolled
            zh = _mm(h, wh_all)                         # (M, 5H): one recurrent matmul
            gates = zx[t:t + 1, :] + zh[:, :4 * hid]    # (1,4H)+(M,4H) broadcast
            act = jnp.tanh(gates * scale) * scale + offset
            o_t = act[:, :hid]
            f_t = act[:, hid:2 * hid]
            i_t = act[:, 2 * hid:3 * hid]
            g_t = act[:, 3 * hid:]
            c_new = f_t * c + i_t * g_t
            # r-gate uses the OLD h (via zh) and the NEW c, exactly as in the
            # reference: h = o * tanh(h_old @ W_hr + c_new @ W_cr + b_r).
            r = zh[:, 4 * hid:] + _mm(c_new, wcr) + br
            h = o_t * jnp.tanh(r)
            c = c_new
            if collect:
                sums.append(jnp.sum(h, axis=0, keepdims=True))
        if collect:
            # sum over the M axis per timestep, then ReLU -> next layer's input
            x_seq = jnp.maximum(jnp.concatenate(sums, axis=0), 0.0)
        h_final = h

    # x.reshape(-1,2,3)[-1] keeps only the last (timestep, M-row) hidden vector.
    out_ref[...] = jnp.tanh(h_final[m_rows - 1:m_rows, :])               # (1, H_out)


# ----------------------------------------------------------------------------
# Host-side packing + jitted wrapper (layout glue only + one pallas_call).
# ----------------------------------------------------------------------------
def pack_params(params):
    leaves, treedef = jax.tree_util.tree_flatten(params)
    shapes = tuple((int(l.shape[0]), int(l.shape[1])) for l in leaves)
    max_r = max(r for r, _ in shapes)
    max_c = max(c for _, c in shapes)
    R = max(8, ((max_r + 7) // 8) * 8)
    C = max(128, ((max_c + 127) // 128) * 128)
    slab = jnp.stack([
        jnp.pad(jnp.asarray(l, jnp.float32), ((0, R - r), (0, C - c)))
        for l, (r, c) in zip(leaves, shapes)])
    return slab, treedef, shapes


def make_diff2struct_forward(params):
    slab, treedef, shapes = pack_params(params)          # packed ONCE, outside jit
    out_dim = params["main_net"][-1][5].shape[1]          # b_r: (1, H_last)
    kernel = functools.partial(_fused_forward_kernel, treedef=treedef, shapes=shapes)

    @jax.jit
    def fwd(slab, Is, hklss, fs):
        Is = Is.astype(jnp.float32)
        fs2 = fs.reshape(-1, 2).astype(jnp.float32)
        n, seq, d = hklss.shape
        hkls_flat = jnp.transpose(hklss.astype(jnp.float32), (1, 0, 2)).reshape(seq * n, d)
        vec = pl.pallas_call(
            kernel,
            out_shape=jax.ShapeDtypeStruct((1, out_dim), jnp.float32),
            in_specs=[pl.BlockSpec(memory_space=pltpu.MemorySpace.VMEM)] * 4,
            out_specs=pl.BlockSpec(memory_space=pltpu.MemorySpace.VMEM),
        )(Is, hkls_flat, fs2, slab)
        # Final x.reshape(-1, 2, 3)[-1]: only the trailing 6 hidden values survive.
        return vec.reshape(-1)[-6:].reshape(2, 3)

    return functools.partial(fwd, slab)


# ----------------------------------------------------------------------------
# Parameter construction (mirrors the PyTorch module's shapes / init ranges)
# ----------------------------------------------------------------------------
def _uniform(key, shape, stdv):
    return jax.random.uniform(key, shape, jnp.float32, -stdv, stdv)


def init_embed_linear(key, inp_dim, out_dim):
    stdv = 1.0 / math.sqrt(out_dim)
    k1, k2 = jax.random.split(key)
    return (_uniform(k1, (inp_dim, out_dim), stdv),
            _uniform(k2, (1, out_dim), stdv))


def init_embed_lstm(key, inp_dim, hid_dim):
    stdv = 1.0 / math.sqrt(hid_dim)
    ks = jax.random.split(key, 3)
    return (_uniform(ks[0], (inp_dim, 4 * hid_dim), stdv),   # W_xg
            _uniform(ks[1], (hid_dim, 4 * hid_dim), stdv),   # W_hg
            _uniform(ks[2], (1, 4 * hid_dim), stdv))         # b_g


def init_main_lstm(key, inp_dim, hid_dim):
    stdv = 1.0 / math.sqrt(hid_dim)
    ks = jax.random.split(key, 6)
    return (_uniform(ks[0], (inp_dim, 4 * hid_dim), stdv),   # W_xg
            _uniform(ks[1], (hid_dim, 4 * hid_dim), stdv),   # W_hg
            _uniform(ks[2], (1, 4 * hid_dim), stdv),         # b_g
            _uniform(ks[3], (hid_dim, hid_dim), stdv),       # W_cr
            _uniform(ks[4], (hid_dim, hid_dim), stdv),       # W_hr
            _uniform(ks[5], (1, hid_dim), stdv))             # b_r


def stack_dims(lyr, inp_dim, hid_dim, out_dim):
    if lyr == 1:
        return [(inp_dim, out_dim)]
    dims = [(inp_dim, hid_dim)]
    dims += [(hid_dim, hid_dim)] * (lyr - 2)
    dims += [(hid_dim, out_dim)]
    return dims


if __name__ == "__main__":
    # Hyper-parameters (small, self-consistent with the forward pass):
    #   f:    lyr=2, 2 -> 4 -> 6   (f_emb_dim == main hidden dims)
    #   I:    lyr=2, 5 -> 7 -> 6
    #   hkls: lyr=2, 3 -> 5 -> 6
    #   inp:  lyr=2, 12 -> 16 -> 8
    #   main: lyr=2, 8 -> 6 -> 6   (out_dim 6 reshapes to (2, 3))
    I_inp_dim, I_hid_dim, I_emb_dim = 5, 7, 6
    hkls_inp_dim, hkls_hid_dim, hkls_emb_dim = 3, 5, 6
    inp_inp_dim, inp_hid_dim, inp_emb_dim = 12, 16, 8
    f_inp_dim, f_hid_dim, f_emb_dim = 2, 4, 6
    main_lyr, main_inp_dim, main_hid_dim, main_out_dim = 2, 8, 6, 6

    key = jax.random.PRNGKey(0)
    keys = jax.random.split(key, 32)
    kit = iter(keys)

    params = {}
    params["I_net"] = [init_embed_linear(next(kit), i, o)
                       for (i, o) in stack_dims(2, I_inp_dim, I_hid_dim, I_emb_dim)]
    params["hkls_net"] = [init_embed_lstm(next(kit), i, o)
                          for (i, o) in stack_dims(2, hkls_inp_dim, hkls_hid_dim,
                                                   hkls_emb_dim)]
    params["inp_net"] = [init_embed_linear(next(kit), i, o)
                         for (i, o) in stack_dims(2, inp_inp_dim, inp_hid_dim,
                                                  inp_emb_dim)]
    params["f_nets"] = [
        [init_embed_linear(next(kit), i, o)
         for (i, o) in stack_dims(2, f_inp_dim, f_hid_dim, f_emb_dim)]
        for _ in range(main_lyr)
    ]
    params["main_net"] = [init_main_lstm(next(kit), i, o)
                          for (i, o) in stack_dims(main_lyr, main_inp_dim,
                                                   main_hid_dim, main_out_dim)]

    # Synthetic data: N=4 intensity vectors, 4 hkl sequences of length 8, 4 f rows.
    # TODO(synk): assumes all hkl sequences share the same (static) length.
    dkeys = jax.random.split(jax.random.PRNGKey(0), 3)
    Is = jax.random.normal(dkeys[0], (4, I_inp_dim), jnp.float32)
    hklss = jax.random.normal(dkeys[1], (4, 8, hkls_inp_dim), jnp.float32)
    fs = jax.random.normal(dkeys[2], (4, 2), jnp.float32)

    diff2struct_forward = make_diff2struct_forward(params)
    out = diff2struct_forward(Is, hklss, fs)
    out = jax.block_until_ready(out)
    assert out.shape == (2, 3), out.shape
    assert bool(jnp.all(jnp.isfinite(out)))
    print("KERNEL_OK")
</pallas_src>

<mosaic_0001>
module attributes {stable_mosaic.version = 11 : i64} {
  func.func @_fused_forward_kernel(%arg0: memref<4x5xf32, #tpu.memory_space<vmem>>, %arg1: memref<32x3xf32, #tpu.memory_space<vmem>>, %arg2: memref<4x2xf32, #tpu.memory_space<vmem>>, %arg3: memref<34x16x128xf32, #tpu.memory_space<vmem>>, %arg4: memref<1x6xf32, #tpu.memory_space<vmem>>) attributes {dimension_semantics = [], scalar_prefetch = 0 : i64, scratch_operands = 0 : i64, tpu.core_type = #tpu.core_type<tc>} {
    %c0 = arith.constant 0 : index
    %c0_0 = arith.constant 0 : index
    %c0_1 = arith.constant 0 : index
    %0 = vector.load %arg3[%c0, %c0_0, %c0_1] : memref<34x16x128xf32, #tpu.memory_space<vmem>>, vector<1x5x7xf32>
    %1 = vector.shape_cast %0 : vector<1x5x7xf32> to vector<5x7xf32>
    %c1 = arith.constant 1 : index
    %c0_2 = arith.constant 0 : index
    %c0_3 = arith.constant 0 : index
    %2 = vector.load %arg3[%c1, %c0_2, %c0_3] : memref<34x16x128xf32, #tpu.memory_space<vmem>>, vector<1x1x7xf32>
    %3 = vector.shape_cast %2 : vector<1x1x7xf32> to vector<1x7xf32>
    %c2 = arith.constant 2 : index
    %c0_4 = arith.constant 0 : index
    %c0_5 = arith.constant 0 : index
    %4 = vector.load %arg3[%c2, %c0_4, %c0_5] : memref<34x16x128xf32, #tpu.memory_space<vmem>>, vector<1x7x6xf32>
    %5 = vector.shape_cast %4 : vector<1x7x6xf32> to vector<7x6xf32>
    %c3 = arith.constant 3 : index
    %c0_6 = arith.constant 0 : index
    %c0_7 = arith.constant 0 : index
    %6 = vector.load %arg3[%c3, %c0_6, %c0_7] : memref<34x16x128xf32, #tpu.memory_space<vmem>>, vector<1x1x6xf32>
    %7 = vector.shape_cast %6 : vector<1x1x6xf32> to vector<1x6xf32>
    %c4 = arith.constant 4 : index
    %c0_8 = arith.constant 0 : index
    %c0_9 = arith.constant 0 : index
    %8 = vector.load %arg3[%c4, %c0_8, %c0_9] : memref<34x16x128xf32, #tpu.memory_space<vmem>>, vector<1x2x4xf32>
    %9 = vector.shape_cast %8 : vector<1x2x4xf32> to vector<2x4xf32>
    %c5 = arith.constant 5 : index
    %c0_10 = arith.constant 0 : index
    %c0_11 = arith.constant 0 : index
    %10 = vector.load %arg3[%c5, %c0_10, %c0_11] : memref<34x16x128xf32, #tpu.memory_space<vmem>>, vector<1x1x4xf32>
    %11 = vector.shape_cast %10 : vector<1x1x4xf32> to vector<1x4xf32>
    %c6 = arith.constant 6 : index
    %c0_12 = arith.constant 0 : index
    %c0_13 = arith.constant 0 : index
    %12 = vector.load %arg3[%c6, %c0_12, %c0_13] : memref<34x16x128xf32, #tpu.memory_space<vmem>>, vector<1x4x6xf32>
    %13 = vector.shape_cast %12 : vector<1x4x6xf32> to vector<4x6xf32>
    %c7 = arith.constant 7 : index
    %c0_14 = arith.constant 0 : index
    %c0_15 = arith.constant 0 : index
    %14 = vector.load %arg3[%c7, %c0_14, %c0_15] : memref<34x16x128xf32, #tpu.memory_space<vmem>>, vector<1x1x6xf32>
    %15 = vector.shape_cast %14 : vector<1x1x6xf32> to vector<1x6xf32>
    %c8 = arith.constant 8 : index
    %c0_16 = arith.constant 0 : index
    %c0_17 = arith.constant 0 : index
    %16 = vector.load %arg3[%c8, %c0_16, %c0_17] : memref<34x16x128xf32, #tpu.memory_space<vmem>>, vector<1x2x4xf32>
    %17 = vector.shape_cast %16 : vector<1x2x4xf32> to vector<2x4xf32>
    %c9 = arith.constant 9 : index
    %c0_18 = arith.constant 0 : index
    %c0_19 = arith.constant 0 : index
    %18 = vector.load %arg3[%c9, %c0_18, %c0_19] : memref<34x16x128xf32, #tpu.memory_space<vmem>>, vector<1x1x4xf32>
    %19 = vector.shape_cast %18 : vector<1x1x4xf32> to vector<1x4xf32>
    %c10 = arith.constant 10 : index
    %c0_20 = arith.constant 0 : index
    %c0_21 = arith.constant 0 : index
    %20 = vector.load %arg3[%c10, %c0_20, %c0_21] : memref<34x16x128xf32, #tpu.memory_space<vmem>>, vector<1x4x6xf32>
    %21 = vector.shape_cast %20 : vector<1x4x6xf32> to vector<4x6xf32>
    %c11 = arith.constant 11 : index
    %c0_22 = arith.constant 0 : index
    %c0_23 = arith.constant 0 : index
    %22 = vector.load %arg3[%c11, %c0_22, %c0_23] : memref<34x16x128xf32, #tpu.memory_space<vmem>>, vector<1x1x6xf32>
    %23 = vector.shape_cast %22 : vector<1x1x6xf32> to vector<1x6xf32>
    %c12 = arith.constant 12 : index
    %c0_24 = arith.constant 0 : index
    %c0_25 = arith.constant 0 : index
    %24 = vector.load %arg3[%c12, %c0_24, %c0_25] : memref<34x16x128xf32, #tpu.memory_space<vmem>>, vector<1x3x20xf32>
    %25 = vector.shape_cast %24 : vector<1x3x20xf32> to vector<3x20xf32>
    %c13 = arith.constant 13 : index
    %c0_26 = arith.constant 0 : index
    %c0_27 = arith.constant 0 : index
    %26 = vector.load %arg3[%c13, %c0_26, %c0_27] : memref<34x16x128xf32, #tpu.memory_space<vmem>>, vector<1x5x20xf32>
    %27 = vector.shape_cast %26 : vector<1x5x20xf32> to vector<5x20xf32>
    %c14 = arith.constant 14 : index
    %c0_28 = arith.constant 0 : index
    %c0_29 = arith.constant 0 : index
    %28 = vector.load %arg3[%c14, %c0_28, %c0_29] : memref<34x16x128xf32, #tpu.memory_space<vmem>>, vector<1x1x20xf32>
    %29 = vector.shape_cast %28 : vector<1x1x20xf32> to vector<1x20xf32>
    %c15 = arith.constant 15 : index
    %c0_30 = arith.constant 0 : index
    %c0_31 = arith.constant 0 : index
    %30 = vector.load %arg3[%c15, %c0_30, %c0_31] : memref<34x16x128xf32, #tpu.memory_space<vmem>>, vector<1x5x24xf32>
    %31 = vector.shape_cast %30 : vector<1x5x24xf32> to vector<5x24xf32>
    %c16 = arith.constant 16 : index
    %c0_32 = arith.constant 0 : index
    %c0_33 = arith.constant 0 : index
    %32 = vector.load %arg3[%c16, %c0_32, %c0_33] : memref<34x16x128xf32, #tpu.memory_space<vmem>>, vector<1x6x24xf32>
    %33 = vector.shape_cast %32 : vector<1x6x24xf32> to vector<6x24xf32>
    %c17 = arith.constant 17 : index
    %c0_34 = arith.constant 0 : index
    %c0_35 = arith.constant 0 : index
    %34 = vector.load %arg3[%c17, %c0_34, %c0_35] : memref<34x16x128xf32, #tpu.memory_space<vmem>>, vector<1x1x24xf32>
    %35 = vector.shape_cast %34 : vector<1x1x24xf32> to vector<1x24xf32>
    %c18 = arith.constant 18 : index
    %c0_36 = arith.constant 0 : index
    %c0_37 = arith.constant 0 : index
    %36 = vector.load %arg3[%c18, %c0_36, %c0_37] : memref<34x16x128xf32, #tpu.memory_space<vmem>>, vector<1x12x16xf32>
    %37 = vector.shape_cast %36 : vector<1x12x16xf32> to vector<12x16xf32>
    %c19 = arith.constant 19 : index
    %c0_38 = arith.constant 0 : index
    %c0_39 = arith.constant 0 : index
    %38 = vector.load %arg3[%c19, %c0_38, %c0_39] : memref<34x16x128xf32, #tpu.memory_space<vmem>>, vector<1x1x16xf32>
    %39 = vector.shape_cast %38 : vector<1x1x16xf32> to vector<1x16xf32>
    %c20 = arith.constant 20 : index
    %c0_40 = arith.constant 0 : index
    %c0_41 = arith.constant 0 : index
    %40 = vector.load %arg3[%c20, %c0_40, %c0_41] : memref<34x16x128xf32, #tpu.memory_space<vmem>>, vector<1x16x8xf32>
    %41 = vector.shape_cast %40 : vector<1x16x8xf32> to vector<16x8xf32>
    %c21 = arith.constant 21 : index
    %c0_42 = arith.constant 0 : index
    %c0_43 = arith.constant 0 : index
    %42 = vector.load %arg3[%c21, %c0_42, %c0_43] : memref<34x16x128xf32, #tpu.memory_space<vmem>>, vector<1x1x8xf32>
    %43 = vector.shape_cast %42 : vector<1x1x8xf32> to vector<1x8xf32>
    %c22 = arith.constant 22 : index
    %c0_44 = arith.constant 0 : index
    %c0_45 = arith.constant 0 : index
    %44 = vector.load %arg3[%c22, %c0_44, %c0_45] : memref<34x16x128xf32, #tpu.memory_space<vmem>>, vector<1x8x24xf32>
    %45 = vector.shape_cast %44 : vector<1x8x24xf32> to vector<8x24xf32>
    %c23 = arith.constant 23 : index
    %c0_46 = arith.constant 0 : index
    %c0_47 = arith.constant 0 : index
    %46 = vector.load %arg3[%c23, %c0_46, %c0_47] : memref<34x16x128xf32, #tpu.memory_space<vmem>>, vector<1x6x24xf32>
    %47 = vector.shape_cast %46 : vector<1x6x24xf32> to vector<6x24xf32>
    %c24 = arith.constant 24 : index
    %c0_48 = arith.constant 0 : index
    %c0_49 = arith.constant 0 : index
    %48 = vector.load %arg3[%c24, %c0_48, %c0_49] : memref<34x16x128xf32, #tpu.memory_space<vmem>>, vector<1x1x24xf32>
    %49 = vector.shape_cast %48 : vector<1x1x24xf32> to vector<1x24xf32>
    %c25 = arith.constant 25 : index
    %c0_50 = arith.constant 0 : index
    %c0_51 = arith.constant 0 : index
    %50 = vector.load %arg3[%c25, %c0_50, %c0_51] : memref<34x16x128xf32, #tpu.memory_space<vmem>>, vector<1x6x6xf32>
    %51 = vector.shape_cast %50 : vector<1x6x6xf32> to vector<6x6xf32>
    %c26 = arith.constant 26 : index
    %c0_52 = arith.constant 0 : index
    %c0_53 = arith.constant 0 : index
    %52 = vector.load %arg3[%c26, %c0_52, %c0_53] : memref<34x16x128xf32, #tpu.memory_space<vmem>>, vector<1x6x6xf32>
    %53 = vector.shape_cast %52 : vector<1x6x6xf32> to vector<6x6xf32>
    %c27 = arith.constant 27 : index
    %c0_54 = arith.constant 0 : index
    %c0_55 = arith.constant 0 : index
    %54 = vector.load %arg3[%c27, %c0_54, %c0_55] : memref<34x16x128xf32, #tpu.memory_space<vmem>>, vector<1x1x6xf32>
    %55 = vector.shape_cast %54 : vector<1x1x6xf32> to vector<1x6xf32>
    %c28 = arith.constant 28 : index
    %c0_56 = arith.constant 0 : index
    %c0_57 = arith.constant 0 : index
    %56 = vector.load %arg3[%c28, %c0_56, %c0_57] : memref<34x16x128xf32, #tpu.memory_space<vmem>>, vector<1x6x24xf32>
    %57 = vector.shape_cast %56 : vector<1x6x24xf32> to vector<6x24xf32>
    %c29 = arith.constant 29 : index
    %c0_58 = arith.constant 0 : index
    %c0_59 = arith.constant 0 : index
    %58 = vector.load %arg3[%c29, %c0_58, %c0_59] : memref<34x16x128xf32, #tpu.memory_space<vmem>>, vector<1x6x24xf32>
    %59 = vector.shape_cast %58 : vector<1x6x24xf32> to vector<6x24xf32>
    %c30 = arith.constant 30 : index
    %c0_60 = arith.constant 0 : index
    %c0_61 = arith.constant 0 : index
    %60 = vector.load %arg3[%c30, %c0_60, %c0_61] : memref<34x16x128xf32, #tpu.memory_space<vmem>>, vector<1x1x24xf32>
    %61 = vector.shape_cast %60 : vector<1x1x24xf32> to vector<1x24xf32>
    %c31 = arith.constant 31 : index
    %c0_62 = arith.constant 0 : index
    %c0_63 = arith.constant 0 : index
    %62 = vector.load %arg3[%c31, %c0_62, %c0_63] : memref<34x16x128xf32, #tpu.memory_space<vmem>>, vector<1x6x6xf32>
    %63 = vector.shape_cast %62 : vector<1x6x6xf32> to vector<6x6xf32>
    %c32 = arith.constant 32 : index
    %c0_64 = arith.constant 0 : index
    %c0_65 = arith.constant 0 : index
    %64 = vector.load %arg3[%c32, %c0_64, %c0_65] : memref<34x16x128xf32, #tpu.memory_space<vmem>>, vector<1x6x6xf32>
    %65 = vector.shape_cast %64 : vector<1x6x6xf32> to vector<6x6xf32>
    %c33 = arith.constant 33 : index
    %c0_66 = arith.constant 0 : index
    %c0_67 = arith.constant 0 : index
    %66 = vector.load %arg3[%c33, %c0_66, %c0_67] : memref<34x16x128xf32, #tpu.memory_space<vmem>>, vector<1x1x6xf32>
    %67 = vector.shape_cast %66 : vector<1x1x6xf32> to vector<1x6xf32>
    %c0_68 = arith.constant 0 : index
    %c0_69 = arith.constant 0 : index
    %68 = vector.load %arg0[%c0_68, %c0_69] : memref<4x5xf32, #tpu.memory_space<vmem>>, vector<4x5xf32>
    %c0_70 = arith.constant 0 : index
    %c0_71 = arith.constant 0 : index
    %69 = vector.load %arg1[%c0_70, %c0_71] : memref<32x3xf32, #tpu.memory_space<vmem>>, vector<32x3xf32>
    %c0_72 = arith.constant 0 : index
    %c0_73 = arith.constant 0 : index
    %70 = vector.load %arg2[%c0_72, %c0_73] : memref<4x2xf32, #tpu.memory_space<vmem>>, vector<4x2xf32>
    %cst = arith.constant dense<0.000000e+00> : vector<4x7xf32>
    %71 = tpu.matmul %68, %1, %cst {dimension_numbers = #tpu.dot_dimension_numbers<[1], [0], [0], [1], [0, 0, 1, 1], [], []>} : vector<4x5xf32>, vector<5x7xf32>, vector<4x7xf32> -> vector<4x7xf32>
    %72 = vector.broadcast %3 : vector<1x7xf32> to vector<4x7xf32>
    %73 = arith.addf %71, %72 : vector<4x7xf32>
    %cst_74 = arith.constant 0.000000e+00 : f32
    %74 = vector.broadcast %cst_74 : f32 to vector<4x7xf32>
    %75 = arith.maximumf %73, %74 : vector<4x7xf32>
    %cst_75 = arith.constant dense<0.000000e+00> : vector<4x6xf32>
    %76 = tpu.matmul %75, %5, %cst_75 {dimension_numbers = #tpu.dot_dimension_numbers<[1], [0], [0], [1], [0, 0, 1, 1], [], []>} : vector<4x7xf32>, vector<7x6xf32>, vector<4x6xf32> -> vector<4x6xf32>
    %77 = vector.broadcast %7 : vector<1x6xf32> to vector<4x6xf32>
    %78 = arith.addf %76, %77 : vector<4x6xf32>
    %cst_76 = arith.constant 0.000000e+00 : f32
    %79 = vector.broadcast %cst_76 : f32 to vector<4x6xf32>
    %80 = arith.maximumf %78, %79 : vector<4x6xf32>
    %81 = tpu.iota {dimensions = array<i32: 1>} : vector<1x20xi32>
    %c15_i32 = arith.constant 15 : i32
    %82 = vector.broadcast %c15_i32 : i32 to vector<1x20xi32>
    %83 = arith.cmpi slt, %81, %82 : vector<1x20xi32>
    %cst_77 = arith.constant 5.000000e-01 : f32
    %cst_78 = arith.constant 1.000000e+00 : f32
    %84 = vector.broadcast %cst_77 : f32 to vector<1x20xf32>
    %85 = vector.broadcast %cst_78 : f32 to vector<1x20xf32>
    %86 = arith.select %83, %84, %85 : vector<1x20xi1>, vector<1x20xf32>
    %cst_79 = arith.constant 5.000000e-01 : f32
    %cst_80 = arith.constant 0.000000e+00 : f32
    %87 = vector.broadcast %cst_79 : f32 to vector<1x20xf32>
    %88 = vector.broadcast %cst_80 : f32 to vector<1x20xf32>
    %89 = arith.select %83, %87, %88 : vector<1x20xi1>, vector<1x20xf32>
    %cst_81 = arith.constant dense<0.000000e+00> : vector<32x20xf32>
    %90 = tpu.matmul %69, %25, %cst_81 {dimension_numbers = #tpu.dot_dimension_numbers<[1], [0], [0], [1], [0, 0, 1, 1], [], []>} : vector<32x3xf32>, vector<3x20xf32>, vector<32x20xf32> -> vector<32x20xf32>
    %91 = vector.broadcast %29 : vector<1x20xf32> to vector<32x20xf32>
    %92 = arith.addf %90, %91 : vector<32x20xf32>
    %cst_82 = arith.constant 0.000000e+00 : f32
    %93 = vector.broadcast %cst_82 : f32 to vector<4x5xf32>
    %cst_83 = arith.constant 0.000000e+00 : f32
    %94 = vector.broadcast %cst_83 : f32 to vector<4x5xf32>
    %95 = vector.extract_strided_slice %92 {offsets = [0, 0], sizes = [4, 20], strides = [1, 1]} : vector<32x20xf32> to vector<4x20xf32>
    %cst_84 = arith.constant dense<0.000000e+00> : vector<4x20xf32>
    %96 = tpu.matmul %93, %27, %cst_84 {dimension_numbers = #tpu.dot_dimension_numbers<[1], [0], [0], [1], [0, 0, 1, 1], [], []>} : vector<4x5xf32>, vector<5x20xf32>, vector<4x20xf32> -> vector<4x20xf32>
    %97 = arith.addf %95, %96 : vector<4x20xf32>
    %98 = vector.broadcast %86 : vector<1x20xf32> to vector<4x20xf32>
    %99 = arith.mulf %97, %98 : vector<4x20xf32>
    %100 = math.tanh %99 : vector<4x20xf32>
    %101 = vector.broadcast %86 : vector<1x20xf32> to vector<4x20xf32>
    %102 = arith.mulf %100, %101 : vector<4x20xf32>
    %103 = vector.broadcast %89 : vector<1x20xf32> to vector<4x20xf32>
    %104 = arith.addf %102, %103 : vector<4x20xf32>
    %105 = vector.extract_strided_slice %104 {offsets = [0, 0], sizes = [4, 5], strides = [1, 1]} : vector<4x20xf32> to vector<4x5xf32>
    %106 = vector.extract_strided_slice %104 {offsets = [0, 5], sizes = [4, 5], strides = [1, 1]} : vector<4x20xf32> to vector<4x5xf32>
    %107 = vector.extract_strided_slice %104 {offsets = [0, 10], sizes = [4, 5], strides = [1, 1]} : vector<4x20xf32> to vector<4x5xf32>
    %108 = vector.extract_strided_slice %104 {offsets = [0, 15], sizes = [4, 5], strides = [1, 1]} : vector<4x20xf32> to vector<4x5xf32>
    %109 = arith.mulf %106, %94 : vector<4x5xf32>
    %110 = arith.mulf %107, %108 : vector<4x5xf32>
    %111 = arith.addf %109, %110 : vector<4x5xf32>
    %112 = math.tanh %111 : vector<4x5xf32>
    %113 = arith.mulf %105, %112 : vector<4x5xf32>
    %114 = vector.extract_strided_slice %92 {offsets = [4, 0], sizes = [4, 20], strides = [1, 1]} : vector<32x20xf32> to vector<4x20xf32>
    %cst_85 = arith.constant dense<0.000000e+00> : vector<4x20xf32>
    %115 = tpu.matmul %113, %27, %cst_85 {dimension_numbers = #tpu.dot_dimension_numbers<[1], [0], [0], [1], [0, 0, 1, 1], [], []>} : vector<4x5xf32>, vector<5x20xf32>, vector<4x20xf32> -> vector<4x20xf32>
    %116 = arith.addf %114, %115 : vector<4x20xf32>
    %117 = vector.broadcast %86 : vector<1x20xf32> to vector<4x20xf32>
    %118 = arith.mulf %116, %117 : vector<4x20xf32>
    %119 = math.tanh %118 : vector<4x20xf32>
    %120 = vector.broadcast %86 : vector<1x20xf32> to vector<4x20xf32>
    %121 = arith.mulf %119, %120 : vector<4x20xf32>
    %122 = vector.broadcast %89 : vector<1x20xf32> to vector<4x20xf32>
    %123 = arith.addf %121, %122 : vector<4x20xf32>
    %124 = vector.extract_strided_slice %123 {offsets = [0, 0], sizes = [4, 5], strides = [1, 1]} : vector<4x20xf32> to vector<4x5xf32>
    %125 = vector.extract_strided_slice %123 {offsets = [0, 5], sizes = [4, 5], strides = [1, 1]} : vector<4x20xf32> to vector<4x5xf32>
    %126 = vector.extract_strided_slice %123 {offsets = [0, 10], sizes = [4, 5], strides = [1, 1]} : vector<4x20xf32> to vector<4x5xf32>
    %127 = vector.extract_strided_slice %123 {offsets = [0, 15], sizes = [4, 5], strides = [1, 1]} : vector<4x20xf32> to vector<4x5xf32>
    %128 = arith.mulf %125, %111 : vector<4x5xf32>
    %129 = arith.mulf %126, %127 : vector<4x5xf32>
    %130 = arith.addf %128, %129 : vector<4x5xf32>
    %131 = math.tanh %130 : vector<4x5xf32>
    %132 = arith.mulf %124, %131 : vector<4x5xf32>
    %133 = vector.extract_strided_slice %92 {offsets = [8, 0], sizes = [4, 20], strides = [1, 1]} : vector<32x20xf32> to vector<4x20xf32>
    %cst_86 = arith.constant dense<0.000000e+00> : vector<4x20xf32>
    %134 = tpu.matmul %132, %27, %cst_86 {dimension_numbers = #tpu.dot_dimension_numbers<[1], [0], [0], [1], [0, 0, 1, 1], [], []>} : vector<4x5xf32>, vector<5x20xf32>, vector<4x20xf32> -> vector<4x20xf32>
    %135 = arith.addf %133, %134 : vector<4x20xf32>
    %136 = vector.broadcast %86 : vector<1x20xf32> to vector<4x20xf32>
    %137 = arith.mulf %135, %136 : vector<4x20xf32>
    %138 = math.tanh %137 : vector<4x20xf32>
    %139 = vector.broadcast %86 : vector<1x20xf32> to vector<4x20xf32>
    %140 = arith.mulf %138, %139 : vector<4x20xf32>
    %141 = vector.broadcast %89 : vector<1x20xf32> to vector<4x20xf32>
    %142 = arith.addf %140, %141 : vector<4x20xf32>
    %143 = vector.extract_strided_slice %142 {offsets = [0, 0], sizes = [4, 5], strides = [1, 1]} : vector<4x20xf32> to vector<4x5xf32>
    %144 = vector.extract_strided_slice %142 {offsets = [0, 5], sizes = [4, 5], strides = [1, 1]} : vector<4x20xf32> to vector<4x5xf32>
    %145 = vector.extract_strided_slice %142 {offsets = [0, 10], sizes = [4, 5], strides = [1, 1]} : vector<4x20xf32> to vector<4x5xf32>
    %146 = vector.extract_strided_slice %142 {offsets = [0, 15], sizes = [4, 5], strides = [1, 1]} : vector<4x20xf32> to vector<4x5xf32>
    %147 = arith.mulf %144, %130 : vector<4x5xf32>
    %148 = arith.mulf %145, %146 : vector<4x5xf32>
    %149 = arith.addf %147, %148 : vector<4x5xf32>
    %150 = math.tanh %149 : vector<4x5xf32>
    %151 = arith.mulf %143, %150 : vector<4x5xf32>
    %152 = vector.extract_strided_slice %92 {offsets = [12, 0], sizes = [4, 20], strides = [1, 1]} : vector<32x20xf32> to vector<4x20xf32>
    %cst_87 = arith.constant dense<0.000000e+00> : vector<4x20xf32>
    %153 = tpu.matmul %151, %27, %cst_87 {dimension_numbers = #tpu.dot_dimension_numbers<[1], [0], [0], [1], [0, 0, 1, 1], [], []>} : vector<4x5xf32>, vector<5x20xf32>, vector<4x20xf32> -> vector<4x20xf32>
    %154 = arith.addf %152, %153 : vector<4x20xf32>
    %155 = vector.broadcast %86 : vector<1x20xf32> to vector<4x20xf32>
    %156 = arith.mulf %154, %155 : vector<4x20xf32>
    %157 = math.tanh %156 : vector<4x20xf32>
    %158 = vector.broadcast %86 : vector<1x20xf32> to vector<4x20xf32>
    %159 = arith.mulf %157, %158 : vector<4x20xf32>
    %160 = vector.broadcast %89 : vector<1x20xf32> to vector<4x20xf32>
    %161 = arith.addf %159, %160 : vector<4x20xf32>
    %162 = vector.extract_strided_slice %161 {offsets = [0, 0], sizes = [4, 5], strides = [1, 1]} : vector<4x20xf32> to vector<4x5xf32>
    %163 = vector.extract_strided_slice %161 {offsets = [0, 5], sizes = [4, 5], strides = [1, 1]} : vector<4x20xf32> to vector<4x5xf32>
    %164 = vector.extract_strided_slice %161 {offsets = [0, 10], sizes = [4, 5], strides = [1, 1]} : vector<4x20xf32> to vector<4x5xf32>
    %165 = vector.extract_strided_slice %161 {offsets = [0, 15], sizes = [4, 5], strides = [1, 1]} : vector<4x20xf32> to vector<4x5xf32>
    %166 = arith.mulf %163, %149 : vector<4x5xf32>
    %167 = arith.mulf %164, %165 : vector<4x5xf32>
    %168 = arith.addf %166, %167 : vector<4x5xf32>
    %169 = math.tanh %168 : vector<4x5xf32>
    %170 = arith.mulf %162, %169 : vector<4x5xf32>
    %171 = vector.extract_strided_slice %92 {offsets = [16, 0], sizes = [4, 20], strides = [1, 1]} : vector<32x20xf32> to vector<4x20xf32>
    %cst_88 = arith.constant dense<0.000000e+00> : vector<4x20xf32>
    %172 = tpu.matmul %170, %27, %cst_88 {dimension_numbers = #tpu.dot_dimension_numbers<[1], [0], [0], [1], [0, 0, 1, 1], [], []>} : vector<4x5xf32>, vector<5x20xf32>, vector<4x20xf32> -> vector<4x20xf32>
    %173 = arith.addf %171, %172 : vector<4x20xf32>
    %174 = vector.broadcast %86 : vector<1x20xf32> to vector<4x20xf32>
    %175 = arith.mulf %173, %174 : vector<4x20xf32>
    %176 = math.tanh %175 : vector<4x20xf32>
    %177 = vector.broadcast %86 : vector<1x20xf32> to vector<4x20xf32>
    %178 = arith.mulf %176, %177 : vector<4x20xf32>
    %179 = vector.broadcast %89 : vector<1x20xf32> to vector<4x20xf32>
    %180 = arith.addf %178, %179 : vector<4x20xf32>
    %181 = vector.extract_strided_slice %180 {offsets = [0, 0], sizes = [4, 5], strides = [1, 1]} : vector<4x20xf32> to vector<4x5xf32>
    %182 = vector.extract_strided_slice %180 {offsets = [0, 5], sizes = [4, 5], strides = [1, 1]} : vector<4x20xf32> to vector<4x5xf32>
    %183 = vector.extract_strided_slice %180 {offsets = [0, 10], sizes = [4, 5], strides = [1, 1]} : vector<4x20xf32> to vector<4x5xf32>
    %184 = vector.extract_strided_slice %180 {offsets = [0, 15], sizes = [4, 5], strides = [1, 1]} : vector<4x20xf32> to vector<4x5xf32>
    %185 = arith.mulf %182, %168 : vector<4x5xf32>
    %186 = arith.mulf %183, %184 : vector<4x5xf32>
    %187 = arith.addf %185, %186 : vector<4x5xf32>
    %188 = math.tanh %187 : vector<4x5xf32>
    %189 = arith.mulf %181, %188 : vector<4x5xf32>
    %190 = vector.extract_strided_slice %92 {offsets = [20, 0], sizes = [4, 20], strides = [1, 1]} : vector<32x20xf32> to vector<4x20xf32>
    %cst_89 = arith.constant dense<0.000000e+00> : vector<4x20xf32>
    %191 = tpu.matmul %189, %27, %cst_89 {dimension_numbers = #tpu.dot_dimension_numbers<[1], [0], [0], [1], [0, 0, 1, 1], [], []>} : vector<4x5xf32>, vector<5x20xf32>, vector<4x20xf32> -> vector<4x20xf32>
    %192 = arith.addf %190, %191 : vector<4x20xf32>
    %193 = vector.broadcast %86 : vector<1x20xf32> to vector<4x20xf32>
    %194 = arith.mulf %192, %193 : vector<4x20xf32>
    %195 = math.tanh %194 : vector<4x20xf32>
    %196 = vector.broadcast %86 : vector<1x20xf32> to vector<4x20xf32>
    %197 = arith.mulf %195, %196 : vector<4x20xf32>
    %198 = vector.broadcast %89 : vector<1x20xf32> to vector<4x20xf32>
    %199 = arith.addf %197, %198 : vector<4x20xf32>
    %200 = vector.extract_strided_slice %199 {offsets = [0, 0], sizes = [4, 5], strides = [1, 1]} : vector<4x20xf32> to vector<4x5xf32>
    %201 = vector.extract_strided_slice %199 {offsets = [0, 5], sizes = [4, 5], strides = [1, 1]} : vector<4x20xf32> to vector<4x5xf32>
    %202 = vector.extract_strided_slice %199 {offsets = [0, 10], sizes = [4, 5], strides = [1, 1]} : vector<4x20xf32> to vector<4x5xf32>
    %203 = vector.extract_strided_slice %199 {offsets = [0, 15], sizes = [4, 5], strides = [1, 1]} : vector<4x20xf32> to vector<4x5xf32>
    %204 = arith.mulf %201, %187 : vector<4x5xf32>
    %205 = arith.mulf %202, %203 : vector<4x5xf32>
    %206 = arith.addf %204, %205 : vector<4x5xf32>
    %207 = math.tanh %206 : vector<4x5xf32>
    %208 = arith.mulf %200, %207 : vector<4x5xf32>
    %209 = vector.extract_strided_slice %92 {offsets = [24, 0], sizes = [4, 20], strides = [1, 1]} : vector<32x20xf32> to vector<4x20xf32>
    %cst_90 = arith.constant dense<0.000000e+00> : vector<4x20xf32>
    %210 = tpu.matmul %208, %27, %cst_90 {dimension_numbers = #tpu.dot_dimension_numbers<[1], [0], [0], [1], [0, 0, 1, 1], [], []>} : vector<4x5xf32>, vector<5x20xf32>, vector<4x20xf32> -> vector<4x20xf32>
    %211 = arith.addf %209, %210 : vector<4x20xf32>
    %212 = vector.broadcast %86 : vector<1x20xf32> to vector<4x20xf32>
    %213 = arith.mulf %211, %212 : vector<4x20xf32>
    %214 = math.tanh %213 : vector<4x20xf32>
    %215 = vector.broadcast %86 : vector<1x20xf32> to vector<4x20xf32>
    %216 = arith.mulf %214, %215 : vector<4x20xf32>
    %217 = vector.broadcast %89 : vector<1x20xf32> to vector<4x20xf32>
    %218 = arith.addf %216, %217 : vector<4x20xf32>
    %219 = vector.extract_strided_slice %218 {offsets = [0, 0], sizes = [4, 5], strides = [1, 1]} : vector<4x20xf32> to vector<4x5xf32>
    %220 = vector.extract_strided_slice %218 {offsets = [0, 5], sizes = [4, 5], strides = [1, 1]} : vector<4x20xf32> to vector<4x5xf32>
    %221 = vector.extract_strided_slice %218 {offsets = [0, 10], sizes = [4, 5], strides = [1, 1]} : vector<4x20xf32> to vector<4x5xf32>
    %222 = vector.extract_strided_slice %218 {offsets = [0, 15], sizes = [4, 5], strides = [1, 1]} : vector<4x20xf32> to vector<4x5xf32>
    %223 = arith.mulf %220, %206 : vector<4x5xf32>
    %224 = arith.mulf %221, %222 : vector<4x5xf32>
    %225 = arith.addf %223, %224 : vector<4x5xf32>
    %226 = math.tanh %225 : vector<4x5xf32>
    %227 = arith.mulf %219, %226 : vector<4x5xf32>
    %228 = vector.extract_strided_slice %92 {offsets = [28, 0], sizes = [4, 20], strides = [1, 1]} : vector<32x20xf32> to vector<4x20xf32>
    %cst_91 = arith.constant dense<0.000000e+00> : vector<4x20xf32>
    %229 = tpu.matmul %227, %27, %cst_91 {dimension_numbers = #tpu.dot_dimension_numbers<[1], [0], [0], [1], [0, 0, 1, 1], [], []>} : vector<4x5xf32>, vector<5x20xf32>, vector<4x20xf32> -> vector<4x20xf32>
    %230 = arith.addf %228, %229 : vector<4x20xf32>
    %231 = vector.broadcast %86 : vector<1x20xf32> to vector<4x20xf32>
    %232 = arith.mulf %230, %231 : vector<4x20xf32>
    %233 = math.tanh %232 : vector<4x20xf32>
    %234 = vector.broadcast %86 : vector<1x20xf32> to vector<4x20xf32>
    %235 = arith.mulf %233, %234 : vector<4x20xf32>
    %236 = vector.broadcast %89 : vector<1x20xf32> to vector<4x20xf32>
    %237 = arith.addf %235, %236 : vector<4x20xf32>
    %238 = vector.extract_strided_slice %237 {offsets = [0, 0], sizes = [4, 5], strides = [1, 1]} : vector<4x20xf32> to vector<4x5xf32>
    %239 = vector.extract_strided_slice %237 {offsets = [0, 5], sizes = [4, 5], strides = [1, 1]} : vector<4x20xf32> to vector<4x5xf32>
    %240 = vector.extract_strided_slice %237 {offsets = [0, 10], sizes = [4, 5], strides = [1, 1]} : vector<4x20xf32> to vector<4x5xf32>
    %241 = vector.extract_strided_slice %237 {offsets = [0, 15], sizes = [4, 5], strides = [1, 1]} : vector<4x20xf32> to vector<4x5xf32>
    %242 = arith.mulf %239, %225 : vector<4x5xf32>
    %243 = arith.mulf %240, %241 : vector<4x5xf32>
    %244 = arith.addf %242, %243 : vector<4x5xf32>
    %245 = math.tanh %244 : vector<4x5xf32>
    %246 = arith.mulf %238, %245 : vector<4x5xf32>
    %247 = tpu.concatenate %113, %132, %151, %170, %189, %208, %227, %246 in 0 : vector<4x5xf32>, vector<4x5xf32>, vector<4x5xf32>, vector<4x5xf32>, vector<4x5xf32>, vector<4x5xf32>, vector<4x5xf32>, vector<4x5xf32> -> vector<32x5xf32>
    %cst_92 = arith.constant 0.000000e+00 : f32
    %248 = vector.broadcast %cst_92 : f32 to vector<32x5xf32>
    %249 = arith.maximumf %247, %248 : vector<32x5xf32>
    %250 = tpu.iota {dimensions = array<i32: 1>} : vector<1x24xi32>
    %c18_i32 = arith.constant 18 : i32
    %251 = vector.broadcast %c18_i32 : i32 to vector<1x24xi32>
    %252 = arith.cmpi slt, %250, %251 : vector<1x24xi32>
    %cst_93 = arith.constant 5.000000e-01 : f32
    %cst_94 = arith.constant 1.000000e+00 : f32
    %253 = vector.broadcast %cst_93 : f32 to vector<1x24xf32>
    %254 = vector.broadcast %cst_94 : f32 to vector<1x24xf32>
    %255 = arith.select %252, %253, %254 : vector<1x24xi1>, vector<1x24xf32>
    %cst_95 = arith.constant 5.000000e-01 : f32
    %cst_96 = arith.constant 0.000000e+00 : f32
    %256 = vector.broadcast %cst_95 : f32 to vector<1x24xf32>
    %257 = vector.broadcast %cst_96 : f32 to vector<1x24xf32>
    %258 = arith.select %252, %256, %257 : vector<1x24xi1>, vector<1x24xf32>
    %cst_97 = arith.constant dense<0.000000e+00> : vector<32x24xf32>
    %259 = tpu.matmul %249, %31, %cst_97 {dimension_numbers = #tpu.dot_dimension_numbers<[1], [0], [0], [1], [0, 0, 1, 1], [], []>} : vector<32x5xf32>, vector<5x24xf32>, vector<32x24xf32> -> vector<32x24xf32>
    %260 = vector.broadcast %35 : vector<1x24xf32> to vector<32x24xf32>
    %261 = arith.addf %259, %260 : vector<32x24xf32>
    %cst_98 = arith.constant 0.000000e+00 : f32
    %262 = vector.broadcast %cst_98 : f32 to vector<4x6xf32>
    %cst_99 = arith.constant 0.000000e+00 : f32
    %263 = vector.broadcast %cst_99 : f32 to vector<4x6xf32>
    %264 = vector.extract_strided_slice %261 {offsets = [0, 0], sizes = [4, 24], strides = [1, 1]} : vector<32x24xf32> to vector<4x24xf32>
    %cst_100 = arith.constant dense<0.000000e+00> : vector<4x24xf32>
    %265 = tpu.matmul %262, %33, %cst_100 {dimension_numbers = #tpu.dot_dimension_numbers<[1], [0], [0], [1], [0, 0, 1, 1], [], []>} : vector<4x6xf32>, vector<6x24xf32>, vector<4x24xf32> -> vector<4x24xf32>
    %266 = arith.addf %264, %265 : vector<4x24xf32>
    %267 = vector.broadcast %255 : vector<1x24xf32> to vector<4x24xf32>
    %268 = arith.mulf %266, %267 : vector<4x24xf32>
    %269 = math.tanh %268 : vector<4x24xf32>
    %270 = vector.broadcast %255 : vector<1x24xf32> to vector<4x24xf32>
    %271 = arith.mulf %269, %270 : vector<4x24xf32>
    %272 = vector.broadcast %258 : vector<1x24xf32> to vector<4x24xf32>
    %273 = arith.addf %271, %272 : vector<4x24xf32>
    %274 = vector.extract_strided_slice %273 {offsets = [0, 0], sizes = [4, 6], strides = [1, 1]} : vector<4x24xf32> to vector<4x6xf32>
    %275 = vector.extract_strided_slice %273 {offsets = [0, 6], sizes = [4, 6], strides = [1, 1]} : vector<4x24xf32> to vector<4x6xf32>
    %276 = vector.extract_strided_slice %273 {offsets = [0, 12], sizes = [4, 6], strides = [1, 1]} : vector<4x24xf32> to vector<4x6xf32>
    %277 = vector.extract_strided_slice %273 {offsets = [0, 18], sizes = [4, 6], strides = [1, 1]} : vector<4x24xf32> to vector<4x6xf32>
    %278 = arith.mulf %275, %263 : vector<4x6xf32>
    %279 = arith.mulf %276, %277 : vector<4x6xf32>
    %280 = arith.addf %278, %279 : vector<4x6xf32>
    %281 = math.tanh %280 : vector<4x6xf32>
    %282 = arith.mulf %274, %281 : vector<4x6xf32>
    %283 = vector.extract_strided_slice %261 {offsets = [4, 0], sizes = [4, 24], strides = [1, 1]} : vector<32x24xf32> to vector<4x24xf32>
    %cst_101 = arith.constant dense<0.000000e+00> : vector<4x24xf32>
    %284 = tpu.matmul %282, %33, %cst_101 {dimension_numbers = #tpu.dot_dimension_numbers<[1], [0], [0], [1], [0, 0, 1, 1], [], []>} : vector<4x6xf32>, vector<6x24xf32>, vector<4x24xf32> -> vector<4x24xf32>
    %285 = arith.addf %283, %284 : vector<4x24xf32>
    %286 = vector.broadcast %255 : vector<1x24xf32> to vector<4x24xf32>
    %287 = arith.mulf %285, %286 : vector<4x24xf32>
    %288 = math.tanh %287 : vector<4x24xf32>
    %289 = vector.broadcast %255 : vector<1x24xf32> to vector<4x24xf32>
    %290 = arith.mulf %288, %289 : vector<4x24xf32>
    %291 = vector.broadcast %258 : vector<1x24xf32> to vector<4x24xf32>
    %292 = arith.addf %290, %291 : vector<4x24xf32>
    %293 = vector.extract_strided_slice %292 {offsets = [0, 0], sizes = [4, 6], strides = [1, 1]} : vector<4x24xf32> to vector<4x6xf32>
    %294 = vector.extract_strided_slice %292 {offsets = [0, 6], sizes = [4, 6], strides = [1, 1]} : vector<4x24xf32> to vector<4x6xf32>
    %295 = vector.extract_strided_slice %292 {offsets = [0, 12], sizes = [4, 6], strides = [1, 1]} : vector<4x24xf32> to vector<4x6xf32>
    %296 = vector.extract_strided_slice %292 {offsets = [0, 18], sizes = [4, 6], strides = [1, 1]} : vector<4x24xf32> to vector<4x6xf32>
    %297 = arith.mulf %294, %280 : vector<4x6xf32>
    %298 = arith.mulf %295, %296 : vector<4x6xf32>
    %299 = arith.addf %297, %298 : vector<4x6xf32>
    %300 = math.tanh %299 : vector<4x6xf32>
    %301 = arith.mulf %293, %300 : vector<4x6xf32>
    %302 = vector.extract_strided_slice %261 {offsets = [8, 0], sizes = [4, 24], strides = [1, 1]} : vector<32x24xf32> to vector<4x24xf32>
    %cst_102 = arith.constant dense<0.000000e+00> : vector<4x24xf32>
    %303 = tpu.matmul %301, %33, %cst_102 {dimension_numbers = #tpu.dot_dimension_numbers<[1], [0], [0], [1], [0, 0, 1, 1], [], []>} : vector<4x6xf32>, vector<6x24xf32>, vector<4x24xf32> -> vector<4x24xf32>
    %304 = arith.addf %302, %303 : vector<4x24xf32>
    %305 = vector.broadcast %255 : vector<1x24xf32> to vector<4x24xf32>
    %306 = arith.mulf %304, %305 : vector<4x24xf32>
    %307 = math.tanh %306 : vector<4x24xf32>
    %308 = vector.broadcast %255 : vector<1x24xf32> to vector<4x24xf32>
    %309 = arith.mulf %307, %308 : vector<4x24xf32>
    %310 = vector.broadcast %258 : vector<1x24xf32> to vector<4x24xf32>
    %311 = arith.addf %309, %310 : vector<4x24xf32>
    %312 = vector.extract_strided_slice %311 {offsets = [0, 0], sizes = [4, 6], strides = [1, 1]} : vector<4x24xf32> to vector<4x6xf32>
    %313 = vector.extract_strided_slice %311 {offsets = [0, 6], sizes = [4, 6], strides = [1, 1]} : vector<4x24xf32> to vector<4x6xf32>
    %314 = vector.extract_strided_slice %311 {offsets = [0, 12], sizes = [4, 6], strides = [1, 1]} : vector<4x24xf32> to vector<4x6xf32>
    %315 = vector.extract_strided_slice %311 {offsets = [0, 18], sizes = [4, 6], strides = [1, 1]} : vector<4x24xf32> to vector<4x6xf32>
    %316 = arith.mulf %313, %299 : vector<4x6xf32>
    %317 = arith.mulf %314, %315 : vector<4x6xf32>
    %318 = arith.addf %316, %317 : vector<4x6xf32>
    %319 = math.tanh %318 : vector<4x6xf32>
    %320 = arith.mulf %312, %319 : vector<4x6xf32>
    %321 = vector.extract_strided_slice %261 {offsets = [12, 0], sizes = [4, 24], strides = [1, 1]} : vector<32x24xf32> to vector<4x24xf32>
    %cst_103 = arith.constant dense<0.000000e+00> : vector<4x24xf32>
    %322 = tpu.matmul %320, %33, %cst_103 {dimension_numbers = #tpu.dot_dimension_numbers<[1], [0], [0], [1], [0, 0, 1, 1], [], []>} : vector<4x6xf32>, vector<6x24xf32>, vector<4x24xf32> -> vector<4x24xf32>
    %323 = arith.addf %321, %322 : vector<4x24xf32>
    %324 = vector.broadcast %255 : vector<1x24xf32> to vector<4x24xf32>
    %325 = arith.mulf %323, %324 : vector<4x24xf32>
    %326 = math.tanh %325 : vector<4x24xf32>
    %327 = vector.broadcast %255 : vector<1x24xf32> to vector<4x24xf32>
    %328 = arith.mulf %326, %327 : vector<4x24xf32>
    %329 = vector.broadcast %258 : vector<1x24xf32> to vector<4x24xf32>
    %330 = arith.addf %328, %329 : vector<4x24xf32>
    %331 = vector.extract_strided_slice %330 {offsets = [0, 0], sizes = [4, 6], strides = [1, 1]} : vector<4x24xf32> to vector<4x6xf32>
    %332 = vector.extract_strided_slice %330 {offsets = [0, 6], sizes = [4, 6], strides = [1, 1]} : vector<4x24xf32> to vector<4x6xf32>
    %333 = vector.extract_strided_slice %330 {offsets = [0, 12], sizes = [4, 6], strides = [1, 1]} : vector<4x24xf32> to vector<4x6xf32>
    %334 = vector.extract_strided_slice %330 {offsets = [0, 18], sizes = [4, 6], strides = [1, 1]} : vector<4x24xf32> to vector<4x6xf32>
    %335 = arith.mulf %332, %318 : vector<4x6xf32>
    %336 = arith.mulf %333, %334 : vector<4x6xf32>
    %337 = arith.addf %335, %336 : vector<4x6xf32>
    %338 = math.tanh %337 : vector<4x6xf32>
    %339 = arith.mulf %331, %338 : vector<4x6xf32>
    %340 = vector.extract_strided_slice %261 {offsets = [16, 0], sizes = [4, 24], strides = [1, 1]} : vector<32x24xf32> to vector<4x24xf32>
    %cst_104 = arith.constant dense<0.000000e+00> : vector<4x24xf32>
    %341 = tpu.matmul %339, %33, %cst_104 {dimension_numbers = #tpu.dot_dimension_numbers<[1], [0], [0], [1], [0, 0, 1, 1], [], []>} : vector<4x6xf32>, vector<6x24xf32>, vector<4x24xf32> -> vector<4x24xf32>
    %342 = arith.addf %340, %341 : vector<4x24xf32>
    %343 = vector.broadcast %255 : vector<1x24xf32> to vector<4x24xf32>
    %344 = arith.mulf %342, %343 : vector<4x24xf32>
    %345 = math.tanh %344 : vector<4x24xf32>
    %346 = vector.broadcast %255 : vector<1x24xf32> to vector<4x24xf32>
    %347 = arith.mulf %345, %346 : vector<4x24xf32>
    %348 = vector.broadcast %258 : vector<1x24xf32> to vector<4x24xf32>
    %349 = arith.addf %347, %348 : vector<4x24xf32>
    %350 = vector.extract_strided_slice %349 {offsets = [0, 0], sizes = [4, 6], strides = [1, 1]} : vector<4x24xf32> to vector<4x6xf32>
    %351 = vector.extract_strided_slice %349 {offsets = [0, 6], sizes = [4, 6], strides = [1, 1]} : vector<4x24xf32> to vector<4x6xf32>
    %352 = vector.extract_strided_slice %349 {offsets = [0, 12], sizes = [4, 6], strides = [1, 1]} : vector<4x24xf32> to vector<4x6xf32>
    %353 = vector.extract_strided_slice %349 {offsets = [0, 18], sizes = [4, 6], strides = [1, 1]} : vector<4x24xf32> to vector<4x6xf32>
    %354 = arith.mulf %351, %337 : vector<4x6xf32>
    %355 = arith.mulf %352, %353 : vector<4x6xf32>
    %356 = arith.addf %354, %355 : vector<4x6xf32>
    %357 = math.tanh %356 : vector<4x6xf32>
    %358 = arith.mulf %350, %357 : vector<4x6xf32>
    %359 = vector.extract_strided_slice %261 {offsets = [20, 0], sizes = [4, 24], strides = [1, 1]} : vector<32x24xf32> to vector<4x24xf32>
    %cst_105 = arith.constant dense<0.000000e+00> : vector<4x24xf32>
    %360 = tpu.matmul %358, %33, %cst_105 {dimension_numbers = #tpu.dot_dimension_numbers<[1], [0], [0], [1], [0, 0, 1, 1], [], []>} : vector<4x6xf32>, vector<6x24xf32>, vector<4x24xf32> -> vector<4x24xf32>
    %361 = arith.addf %359, %360 : vector<4x24xf32>
    %362 = vector.broadcast %255 : vector<1x24xf32> to vector<4x24xf32>
    %363 = arith.mulf %361, %362 : vector<4x24xf32>
    %364 = math.tanh %363 : vector<4x24xf32>
    %365 = vector.broadcast %255 : vector<1x24xf32> to vector<4x24xf32>
    %366 = arith.mulf %364, %365 : vector<4x24xf32>
    %367 = vector.broadcast %258 : vector<1x24xf32> to vector<4x24xf32>
    %368 = arith.addf %366, %367 : vector<4x24xf32>
    %369 = vector.extract_strided_slice %368 {offsets = [0, 0], sizes = [4, 6], strides = [1, 1]} : vector<4x24xf32> to vector<4x6xf32>
    %370 = vector.extract_strided_slice %368 {offsets = [0, 6], sizes = [4, 6], strides = [1, 1]} : vector<4x24xf32> to vector<4x6xf32>
    %371 = vector.extract_strided_slice %368 {offsets = [0, 12], sizes = [4, 6], strides = [1, 1]} : vector<4x24xf32> to vector<4x6xf32>
    %372 = vector.extract_strided_slice %368 {offsets = [0, 18], sizes = [4, 6], strides = [1, 1]} : vector<4x24xf32> to vector<4x6xf32>
    %373 = arith.mulf %370, %356 : vector<4x6xf32>
    %374 = arith.mulf %371, %372 : vector<4x6xf32>
    %375 = arith.addf %373, %374 : vector<4x6xf32>
    %376 = math.tanh %375 : vector<4x6xf32>
    %377 = arith.mulf %369, %376 : vector<4x6xf32>
    %378 = vector.extract_strided_slice %261 {offsets = [24, 0], sizes = [4, 24], strides = [1, 1]} : vector<32x24xf32> to vector<4x24xf32>
    %cst_106 = arith.constant dense<0.000000e+00> : vector<4x24xf32>
    %379 = tpu.matmul %377, %33, %cst_106 {dimension_numbers = #tpu.dot_dimension_numbers<[1], [0], [0], [1], [0, 0, 1, 1], [], []>} : vector<4x6xf32>, vector<6x24xf32>, vector<4x24xf32> -> vector<4x24xf32>
    %380 = arith.addf %378, %379 : vector<4x24xf32>
    %381 = vector.broadcast %255 : vector<1x24xf32> to vector<4x24xf32>
    %382 = arith.mulf %380, %381 : vector<4x24xf32>
    %383 = math.tanh %382 : vector<4x24xf32>
    %384 = vector.broadcast %255 : vector<1x24xf32> to vector<4x24xf32>
    %385 = arith.mulf %383, %384 : vector<4x24xf32>
    %386 = vector.broadcast %258 : vector<1x24xf32> to vector<4x24xf32>
    %387 = arith.addf %385, %386 : vector<4x24xf32>
    %388 = vector.extract_strided_slice %387 {offsets = [0, 0], sizes = [4, 6], strides = [1, 1]} : vector<4x24xf32> to vector<4x6xf32>
    %389 = vector.extract_strided_slice %387 {offsets = [0, 6], sizes = [4, 6], strides = [1, 1]} : vector<4x24xf32> to vector<4x6xf32>
    %390 = vector.extract_strided_slice %387 {offsets = [0, 12], sizes = [4, 6], strides = [1, 1]} : vector<4x24xf32> to vector<4x6xf32>
    %391 = vector.extract_strided_slice %387 {offsets = [0, 18], sizes = [4, 6], strides = [1, 1]} : vector<4x24xf32> to vector<4x6xf32>
    %392 = arith.mulf %389, %375 : vector<4x6xf32>
    %393 = arith.mulf %390, %391 : vector<4x6xf32>
    %394 = arith.addf %392, %393 : vector<4x6xf32>
    %395 = math.tanh %394 : vector<4x6xf32>
    %396 = arith.mulf %388, %395 : vector<4x6xf32>
    %397 = vector.extract_strided_slice %261 {offsets = [28, 0], sizes = [4, 24], strides = [1, 1]} : vector<32x24xf32> to vector<4x24xf32>
    %cst_107 = arith.constant dense<0.000000e+00> : vector<4x24xf32>
    %398 = tpu.matmul %396, %33, %cst_107 {dimension_numbers = #tpu.dot_dimension_numbers<[1], [0], [0], [1], [0, 0, 1, 1], [], []>} : vector<4x6xf32>, vector<6x24xf32>, vector<4x24xf32> -> vector<4x24xf32>
    %399 = arith.addf %397, %398 : vector<4x24xf32>
    %400 = vector.broadcast %255 : vector<1x24xf32> to vector<4x24xf32>
    %401 = arith.mulf %399, %400 : vector<4x24xf32>
    %402 = math.tanh %401 : vector<4x24xf32>
    %403 = vector.broadcast %255 : vector<1x24xf32> to vector<4x24xf32>
    %404 = arith.mulf %402, %403 : vector<4x24xf32>
    %405 = vector.broadcast %258 : vector<1x24xf32> to vector<4x24xf32>
    %406 = arith.addf %404, %405 : vector<4x24xf32>
    %407 = vector.extract_strided_slice %406 {offsets = [0, 0], sizes = [4, 6], strides = [1, 1]} : vector<4x24xf32> to vector<4x6xf32>
    %408 = vector.extract_strided_slice %406 {offsets = [0, 6], sizes = [4, 6], strides = [1, 1]} : vector<4x24xf32> to vector<4x6xf32>
    %409 = vector.extract_strided_slice %406 {offsets = [0, 12], sizes = [4, 6], strides = [1, 1]} : vector<4x24xf32> to vector<4x6xf32>
    %410 = vector.extract_strided_slice %406 {offsets = [0, 18], sizes = [4, 6], strides = [1, 1]} : vector<4x24xf32> to vector<4x6xf32>
    %411 = arith.mulf %408, %394 : vector<4x6xf32>
    %412 = arith.mulf %409, %410 : vector<4x6xf32>
    %413 = arith.addf %411, %412 : vector<4x6xf32>
    %414 = math.tanh %413 : vector<4x6xf32>
    %415 = arith.mulf %407, %414 : vector<4x6xf32>
    %cst_108 = arith.constant 0.000000e+00 : f32
    %416 = vector.broadcast %cst_108 : f32 to vector<4x6xf32>
    %417 = arith.maximumf %415, %416 : vector<4x6xf32>
    %418 = vector.extract_strided_slice %37 {offsets = [0, 0], sizes = [6, 16], strides = [1, 1]} : vector<12x16xf32> to vector<6x16xf32>
    %cst_109 = arith.constant dense<0.000000e+00> : vector<4x16xf32>
    %419 = tpu.matmul %80, %418, %cst_109 {dimension_numbers = #tpu.dot_dimension_numbers<[1], [0], [0], [1], [0, 0, 1, 1], [], []>} : vector<4x6xf32>, vector<6x16xf32>, vector<4x16xf32> -> vector<4x16xf32>
    %420 = vector.extract_strided_slice %37 {offsets = [6, 0], sizes = [6, 16], strides = [1, 1]} : vector<12x16xf32> to vector<6x16xf32>
    %cst_110 = arith.constant dense<0.000000e+00> : vector<4x16xf32>
    %421 = tpu.matmul %417, %420, %cst_110 {dimension_numbers = #tpu.dot_dimension_numbers<[1], [0], [0], [1], [0, 0, 1, 1], [], []>} : vector<4x6xf32>, vector<6x16xf32>, vector<4x16xf32> -> vector<4x16xf32>
    %422 = arith.addf %419, %421 : vector<4x16xf32>
    %423 = vector.broadcast %39 : vector<1x16xf32> to vector<4x16xf32>
    %424 = arith.addf %422, %423 : vector<4x16xf32>
    %cst_111 = arith.constant 0.000000e+00 : f32
    %425 = vector.broadcast %cst_111 : f32 to vector<4x16xf32>
    %426 = arith.maximumf %424, %425 : vector<4x16xf32>
    %cst_112 = arith.constant dense<0.000000e+00> : vector<4x8xf32>
    %427 = tpu.matmul %426, %41, %cst_112 {dimension_numbers = #tpu.dot_dimension_numbers<[1], [0], [0], [1], [0, 0, 1, 1], [], []>} : vector<4x16xf32>, vector<16x8xf32>, vector<4x8xf32> -> vector<4x8xf32>
    %428 = vector.broadcast %43 : vector<1x8xf32> to vector<4x8xf32>
    %429 = arith.addf %427, %428 : vector<4x8xf32>
    %cst_113 = arith.constant dense<0.000000e+00> : vector<4x4xf32>
    %430 = tpu.matmul %70, %9, %cst_113 {dimension_numbers = #tpu.dot_dimension_numbers<[1], [0], [0], [1], [0, 0, 1, 1], [], []>} : vector<4x2xf32>, vector<2x4xf32>, vector<4x4xf32> -> vector<4x4xf32>
    %431 = vector.broadcast %11 : vector<1x4xf32> to vector<4x4xf32>
    %432 = arith.addf %430, %431 : vector<4x4xf32>
    %cst_114 = arith.constant 0.000000e+00 : f32
    %433 = vector.broadcast %cst_114 : f32 to vector<4x4xf32>
    %434 = arith.maximumf %432, %433 : vector<4x4xf32>
    %cst_115 = arith.constant dense<0.000000e+00> : vector<4x6xf32>
    %435 = tpu.matmul %434, %13, %cst_115 {dimension_numbers = #tpu.dot_dimension_numbers<[1], [0], [0], [1], [0, 0, 1, 1], [], []>} : vector<4x4xf32>, vector<4x6xf32>, vector<4x6xf32> -> vector<4x6xf32>
    %436 = vector.broadcast %15 : vector<1x6xf32> to vector<4x6xf32>
    %437 = arith.addf %435, %436 : vector<4x6xf32>
    %cst_116 = arith.constant 0.000000e+00 : f32
    %438 = vector.broadcast %cst_116 : f32 to vector<4x6xf32>
    %439 = arith.maximumf %437, %438 : vector<4x6xf32>
    %cst_117 = arith.constant dense<0.000000e+00> : vector<4x4xf32>
    %440 = tpu.matmul %70, %17, %cst_117 {dimension_numbers = #tpu.dot_dimension_numbers<[1], [0], [0], [1], [0, 0, 1, 1], [], []>} : vector<4x2xf32>, vector<2x4xf32>, vector<4x4xf32> -> vector<4x4xf32>
    %441 = vector.broadcast %19 : vector<1x4xf32> to vector<4x4xf32>
    %442 = arith.addf %440, %441 : vector<4x4xf32>
    %cst_118 = arith.constant 0.000000e+00 : f32
    %443 = vector.broadcast %cst_118 : f32 to vector<4x4xf32>
    %444 = arith.maximumf %442, %443 : vector<4x4xf32>
    %cst_119 = arith.constant dense<0.000000e+00> : vector<4x6xf32>
    %445 = tpu.matmul %444, %21, %cst_119 {dimension_numbers = #tpu.dot_dimension_numbers<[1], [0], [0], [1], [0, 0, 1, 1], [], []>} : vector<4x4xf32>, vector<4x6xf32>, vector<4x6xf32> -> vector<4x6xf32>
    %446 = vector.broadcast %23 : vector<1x6xf32> to vector<4x6xf32>
    %447 = arith.addf %445, %446 : vector<4x6xf32>
    %cst_120 = arith.constant 0.000000e+00 : f32
    %448 = vector.broadcast %cst_120 : f32 to vector<4x6xf32>
    %449 = arith.maximumf %447, %448 : vector<4x6xf32>
    %cst_121 = arith.constant 0.000000e+00 : f32
    %450 = vector.broadcast %cst_121 : f32 to vector<4x8xf32>
    %451 = arith.maximumf %429, %450 : vector<4x8xf32>
    %452 = tpu.iota {dimensions = array<i32: 1>} : vector<1x24xi32>
    %c18_i32_122 = arith.constant 18 : i32
    %453 = vector.broadcast %c18_i32_122 : i32 to vector<1x24xi32>
    %454 = arith.cmpi slt, %452, %453 : vector<1x24xi32>
    %cst_123 = arith.constant 5.000000e-01 : f32
    %cst_124 = arith.constant 1.000000e+00 : f32
    %455 = vector.broadcast %cst_123 : f32 to vector<1x24xf32>
    %456 = vector.broadcast %cst_124 : f32 to vector<1x24xf32>
    %457 = arith.select %454, %455, %456 : vector<1x24xi1>, vector<1x24xf32>
    %cst_125 = arith.constant 5.000000e-01 : f32
    %cst_126 = arith.constant 0.000000e+00 : f32
    %458 = vector.broadcast %cst_125 : f32 to vector<1x24xf32>
    %459 = vector.broadcast %cst_126 : f32 to vector<1x24xf32>
    %460 = arith.select %454, %458, %459 : vector<1x24xi1>, vector<1x24xf32>
    %cst_127 = arith.constant dense<0.000000e+00> : vector<4x24xf32>
    %461 = tpu.matmul %451, %45, %cst_127 {dimension_numbers = #tpu.dot_dimension_numbers<[1], [0], [0], [1], [0, 0, 1, 1], [], []>} : vector<4x8xf32>, vector<8x24xf32>, vector<4x24xf32> -> vector<4x24xf32>
    %462 = vector.broadcast %49 : vector<1x24xf32> to vector<4x24xf32>
    %463 = arith.addf %461, %462 : vector<4x24xf32>
    %464 = tpu.concatenate %47, %53 in 1 : vector<6x24xf32>, vector<6x6xf32> -> vector<6x30xf32>
    %cst_128 = arith.constant 0.000000e+00 : f32
    %465 = vector.broadcast %cst_128 : f32 to vector<4x6xf32>
    %cst_129 = arith.constant dense<0.000000e+00> : vector<4x30xf32>
    %466 = tpu.matmul %439, %464, %cst_129 {dimension_numbers = #tpu.dot_dimension_numbers<[1], [0], [0], [1], [0, 0, 1, 1], [], []>} : vector<4x6xf32>, vector<6x30xf32>, vector<4x30xf32> -> vector<4x30xf32>
    %467 = vector.extract_strided_slice %463 {offsets = [0, 0], sizes = [1, 24], strides = [1, 1]} : vector<4x24xf32> to vector<1x24xf32>
    %468 = vector.extract_strided_slice %466 {offsets = [0, 0], sizes = [4, 24], strides = [1, 1]} : vector<4x30xf32> to vector<4x24xf32>
    %469 = vector.broadcast %467 : vector<1x24xf32> to vector<4x24xf32>
    %470 = arith.addf %469, %468 : vector<4x24xf32>
    %471 = vector.broadcast %457 : vector<1x24xf32> to vector<4x24xf32>
    %472 = arith.mulf %470, %471 : vector<4x24xf32>
    %473 = math.tanh %472 : vector<4x24xf32>
    %474 = vector.broadcast %457 : vector<1x24xf32> to vector<4x24xf32>
    %475 = arith.mulf %473, %474 : vector<4x24xf32>
    %476 = vector.broadcast %460 : vector<1x24xf32> to vector<4x24xf32>
    %477 = arith.addf %475, %476 : vector<4x24xf32>
    %478 = vector.extract_strided_slice %477 {offsets = [0, 0], sizes = [4, 6], strides = [1, 1]} : vector<4x24xf32> to vector<4x6xf32>
    %479 = vector.extract_strided_slice %477 {offsets = [0, 6], sizes = [4, 6], strides = [1, 1]} : vector<4x24xf32> to vector<4x6xf32>
    %480 = vector.extract_strided_slice %477 {offsets = [0, 12], sizes = [4, 6], strides = [1, 1]} : vector<4x24xf32> to vector<4x6xf32>
    %481 = vector.extract_strided_slice %477 {offsets = [0, 18], sizes = [4, 6], strides = [1, 1]} : vector<4x24xf32> to vector<4x6xf32>
    %482 = arith.mulf %479, %465 : vector<4x6xf32>
    %483 = arith.mulf %480, %481 : vector<4x6xf32>
    %484 = arith.addf %482, %483 : vector<4x6xf32>
    %485 = vector.extract_strided_slice %466 {offsets = [0, 24], sizes = [4, 6], strides = [1, 1]} : vector<4x30xf32> to vector<4x6xf32>
    %cst_130 = arith.constant dense<0.000000e+00> : vector<4x6xf32>
    %486 = tpu.matmul %484, %51, %cst_130 {dimension_numbers = #tpu.dot_dimension_numbers<[1], [0], [0], [1], [0, 0, 1, 1], [], []>} : vector<4x6xf32>, vector<6x6xf32>, vector<4x6xf32> -> vector<4x6xf32>
    %487 = arith.addf %485, %486 : vector<4x6xf32>
    %488 = vector.broadcast %55 : vector<1x6xf32> to vector<4x6xf32>
    %489 = arith.addf %487, %488 : vector<4x6xf32>
    %490 = math.tanh %489 : vector<4x6xf32>
    %491 = arith.mulf %478, %490 : vector<4x6xf32>
    %cst_131 = arith.constant dense<0.000000e+00> : vector<6xf32>
    %492 = vector.multi_reduction <add>, %491, %cst_131 [0] : vector<4x6xf32> to vector<6xf32>
    %493 = vector.shape_cast %492 : vector<6xf32> to vector<1x6xf32>
    %cst_132 = arith.constant dense<0.000000e+00> : vector<4x30xf32>
    %494 = tpu.matmul %491, %464, %cst_132 {dimension_numbers = #tpu.dot_dimension_numbers<[1], [0], [0], [1], [0, 0, 1, 1], [], []>} : vector<4x6xf32>, vector<6x30xf32>, vector<4x30xf32> -> vector<4x30xf32>
    %495 = vector.extract_strided_slice %463 {offsets = [1, 0], sizes = [1, 24], strides = [1, 1]} : vector<4x24xf32> to vector<1x24xf32>
    %496 = vector.extract_strided_slice %494 {offsets = [0, 0], sizes = [4, 24], strides = [1, 1]} : vector<4x30xf32> to vector<4x24xf32>
    %497 = vector.broadcast %495 : vector<1x24xf32> to vector<4x24xf32>
    %498 = arith.addf %497, %496 : vector<4x24xf32>
    %499 = vector.broadcast %457 : vector<1x24xf32> to vector<4x24xf32>
    %500 = arith.mulf %498, %499 : vector<4x24xf32>
    %501 = math.tanh %500 : vector<4x24xf32>
    %502 = vector.broadcast %457 : vector<1x24xf32> to vector<4x24xf32>
    %503 = arith.mulf %501, %502 : vector<4x24xf32>
    %504 = vector.broadcast %460 : vector<1x24xf32> to vector<4x24xf32>
    %505 = arith.addf %503, %504 : vector<4x24xf32>
    %506 = vector.extract_strided_slice %505 {offsets = [0, 0], sizes = [4, 6], strides = [1, 1]} : vector<4x24xf32> to vector<4x6xf32>
    %507 = vector.extract_strided_slice %505 {offsets = [0, 6], sizes = [4, 6], strides = [1, 1]} : vector<4x24xf32> to vector<4x6xf32>
    %508 = vector.extract_strided_slice %505 {offsets = [0, 12], sizes = [4, 6], strides = [1, 1]} : vector<4x24xf32> to vector<4x6xf32>
    %509 = vector.extract_strided_slice %505 {offsets = [0, 18], sizes = [4, 6], strides = [1, 1]} : vector<4x24xf32> to vector<4x6xf32>
    %510 = arith.mulf %507, %484 : vector<4x6xf32>
    %511 = arith.mulf %508, %509 : vector<4x6xf32>
    %512 = arith.addf %510, %511 : vector<4x6xf32>
    %513 = vector.extract_strided_slice %494 {offsets = [0, 24], sizes = [4, 6], strides = [1, 1]} : vector<4x30xf32> to vector<4x6xf32>
    %cst_133 = arith.constant dense<0.000000e+00> : vector<4x6xf32>
    %514 = tpu.matmul %512, %51, %cst_133 {dimension_numbers = #tpu.dot_dimension_numbers<[1], [0], [0], [1], [0, 0, 1, 1], [], []>} : vector<4x6xf32>, vector<6x6xf32>, vector<4x6xf32> -> vector<4x6xf32>
    %515 = arith.addf %513, %514 : vector<4x6xf32>
    %516 = vector.broadcast %55 : vector<1x6xf32> to vector<4x6xf32>
    %517 = arith.addf %515, %516 : vector<4x6xf32>
    %518 = math.tanh %517 : vector<4x6xf32>
    %519 = arith.mulf %506, %518 : vector<4x6xf32>
    %cst_134 = arith.constant dense<0.000000e+00> : vector<6xf32>
    %520 = vector.multi_reduction <add>, %519, %cst_134 [0] : vector<4x6xf32> to vector<6xf32>
    %521 = vector.shape_cast %520 : vector<6xf32> to vector<1x6xf32>
    %cst_135 = arith.constant dense<0.000000e+00> : vector<4x30xf32>
    %522 = tpu.matmul %519, %464, %cst_135 {dimension_numbers = #tpu.dot_dimension_numbers<[1], [0], [0], [1], [0, 0, 1, 1], [], []>} : vector<4x6xf32>, vector<6x30xf32>, vector<4x30xf32> -> vector<4x30xf32>
    %523 = vector.extract_strided_slice %463 {offsets = [2, 0], sizes = [1, 24], strides = [1, 1]} : vector<4x24xf32> to vector<1x24xf32>
    %524 = vector.extract_strided_slice %522 {offsets = [0, 0], sizes = [4, 24], strides = [1, 1]} : vector<4x30xf32> to vector<4x24xf32>
    %525 = vector.broadcast %523 : vector<1x24xf32> to vector<4x24xf32>
    %526 = arith.addf %525, %524 : vector<4x24xf32>
    %527 = vector.broadcast %457 : vector<1x24xf32> to vector<4x24xf32>
    %528 = arith.mulf %526, %527 : vector<4x24xf32>
    %529 = math.tanh %528 : vector<4x24xf32>
    %530 = vector.broadcast %457 : vector<1x24xf32> to vector<4x24xf32>
    %531 = arith.mulf %529, %530 : vector<4x24xf32>
    %532 = vector.broadcast %460 : vector<1x24xf32> to vector<4x24xf32>
    %533 = arith.addf %531, %532 : vector<4x24xf32>
    %534 = vector.extract_strided_slice %533 {offsets = [0, 0], sizes = [4, 6], strides = [1, 1]} : vector<4x24xf32> to vector<4x6xf32>
    %535 = vector.extract_strided_slice %533 {offsets = [0, 6], sizes = [4, 6], strides = [1, 1]} : vector<4x24xf32> to vector<4x6xf32>
    %536 = vector.extract_strided_slice %533 {offsets = [0, 12], sizes = [4, 6], strides = [1, 1]} : vector<4x24xf32> to vector<4x6xf32>
    %537 = vector.extract_strided_slice %533 {offsets = [0, 18], sizes = [4, 6], strides = [1, 1]} : vector<4x24xf32> to vector<4x6xf32>
    %538 = arith.mulf %535, %512 : vector<4x6xf32>
    %539 = arith.mulf %536, %537 : vector<4x6xf32>
    %540 = arith.addf %538, %539 : vector<4x6xf32>
    %541 = vector.extract_strided_slice %522 {offsets = [0, 24], sizes = [4, 6], strides = [1, 1]} : vector<4x30xf32> to vector<4x6xf32>
    %cst_136 = arith.constant dense<0.000000e+00> : vector<4x6xf32>
    %542 = tpu.matmul %540, %51, %cst_136 {dimension_numbers = #tpu.dot_dimension_numbers<[1], [0], [0], [1], [0, 0, 1, 1], [], []>} : vector<4x6xf32>, vector<6x6xf32>, vector<4x6xf32> -> vector<4x6xf32>
    %543 = arith.addf %541, %542 : vector<4x6xf32>
    %544 = vector.broadcast %55 : vector<1x6xf32> to vector<4x6xf32>
    %545 = arith.addf %543, %544 : vector<4x6xf32>
    %546 = math.tanh %545 : vector<4x6xf32>
    %547 = arith.mulf %534, %546 : vector<4x6xf32>
    %cst_137 = arith.constant dense<0.000000e+00> : vector<6xf32>
    %548 = vector.multi_reduction <add>, %547, %cst_137 [0] : vector<4x6xf32> to vector<6xf32>
    %549 = vector.shape_cast %548 : vector<6xf32> to vector<1x6xf32>
    %cst_138 = arith.constant dense<0.000000e+00> : vector<4x30xf32>
    %550 = tpu.matmul %547, %464, %cst_138 {dimension_numbers = #tpu.dot_dimension_numbers<[1], [0], [0], [1], [0, 0, 1, 1], [], []>} : vector<4x6xf32>, vector<6x30xf32>, vector<4x30xf32> -> vector<4x30xf32>
    %551 = vector.extract_strided_slice %463 {offsets = [3, 0], sizes = [1, 24], strides = [1, 1]} : vector<4x24xf32> to vector<1x24xf32>
    %552 = vector.extract_strided_slice %550 {offsets = [0, 0], sizes = [4, 24], strides = [1, 1]} : vector<4x30xf32> to vector<4x24xf32>
    %553 = vector.broadcast %551 : vector<1x24xf32> to vector<4x24xf32>
    %554 = arith.addf %553, %552 : vector<4x24xf32>
    %555 = vector.broadcast %457 : vector<1x24xf32> to vector<4x24xf32>
    %556 = arith.mulf %554, %555 : vector<4x24xf32>
    %557 = math.tanh %556 : vector<4x24xf32>
    %558 = vector.broadcast %457 : vector<1x24xf32> to vector<4x24xf32>
    %559 = arith.mulf %557, %558 : vector<4x24xf32>
    %560 = vector.broadcast %460 : vector<1x24xf32> to vector<4x24xf32>
    %561 = arith.addf %559, %560 : vector<4x24xf32>
    %562 = vector.extract_strided_slice %561 {offsets = [0, 0], sizes = [4, 6], strides = [1, 1]} : vector<4x24xf32> to vector<4x6xf32>
    %563 = vector.extract_strided_slice %561 {offsets = [0, 6], sizes = [4, 6], strides = [1, 1]} : vector<4x24xf32> to vector<4x6xf32>
    %564 = vector.extract_strided_slice %561 {offsets = [0, 12], sizes = [4, 6], strides = [1, 1]} : vector<4x24xf32> to vector<4x6xf32>
    %565 = vector.extract_strided_slice %561 {offsets = [0, 18], sizes = [4, 6], strides = [1, 1]} : vector<4x24xf32> to vector<4x6xf32>
    %566 = arith.mulf %563, %540 : vector<4x6xf32>
    %567 = arith.mulf %564, %565 : vector<4x6xf32>
    %568 = arith.addf %566, %567 : vector<4x6xf32>
    %569 = vector.extract_strided_slice %550 {offsets = [0, 24], sizes = [4, 6], strides = [1, 1]} : vector<4x30xf32> to vector<4x6xf32>
    %cst_139 = arith.constant dense<0.000000e+00> : vector<4x6xf32>
    %570 = tpu.matmul %568, %51, %cst_139 {dimension_numbers = #tpu.dot_dimension_numbers<[1], [0], [0], [1], [0, 0, 1, 1], [], []>} : vector<4x6xf32>, vector<6x6xf32>, vector<4x6xf32> -> vector<4x6xf32>
    %571 = arith.addf %569, %570 : vector<4x6xf32>
    %572 = vector.broadcast %55 : vector<1x6xf32> to vector<4x6xf32>
    %573 = arith.addf %571, %572 : vector<4x6xf32>
    %574 = math.tanh %573 : vector<4x6xf32>
    %575 = arith.mulf %562, %574 : vector<4x6xf32>
    %cst_140 = arith.constant dense<0.000000e+00> : vector<6xf32>
    %576 = vector.multi_reduction <add>, %575, %cst_140 [0] : vector<4x6xf32> to vector<6xf32>
    %577 = vector.shape_cast %576 : vector<6xf32> to vector<1x6xf32>
    %578 = tpu.concatenate %493, %521, %549, %577 in 0 : vector<1x6xf32>, vector<1x6xf32>, vector<1x6xf32>, vector<1x6xf32> -> vector<4x6xf32>
    %cst_141 = arith.constant 0.000000e+00 : f32
    %579 = vector.broadcast %cst_141 : f32 to vector<4x6xf32>
    %580 = arith.maximumf %578, %579 : vector<4x6xf32>
    %581 = tpu.iota {dimensions = array<i32: 1>} : vector<1x24xi32>
    %c18_i32_142 = arith.constant 18 : i32
    %582 = vector.broadcast %c18_i32_142 : i32 to vector<1x24xi32>
    %583 = arith.cmpi slt, %581, %582 : vector<1x24xi32>
    %cst_143 = arith.constant 5.000000e-01 : f32
    %cst_144 = arith.constant 1.000000e+00 : f32
    %584 = vector.broadcast %cst_143 : f32 to vector<1x24xf32>
    %585 = vector.broadcast %cst_144 : f32 to vector<1x24xf32>
    %586 = arith.select %583, %584, %585 : vector<1x24xi1>, vector<1x24xf32>
    %cst_145 = arith.constant 5.000000e-01 : f32
    %cst_146 = arith.constant 0.000000e+00 : f32
    %587 = vector.broadcast %cst_145 : f32 to vector<1x24xf32>
    %588 = vector.broadcast %cst_146 : f32 to vector<1x24xf32>
    %589 = arith.select %583, %587, %588 : vector<1x24xi1>, vector<1x24xf32>
    %cst_147 = arith.constant dense<0.000000e+00> : vector<4x24xf32>
    %590 = tpu.matmul %580, %57, %cst_147 {dimension_numbers = #tpu.dot_dimension_numbers<[1], [0], [0], [1], [0, 0, 1, 1], [], []>} : vector<4x6xf32>, vector<6x24xf32>, vector<4x24xf32> -> vector<4x24xf32>
    %591 = vector.broadcast %61 : vector<1x24xf32> to vector<4x24xf32>
    %592 = arith.addf %590, %591 : vector<4x24xf32>
    %593 = tpu.concatenate %59, %65 in 1 : vector<6x24xf32>, vector<6x6xf32> -> vector<6x30xf32>
    %cst_148 = arith.constant 0.000000e+00 : f32
    %594 = vector.broadcast %cst_148 : f32 to vector<4x6xf32>
    %cst_149 = arith.constant dense<0.000000e+00> : vector<4x30xf32>
    %595 = tpu.matmul %449, %593, %cst_149 {dimension_numbers = #tpu.dot_dimension_numbers<[1], [0], [0], [1], [0, 0, 1, 1], [], []>} : vector<4x6xf32>, vector<6x30xf32>, vector<4x30xf32> -> vector<4x30xf32>
    %596 = vector.extract_strided_slice %592 {offsets = [0, 0], sizes = [1, 24], strides = [1, 1]} : vector<4x24xf32> to vector<1x24xf32>
    %597 = vector.extract_strided_slice %595 {offsets = [0, 0], sizes = [4, 24], strides = [1, 1]} : vector<4x30xf32> to vector<4x24xf32>
    %598 = vector.broadcast %596 : vector<1x24xf32> to vector<4x24xf32>
    %599 = arith.addf %598, %597 : vector<4x24xf32>
    %600 = vector.broadcast %586 : vector<1x24xf32> to vector<4x24xf32>
    %601 = arith.mulf %599, %600 : vector<4x24xf32>
    %602 = math.tanh %601 : vector<4x24xf32>
    %603 = vector.broadcast %586 : vector<1x24xf32> to vector<4x24xf32>
    %604 = arith.mulf %602, %603 : vector<4x24xf32>
    %605 = vector.broadcast %589 : vector<1x24xf32> to vector<4x24xf32>
    %606 = arith.addf %604, %605 : vector<4x24xf32>
    %607 = vector.extract_strided_slice %606 {offsets = [0, 0], sizes = [4, 6], strides = [1, 1]} : vector<4x24xf32> to vector<4x6xf32>
    %608 = vector.extract_strided_slice %606 {offsets = [0, 6], sizes = [4, 6], strides = [1, 1]} : vector<4x24xf32> to vector<4x6xf32>
    %609 = vector.extract_strided_slice %606 {offsets = [0, 12], sizes = [4, 6], strides = [1, 1]} : vector<4x24xf32> to vector<4x6xf32>
    %610 = vector.extract_strided_slice %606 {offsets = [0, 18], sizes = [4, 6], strides = [1, 1]} : vector<4x24xf32> to vector<4x6xf32>
    %611 = arith.mulf %608, %594 : vector<4x6xf32>
    %612 = arith.mulf %609, %610 : vector<4x6xf32>
    %613 = arith.addf %611, %612 : vector<4x6xf32>
    %614 = vector.extract_strided_slice %595 {offsets = [0, 24], sizes = [4, 6], strides = [1, 1]} : vector<4x30xf32> to vector<4x6xf32>
    %cst_150 = arith.constant dense<0.000000e+00> : vector<4x6xf32>
    %615 = tpu.matmul %613, %63, %cst_150 {dimension_numbers = #tpu.dot_dimension_numbers<[1], [0], [0], [1], [0, 0, 1, 1], [], []>} : vector<4x6xf32>, vector<6x6xf32>, vector<4x6xf32> -> vector<4x6xf32>
    %616 = arith.addf %614, %615 : vector<4x6xf32>
    %617 = vector.broadcast %67 : vector<1x6xf32> to vector<4x6xf32>
    %618 = arith.addf %616, %617 : vector<4x6xf32>
    %619 = math.tanh %618 : vector<4x6xf32>
    %620 = arith.mulf %607, %619 : vector<4x6xf32>
    %cst_151 = arith.constant dense<0.000000e+00> : vector<4x30xf32>
    %621 = tpu.matmul %620, %593, %cst_151 {dimension_numbers = #tpu.dot_dimension_numbers<[1], [0], [0], [1], [0, 0, 1, 1], [], []>} : vector<4x6xf32>, vector<6x30xf32>, vector<4x30xf32> -> vector<4x30xf32>
    %622 = vector.extract_strided_slice %592 {offsets = [1, 0], sizes = [1, 24], strides = [1, 1]} : vector<4x24xf32> to vector<1x24xf32>
    %623 = vector.extract_strided_slice %621 {offsets = [0, 0], sizes = [4, 24], strides = [1, 1]} : vector<4x30xf32> to vector<4x24xf32>
    %624 = vector.broadcast %622 : vector<1x24xf32> to vector<4x24xf32>
    %625 = arith.addf %624, %623 : vector<4x24xf32>
    %626 = vector.broadcast %586 : vector<1x24xf32> to vector<4x24xf32>
    %627 = arith.mulf %625, %626 : vector<4x24xf32>
    %628 = math.tanh %627 : vector<4x24xf32>
    %629 = vector.broadcast %586 : vector<1x24xf32> to vector<4x24xf32>
    %630 = arith.mulf %628, %629 : vector<4x24xf32>
    %631 = vector.broadcast %589 : vector<1x24xf32> to vector<4x24xf32>
    %632 = arith.addf %630, %631 : vector<4x24xf32>
    %633 = vector.extract_strided_slice %632 {offsets = [0, 0], sizes = [4, 6], strides = [1, 1]} : vector<4x24xf32> to vector<4x6xf32>
    %634 = vector.extract_strided_slice %632 {offsets = [0, 6], sizes = [4, 6], strides = [1, 1]} : vector<4x24xf32> to vector<4x6xf32>
    %635 = vector.extract_strided_slice %632 {offsets = [0, 12], sizes = [4, 6], strides = [1, 1]} : vector<4x24xf32> to vector<4x6xf32>
    %636 = vector.extract_strided_slice %632 {offsets = [0, 18], sizes = [4, 6], strides = [1, 1]} : vector<4x24xf32> to vector<4x6xf32>
    %637 = arith.mulf %634, %613 : vector<4x6xf32>
    %638 = arith.mulf %635, %636 : vector<4x6xf32>
    %639 = arith.addf %637, %638 : vector<4x6xf32>
    %640 = vector.extract_strided_slice %621 {offsets = [0, 24], sizes = [4, 6], strides = [1, 1]} : vector<4x30xf32> to vector<4x6xf32>
    %cst_152 = arith.constant dense<0.000000e+00> : vector<4x6xf32>
    %641 = tpu.matmul %639, %63, %cst_152 {dimension_numbers = #tpu.dot_dimension_numbers<[1], [0], [0], [1], [0, 0, 1, 1], [], []>} : vector<4x6xf32>, vector<6x6xf32>, vector<4x6xf32> -> vector<4x6xf32>
    %642 = arith.addf %640, %641 : vector<4x6xf32>
    %643 = vector.broadcast %67 : vector<1x6xf32> to vector<4x6xf32>
    %644 = arith.addf %642, %643 : vector<4x6xf32>
    %645 = math.tanh %644 : vector<4x6xf32>
    %646 = arith.mulf %633, %645 : vector<4x6xf32>
    %cst_153 = arith.constant dense<0.000000e+00> : vector<4x30xf32>
    %647 = tpu.matmul %646, %593, %cst_153 {dimension_numbers = #tpu.dot_dimension_numbers<[1], [0], [0], [1], [0, 0, 1, 1], [], []>} : vector<4x6xf32>, vector<6x30xf32>, vector<4x30xf32> -> vector<4x30xf32>
    %648 = vector.extract_strided_slice %592 {offsets = [2, 0], sizes = [1, 24], strides = [1, 1]} : vector<4x24xf32> to vector<1x24xf32>
    %649 = vector.extract_strided_slice %647 {offsets = [0, 0], sizes = [4, 24], strides = [1, 1]} : vector<4x30xf32> to vector<4x24xf32>
    %650 = vector.broadcast %648 : vector<1x24xf32> to vector<4x24xf32>
    %651 = arith.addf %650, %649 : vector<4x24xf32>
    %652 = vector.broadcast %586 : vector<1x24xf32> to vector<4x24xf32>
    %653 = arith.mulf %651, %652 : vector<4x24xf32>
    %654 = math.tanh %653 : vector<4x24xf32>
    %655 = vector.broadcast %586 : vector<1x24xf32> to vector<4x24xf32>
    %656 = arith.mulf %654, %655 : vector<4x24xf32>
    %657 = vector.broadcast %589 : vector<1x24xf32> to vector<4x24xf32>
    %658 = arith.addf %656, %657 : vector<4x24xf32>
    %659 = vector.extract_strided_slice %658 {offsets = [0, 0], sizes = [4, 6], strides = [1, 1]} : vector<4x24xf32> to vector<4x6xf32>
    %660 = vector.extract_strided_slice %658 {offsets = [0, 6], sizes = [4, 6], strides = [1, 1]} : vector<4x24xf32> to vector<4x6xf32>
    %661 = vector.extract_strided_slice %658 {offsets = [0, 12], sizes = [4, 6], strides = [1, 1]} : vector<4x24xf32> to vector<4x6xf32>
    %662 = vector.extract_strided_slice %658 {offsets = [0, 18], sizes = [4, 6], strides = [1, 1]} : vector<4x24xf32> to vector<4x6xf32>
    %663 = arith.mulf %660, %639 : vector<4x6xf32>
    %664 = arith.mulf %661, %662 : vector<4x6xf32>
    %665 = arith.addf %663, %664 : vector<4x6xf32>
    %666 = vector.extract_strided_slice %647 {offsets = [0, 24], sizes = [4, 6], strides = [1, 1]} : vector<4x30xf32> to vector<4x6xf32>
    %cst_154 = arith.constant dense<0.000000e+00> : vector<4x6xf32>
    %667 = tpu.matmul %665, %63, %cst_154 {dimension_numbers = #tpu.dot_dimension_numbers<[1], [0], [0], [1], [0, 0, 1, 1], [], []>} : vector<4x6xf32>, vector<6x6xf32>, vector<4x6xf32> -> vector<4x6xf32>
    %668 = arith.addf %666, %667 : vector<4x6xf32>
    %669 = vector.broadcast %67 : vector<1x6xf32> to vector<4x6xf32>
    %670 = arith.addf %668, %669 : vector<4x6xf32>
    %671 = math.tanh %670 : vector<4x6xf32>
    %672 = arith.mulf %659, %671 : vector<4x6xf32>
    %cst_155 = arith.constant dense<0.000000e+00> : vector<4x30xf32>
    %673 = tpu.matmul %672, %593, %cst_155 {dimension_numbers = #tpu.dot_dimension_numbers<[1], [0], [0], [1], [0, 0, 1, 1], [], []>} : vector<4x6xf32>, vector<6x30xf32>, vector<4x30xf32> -> vector<4x30xf32>
    %674 = vector.extract_strided_slice %592 {offsets = [3, 0], sizes = [1, 24], strides = [1, 1]} : vector<4x24xf32> to vector<1x24xf32>
    %675 = vector.extract_strided_slice %673 {offsets = [0, 0], sizes = [4, 24], strides = [1, 1]} : vector<4x30xf32> to vector<4x24xf32>
    %676 = vector.broadcast %674 : vector<1x24xf32> to vector<4x24xf32>
    %677 = arith.addf %676, %675 : vector<4x24xf32>
    %678 = vector.broadcast %586 : vector<1x24xf32> to vector<4x24xf32>
    %679 = arith.mulf %677, %678 : vector<4x24xf32>
    %680 = math.tanh %679 : vector<4x24xf32>
    %681 = vector.broadcast %586 : vector<1x24xf32> to vector<4x24xf32>
    %682 = arith.mulf %680, %681 : vector<4x24xf32>
    %683 = vector.broadcast %589 : vector<1x24xf32> to vector<4x24xf32>
    %684 = arith.addf %682, %683 : vector<4x24xf32>
    %685 = vector.extract_strided_slice %684 {offsets = [0, 0], sizes = [4, 6], strides = [1, 1]} : vector<4x24xf32> to vector<4x6xf32>
    %686 = vector.extract_strided_slice %684 {offsets = [0, 6], sizes = [4, 6], strides = [1, 1]} : vector<4x24xf32> to vector<4x6xf32>
    %687 = vector.extract_strided_slice %684 {offsets = [0, 12], sizes = [4, 6], strides = [1, 1]} : vector<4x24xf32> to vector<4x6xf32>
    %688 = vector.extract_strided_slice %684 {offsets = [0, 18], sizes = [4, 6], strides = [1, 1]} : vector<4x24xf32> to vector<4x6xf32>
    %689 = arith.mulf %686, %665 : vector<4x6xf32>
    %690 = arith.mulf %687, %688 : vector<4x6xf32>
    %691 = arith.addf %689, %690 : vector<4x6xf32>
    %692 = vector.extract_strided_slice %673 {offsets = [0, 24], sizes = [4, 6], strides = [1, 1]} : vector<4x30xf32> to vector<4x6xf32>
    %cst_156 = arith.constant dense<0.000000e+00> : vector<4x6xf32>
    %693 = tpu.matmul %691, %63, %cst_156 {dimension_numbers = #tpu.dot_dimension_numbers<[1], [0], [0], [1], [0, 0, 1, 1], [], []>} : vector<4x6xf32>, vector<6x6xf32>, vector<4x6xf32> -> vector<4x6xf32>
    %694 = arith.addf %692, %693 : vector<4x6xf32>
    %695 = vector.broadcast %67 : vector<1x6xf32> to vector<4x6xf32>
    %696 = arith.addf %694, %695 : vector<4x6xf32>
    %697 = math.tanh %696 : vector<4x6xf32>
    %698 = arith.mulf %685, %697 : vector<4x6xf32>
    %699 = vector.extract_strided_slice %698 {offsets = [3, 0], sizes = [1, 6], strides = [1, 1]} : vector<4x6xf32> to vector<1x6xf32>
    %700 = math.tanh %699 : vector<1x6xf32>
    %c0_157 = arith.constant 0 : index
    %c0_158 = arith.constant 0 : index
    %701 = vector.load %arg4[%c0_157, %c0_158] : memref<1x6xf32, #tpu.memory_space<vmem>>, vector<1x6xf32>
    tpu.vector_store %arg4[%c0_157, %c0_158], %700 {strides = array<i32>} : memref<1x6xf32, #tpu.memory_space<vmem>>, vector<1x6xf32>,
    return
  }
}

</mosaic_0001>

<bundles_post_ra>
// kernel: fwd.1
= control target key start
LH: loop header
LB: loop body
LE: loop exit
PB: predicated region body
PF: predicated region fallthrough
CT: control target
= control target key end

     0   :  { %9 = vsyncpa [#allocation3], 0  ;;  %s4909_s15 = smov [#allocation2]   ;;  %s5521_s0 = inlined_call_operand.vmem [shape: f32[4,5], index: 0, kind: input, shape index: {}]   ;;  %s5522_s1 = inlined_call_operand.vmem [shape: f32[32,3], index: 1, kind: input, shape index: {}]   ;;  %s5523_s2 = inlined_call_operand.vmem [shape: f32[4,2], index: 2, kind: input, shape index: {}]   ;;  %s5524_s3 = inlined_call_operand.hbm [shape: f32[34,16,128], index: 3, kind: input, shape index: {}]   ;;  %s5525_s4 = inlined_call_operand.vmem [shape: f32[1,6], index: 4, kind: output, shape index: {}]  }
   0x1   :  { %s21_s16 = sshll.u32 %s4909_s15, 4  ;;  %s22_s16 = int_to_ptr.vmem [resolvable:$true] %s21_s16 }
   0x2   :  { %s4895_s17 = scalar_lea.vmem %s22_s16, 8704  ;;  %p4900_p1 = scmp.lt.s32.totalorder %s22_s16, %s22_s16 }
   0x3   :  { %p4896_p0 = scmp.ne.s32.totalorder %s22_s16, %s4895_s17  ;;  %p4901_p2 = scmp.lt.s32.totalorder %s4895_s17, %s4895_s17 }
   0x5   :  { %p4902_p3 = por %p4901_p2, %p4900_p1 }
   0x7   :  { %p4903_p4 = pnand %p4902_p3, %p4896_p0 }
   0x9   :  { %4906 = shalt.err (!%p4903_p4)
}
   0xa   :  { %s4910_s18 = smov 128   ;;  %s4911_s19 = smov 8  }
   0xb   :  { %27 = dma.hbm_to_vmem [thread:$0]  %s5524_s3, 8704, %s22_s16, [#allocation3], %s4910_s18, %s4910_s18, %s4911_s19  }
   0xc   :  { %4907 = dma.done.wait [#allocation3], 8704  }
   0xd   :  { %4908 = vsyncadd [#allocation3], 4294958592  ;;  %v4912_v0 = vmov 0.0   ;;  %vm4913_vm0 = vmmov 0   ;;  %vm114_vm1 = vcmask 1044480   ;;  %vm110_vm2 = vcmask 39936  }
   0xe   :  { %4546 = vmatprep.subr.mxu0 %v4912_v0  ;;  %4548 = vmatprep.mubr.msk.f32.mxu0 %vm4913_vm0, %v4912_v0  ;;  %v31_v1 = vld [vmem:[#allocation2] sm:$0x1f]  ;;  %vm294_vm3 = vcmask 1042432   ;;  %vm281_vm4 = vcmask 23552   ;;  %v102_v5 = vld [vmem:[%s5522_s1 + $0x8] sm:$0xff]  ;;  %vm197_vm5 = vcmask 1046528   ;;  %v272_v13 = vlaneseq }
   0xf   :  { %4551 = vmatprep.subr.mxu1 %v4912_v0  ;;  %4553 = vmatprep.mubr.msk.f32.mxu1 %vm4913_vm0, %v4912_v0  ;;  %v100_v2 = vld [vmem:[%s5521_s0] sm:$0xf]  ;;  %v4970_v7 = vld [vmem:[#allocation2 + $0xd0] sm:$0x1f]  ;;  %vm193_vm6 = vcmask 56320   ;;  %v4914_v15 = vmov 1.0  }
  0x10   :  { %4547 = vmatpush3.msk.msra.mxu0 %vm114_vm1, %v31_v1  ;;  %v55_v3 = vld [vmem:[#allocation2 + $0xc0] sm:$0x7]  ;;  %v4343_v8 = vld [vmem:[#allocation2 + $0x10] ss:$0 sm:$0xff]  ;;  %v4987_v14 = vand.u32 127, %v272_v13  ;;  %s4915_s0 = smov 123  }
  0x11   :  { %4549 = vmatmul.mubr.msk.f32.vlgmr.msra.gmra.mxu0 %vm110_vm2, %v100_v2  ;;  %4556 = vmatprep.subr.msk.mxu0 %vm294_vm3, %v55_v3  ;;  %v101_v4 = vld [vmem:[%s5522_s1] sm:$0xff]  ;;  %v103_v50 = vld [vmem:[%s5522_s1 + $0x10] sm:$0xff]  ;;  %v104_v51 = vld [vmem:[%s5522_s1 + $0x18] sm:$0xff]  ;;  %vm1182_vm9 = vcmask 1043456   ;;  %vm1301_vm10 = vcmask 1045504   ;;  %s4916_s1 = smov 122  }
  0x12   :  { %4557 = vmatpush3.msk.msra.mxu0 %vm294_vm3, %v55_v3  ;;  %4558 = vmatprep.mubr.msk.f32.mxu0 %vm281_vm4, %v101_v4  ;;  %v35_v6 = vld [vmem:[#allocation2 + $0x20] sm:$0x7f]  ;;  %vm1191_vm7 = vcmp.lt.s32.totalorder %v4987_v14, 18  ;;  %vm274_vm8 = vcmp.lt.s32.totalorder %v4987_v14, 15  ;;  %vm1298_vm11 = vcmask 48128   ;;  %vm2103_vm12 = vcmask 1041408  }
  0x13   :  { %4574 = vmatprep.subr.mxu0 %v4912_v0  ;;  %4552 = vmatpush3.msk.msra.mxu1 %vm197_vm5, %v35_v6  ;;  %v4992_v16 = vsel %vm1191_vm7, 0.5, %v4914_v15  ;;  %v4996_v18 = vld [vmem:[#allocation2 + $0xe0] ss:$0 sm:$0xff]  ;;  %v5002_v23 = vsel %vm274_vm8, 0.5, %v4914_v15  ;;  %v5006_v29 = vsel %vm274_vm8, 0.5, %v4912_v0  ;;  %vm2344_vm13 = vcmask 15360  }
  0x14   :  { %4564 = vmatprep.subr.mxu1 %v4912_v0  ;;  %vm2266_vm14 = vcmask 130048   ;;  %vm2426_vm15 = vcmask 31744   ;;  %s4918_s7 = smov 104   ;;  %vm3511_vm5 = vcmask 1040384  }
  0x15   :  { %4559 = vmatmul.mubr.msk.f32.vlgmr.msra.gmra.mxu0 %vm281_vm4, %v102_v5 }
  0x16   :  { %4575 = vmatpush3.msk.msra.mxu0 %vm114_vm1, %v4970_v7  ;;  %4561 = vmatprep.mubr.msk.f32.mxu0 %vm281_vm4, %v103_v50 }
  0x17   :  { %4584 = vmatprep.subr.mxu0 %v4912_v0 }
  0x19   :  { %4562 = vmatmul.mubr.msk.f32.gmra.mxu0 %vm281_vm4, %v104_v51  ;;  %vm2942_vm4 = vcmask 44032  }
  0x1a   :  { %4576 = vmatprep.mubr.msk.f32.mxu0 %vm4913_vm0, %v4912_v0 }
  0xd1   :  { %v184_v9 = vpop.f32.mrf.mxu0 }
  0xd2   :  { %v185_v10 = vadd.f32 %v4343_v8, %v184_v9 }
  0xd3   :  { %v4550_v11 = vpop.f32.mrf.mxu0 }
  0xd4   :  { %v188_v12 = vmax.f32 %v185_v10, 0.0 }
  0xd5   :  { %v4994_v17 = vpop.f32.mrf.mxu0 }
  0xd6   :  { %4554 = vmatmul.mubr.msk.f32.vlgmr.msra.gmra.mxu1 %vm193_vm6, %v188_v12  ;;  %v370_v62 = vadd.f32 %v4994_v17, %v4996_v18 }
  0xd7   :  { %4565 = vmatpush3.msk.msra.mxu1 %vm114_vm1, %v4970_v7  ;;  %4566 = vmatprep.mubr.msk.f32.mxu1 %vm4913_vm0, %v4912_v0  ;;  %v364_v20 = vpop.f32.mrf.mxu0 }
  0xd8   :  { %4569 = vmatprep.subr.mxu1 %v4912_v0  ;;  %v365_v22 = vadd.f32 %v4996_v18, %v364_v20 }
  0xd9   :  { %v5047_v60 = vpop.f32.mrf.mxu0 }
  0xda   :  { %4567 = vmatmul.mubr.f32.vlgmr.msra.gmra.mxu1 %v4912_v0 }
  0xdb   :  { %4570 = vmatpush3.msk.msra.mxu1 %vm114_vm1, %v4970_v7  ;;  %4571 = vmatprep.mubr.msk.f32.mxu1 %vm4913_vm0, %v4912_v0  ;;  %v374_v61 = vpop.f32.mrf.mxu0 }
  0xdc   :  { %4579 = vmatprep.subr.mxu1 %v4912_v0 }
 0x196   :  { %v4998_v19 = vpop.f32.mrf.mxu1 }
 0x198   :  { %v4555_v21 = vpop.f32.mrf.mxu1 }
 0x19a   :  { %v455_v24 = vpop.f32.mrf.mxu1 }
 0x19b   :  { %v459_v25 = vadd.f32 %v455_v24, %v365_v22 }
 0x19c   :  { %v4568_v26 = vpop.f32.mrf.mxu1 }
 0x19d   :  { %v460_v27 = vmul.f32 %v459_v25, %v5002_v23 }
 0x19f   :  { %4789 = vtanh.f32 %v460_v27 }
 0x1ac   :  { %v4790_v28 = vpop.eup %4789 }
 0x1ad   :  { %v462_v30 = vmul.f32 %v4790_v28, %v5002_v23 }
 0x1af   :  { %v463_v31 = vadd.f32 %v462_v30, %v5006_v29 }
 0x1b1   :  { %466 = vrot.lane.b32.xlu0 %v463_v31, %s4915_s0  ;;  %v464_v34 = vmul.f32 0.0, %v463_v31 }
 0x223   :  { %v467_v32 = vpop.permute.xlu0 %466 }
 0x224   :  { %v469_v33 = vmul.f32 %v467_v32, %v463_v31 }
 0x226   :  { %471 = vrot.lane.b32.xlu0 %v469_v33, %s4915_s0 }
 0x298   :  { %v472_v35 = vpop.permute.xlu0 %471 }
 0x299   :  { %v474_v36 = vadd.f32 %v472_v35, %v464_v34 }
 0x29b   :  { %4791 = vtanh.f32 %v474_v36  ;;  %v563_v52 = vrot.slane %v474_v36, 4 }
 0x2a8   :  { %v4792_v37 = vpop.eup %4791 }
 0x2a9   :  { %477 = vrot.lane.b32.xlu1 %v4792_v37, %s4915_s0 }
 0x31b   :  { %v478_v38 = vpop.permute.xlu1 %477 }
 0x31c   :  { %v5013_v39 = vmul.f32 %v478_v38, %v463_v31 }
 0x31e   :  { %4572 = vmatmul.mubr.msk.f32.vlgmr.msra.gmra.mxu1 %vm110_vm2, %v5013_v39 }
 0x31f   :  { %4580 = vmatpush3.msk.msra.mxu1 %vm114_vm1, %v4970_v7  ;;  %4581 = vmatprep.mubr.msk.f32.mxu1 %vm4913_vm0, %v4912_v0 }
 0x320   :  { %4589 = vmatprep.subr.mxu1 %v4912_v0 }
 0x3de   :  { %v550_v40 = vpop.f32.mrf.mxu1 }
 0x3df   :  { %v555_v41 = vrot.slane %v550_v40, 4 }
 0x3e0   :  { %v4573_v42 = vpop.f32.mrf.mxu1 }
 0x3e1   :  { %v557_v43 = vadd.f32 %v555_v41, %v365_v22 }
 0x3e3   :  { %v558_v44 = vmul.f32 %v557_v43, %v5002_v23  ;;  %v375_v43 = vadd.f32 %v4996_v18, %v374_v61 }
 0x3e5   :  { %4793 = vtanh.f32 %v558_v44 }
 0x3f2   :  { %v4794_v45 = vpop.eup %4793 }
 0x3f3   :  { %v560_v46 = vmul.f32 %v4794_v45, %v5002_v23 }
 0x3f5   :  { %v561_v47 = vadd.f32 %v560_v46, %v5006_v29 }
 0x3f7   :  { %567 = vrot.lane.b32.xlu1 %v561_v47, %s4915_s0  ;;  %v565_v53 = vmul.f32 %v563_v52, %v561_v47 }
 0x469   :  { %v568_v48 = vpop.permute.xlu1 %567 }
 0x46a   :  { %v570_v49 = vmul.f32 %v568_v48, %v561_v47 }
 0x46c   :  { %572 = vrot.lane.b32.xlu0 %v570_v49, %s4915_s0 }
 0x4de   :  { %v573_v54 = vpop.permute.xlu0 %572 }
 0x4df   :  { %v575_v55 = vadd.f32 %v573_v54, %v565_v53 }
 0x4e1   :  { %4795 = vtanh.f32 %v575_v55  ;;  %v662_v10 = vrot.slane %v575_v55, 4 }
 0x4ee   :  { %v4796_v56 = vpop.eup %4795 }
 0x4ef   :  { %578 = vrot.lane.b32.xlu1 %v4796_v56, %s4915_s0 }
 0x561   :  { %v579_v57 = vpop.permute.xlu1 %578 }
 0x562   :  { %v5038_v58 = vmul.f32 %v579_v57, %v561_v47 }
 0x564   :  { %v583_v59 = vrot.slane %v5038_v58, 4 }
 0x566   :  { %4577 = vmatmul.mubr.msk.f32.vlgmr.msra.gmra.mxu0 %vm110_vm2, %v583_v59 }
 0x567   :  { %4585 = vmatpush3.msk.msra.mxu0 %vm114_vm1, %v4970_v7  ;;  %4586 = vmatprep.mubr.msk.f32.mxu0 %vm4913_vm0, %v4912_v0 }
 0x568   :  { %4594 = vmatprep.subr.mxu0 %v4912_v0 }
 0x626   :  { %v652_v63 = vpop.f32.mrf.mxu0 }
 0x627   :  { %v656_v1 = vadd.f32 %v652_v63, %v370_v62 }
 0x628   :  { %v4578_v2 = vpop.f32.mrf.mxu0 }
 0x629   :  { %v657_v3 = vmul.f32 %v656_v1, %v5002_v23 }
 0x62b   :  { %4797 = vtanh.f32 %v657_v3 }
 0x638   :  { %v4798_v4 = vpop.eup %4797 }
 0x639   :  { %v659_v5 = vmul.f32 %v4798_v4, %v5002_v23 }
 0x63b   :  { %v660_v6 = vadd.f32 %v659_v5, %v5006_v29 }
 0x63d   :  { %666 = vrot.lane.b32.xlu0 %v660_v6, %s4915_s0  ;;  %v664_v11 = vmul.f32 %v662_v10, %v660_v6 }
 0x6af   :  { %v667_v8 = vpop.permute.xlu0 %666 }
 0x6b0   :  { %v669_v9 = vmul.f32 %v667_v8, %v660_v6 }
 0x6b2   :  { %671 = vrot.lane.b32.xlu1 %v669_v9, %s4915_s0 }
 0x724   :  { %v672_v12 = vpop.permute.xlu1 %671 }
 0x725   :  { %v674_v15 = vadd.f32 %v672_v12, %v664_v11 }
 0x727   :  { %4799 = vtanh.f32 %v674_v15  ;;  %v763_v34 = vrot.slane %v674_v15, 4  ;;  %v61_v15 = vld [vmem:[#allocation2 + $0xf0] sm:$0x1f] }
 0x734   :  { %v4800_v17 = vpop.eup %4799 }
 0x735   :  { %677 = vrot.lane.b32.xlu0 %v4800_v17, %s4915_s0 }
 0x7a7   :  { %v678_v20 = vpop.permute.xlu0 %677 }
 0x7a8   :  { %v5057_v21 = vmul.f32 %v678_v20, %v660_v6 }
 0x7aa   :  { %4582 = vmatmul.mubr.msk.f32.vlgmr.msra.gmra.mxu1 %vm110_vm2, %v5057_v21 }
 0x7ab   :  { %4590 = vmatpush3.msk.msra.mxu1 %vm114_vm1, %v4970_v7  ;;  %4591 = vmatprep.mubr.msk.f32.mxu1 %vm4913_vm0, %v4912_v0 }
 0x7ac   :  { %4599 = vmatprep.subr.mxu1 %v4912_v0 }
 0x86a   :  { %v750_v22 = vpop.f32.mrf.mxu1 }
 0x86b   :  { %v755_v24 = vrot.slane %v750_v22, 4  ;;  %v1183_v22 = vsel %vm1182_vm9, %v5013_v39, %v5038_v58  ;;  %v380_v39 = vadd.f32 %v5047_v60, %v4996_v18 }
 0x86c   :  { %v4583_v25 = vpop.f32.mrf.mxu1 }
 0x86d   :  { %v757_v26 = vadd.f32 %v755_v24, %v370_v62 }
 0x86f   :  { %v758_v27 = vmul.f32 %v757_v26, %v5002_v23  ;;  %v1187_v26 = vmax.f32 %v1183_v22, 0.0 }
 0x871   :  { %4801 = vtanh.f32 %v758_v27 }
 0x87e   :  { %v4802_v28 = vpop.eup %4801 }
 0x87f   :  { %v760_v30 = vmul.f32 %v4802_v28, %v5002_v23 }
 0x881   :  { %v761_v31 = vadd.f32 %v760_v30, %v5006_v29 }
 0x883   :  { %767 = vrot.lane.b32.xlu1 %v761_v31, %s4915_s0  ;;  %v765_v35 = vmul.f32 %v763_v34, %v761_v31 }
 0x8f5   :  { %v768_v32 = vpop.permute.xlu1 %767 }
 0x8f6   :  { %v770_v33 = vmul.f32 %v768_v32, %v761_v31 }
 0x8f8   :  { %772 = vrot.lane.b32.xlu0 %v770_v33, %s4915_s0 }
 0x96a   :  { %v773_v36 = vpop.permute.xlu0 %772 }
 0x96b   :  { %v775_v37 = vadd.f32 %v773_v36, %v765_v35 }
 0x96d   :  { %4803 = vtanh.f32 %v775_v37  ;;  %v862_v53 = vrot.slane %v775_v37, 4 }
 0x97a   :  { %v4804_v38 = vpop.eup %4803 }
 0x97b   :  { %778 = vrot.lane.b32.xlu1 %v4804_v38, %s4915_s0 }
 0x9ed   :  { %v779_v40 = vpop.permute.xlu1 %778 }
 0x9ee   :  { %v781_v41 = vmul.f32 %v779_v40, %v761_v31 }
 0x9f0   :  { %v783_v42 = vrot.slane %v781_v41, 4  ;;  %v1184_v27 = vsel %vm1182_vm9, %v5057_v21, %v781_v41 }
 0x9f1   :  { %v1188_v30 = vmax.f32 %v1184_v27, 0.0 }
 0x9f2   :  { %4587 = vmatmul.mubr.msk.f32.vlgmr.msra.gmra.mxu0 %vm110_vm2, %v783_v42  ;;  %v5116_v42 = vld [vmem:[#allocation2 + $0x100] sm:$0x3f] }
 0x9f3   :  { %4595 = vmatpush3.msk.msra.mxu0 %vm114_vm1, %v4970_v7  ;;  %4596 = vmatprep.mubr.msk.f32.mxu0 %vm4913_vm0, %v4912_v0 }
 0x9f4   :  { %4604 = vmatprep.subr.msk.mxu0 %vm114_vm1, %v61_v15 }
 0xab2   :  { %v852_v44 = vpop.f32.mrf.mxu0 }
 0xab3   :  { %v856_v45 = vadd.f32 %v852_v44, %v375_v43 }
 0xab4   :  { %v4588_v46 = vpop.f32.mrf.mxu0 }
 0xab5   :  { %v857_v47 = vmul.f32 %v856_v45, %v5002_v23 }
 0xab7   :  { %4805 = vtanh.f32 %v857_v47 }
 0xac4   :  { %v4806_v48 = vpop.eup %4805 }
 0xac5   :  { %v859_v49 = vmul.f32 %v4806_v48, %v5002_v23 }
 0xac7   :  { %v860_v50 = vadd.f32 %v859_v49, %v5006_v29  ;;  %v5139_v49 = vld [vmem:[#allocation2 + $0x110] ss:$0 sm:$0xff] }
 0xac9   :  { %866 = vrot.lane.b32.xlu0 %v860_v50, %s4915_s0  ;;  %v864_v54 = vmul.f32 %v862_v53, %v860_v50 }
 0xb3b   :  { %v867_v51 = vpop.permute.xlu0 %866 }
 0xb3c   :  { %v869_v52 = vmul.f32 %v867_v51, %v860_v50 }
 0xb3e   :  { %871 = vrot.lane.b32.xlu1 %v869_v52, %s4915_s0 }
 0xbb0   :  { %v872_v55 = vpop.permute.xlu1 %871 }
 0xbb1   :  { %v874_v56 = vadd.f32 %v872_v55, %v864_v54 }
 0xbb3   :  { %4807 = vtanh.f32 %v874_v56  ;;  %v963_v9 = vrot.slane %v874_v56, 4 }
 0xbc0   :  { %v4808_v57 = vpop.eup %4807 }
 0xbc1   :  { %877 = vrot.lane.b32.xlu0 %v4808_v57, %s4915_s0  ;;  %v5146_v57 = vsel %vm1191_vm7, 0.5, %v4912_v0 }
 0xc33   :  { %v878_v59 = vpop.permute.xlu0 %877 }
 0xc34   :  { %v880_v61 = vmul.f32 %v878_v59, %v860_v50 }
 0xc36   :  { %4592 = vmatmul.mubr.msk.f32.vlgmr.msra.gmra.mxu1 %vm110_vm2, %v880_v61 }
 0xc37   :  { %4600 = vmatpush3.msk.msra.mxu1 %vm114_vm1, %v4970_v7  ;;  %4601 = vmatprep.mubr.msk.f32.mxu1 %vm4913_vm0, %v4912_v0 }
 0xc38   :  { %4612 = vmatprep.subr.mxu1 %v4912_v0 }
 0xcf6   :  { %v950_v62 = vpop.f32.mrf.mxu1 }
 0xcf7   :  { %v955_v63 = vrot.slane %v950_v62, 4 }
 0xcf8   :  { %v4593_v1 = vpop.f32.mrf.mxu1 }
 0xcf9   :  { %v957_v2 = vadd.f32 %v955_v63, %v375_v43 }
 0xcfb   :  { %v958_v3 = vmul.f32 %v957_v2, %v5002_v23 }
 0xcfd   :  { %4809 = vtanh.f32 %v958_v3 }
 0xd0a   :  { %v4810_v4 = vpop.eup %4809 }
 0xd0b   :  { %v960_v5 = vmul.f32 %v4810_v4, %v5002_v23 }
 0xd0d   :  { %v961_v6 = vadd.f32 %v960_v5, %v5006_v29 }
 0xd0f   :  { %967 = vrot.lane.b32.xlu1 %v961_v6, %s4915_s0  ;;  %v965_v10 = vmul.f32 %v963_v9, %v961_v6 }
 0xd81   :  { %v968_v7 = vpop.permute.xlu1 %967 }
 0xd82   :  { %v970_v8 = vmul.f32 %v968_v7, %v961_v6 }
 0xd84   :  { %972 = vrot.lane.b32.xlu0 %v970_v8, %s4915_s0 }
 0xdf6   :  { %v973_v11 = vpop.permute.xlu0 %972 }
 0xdf7   :  { %v975_v12 = vadd.f32 %v973_v11, %v965_v10 }
 0xdf9   :  { %4811 = vtanh.f32 %v975_v12  ;;  %v1062_v40 = vrot.slane %v975_v12, 4 }
 0xe06   :  { %v4812_v17 = vpop.eup %4811 }
 0xe07   :  { %978 = vrot.lane.b32.xlu1 %v4812_v17, %s4915_s0 }
 0xe79   :  { %v979_v20 = vpop.permute.xlu1 %978 }
 0xe7a   :  { %v981_v24 = vmul.f32 %v979_v20, %v961_v6 }
 0xe7c   :  { %v983_v25 = vrot.slane %v981_v24, 4  ;;  %v1185_v28 = vsel %vm1182_vm9, %v880_v61, %v981_v24 }
 0xe7d   :  { %v1189_v31 = vmax.f32 %v1185_v28, 0.0 }
 0xe7e   :  { %4597 = vmatmul.mubr.msk.f32.vlgmr.msra.gmra.mxu0 %vm110_vm2, %v983_v25 }
 0xe7f   :  { %4606 = vmatprep.mubr.msk.f32.mxu0 %vm110_vm2, %v1187_v26  ;;  %4605 = vmatpush3.msk.msra.mxu0 %vm114_vm1, %v61_v15  ;;  %vm2746_vm1 = vcmask 195584  }
 0xe80   :  { %4622 = vmatprep.subr.mxu0 %v4912_v0 }
 0xe82   :  { %4607 = vmatmul.mubr.msk.f32.vlgmr.msra.gmra.mxu0 %vm110_vm2, %v1188_v30 }
 0xe83   :  { %4609 = vmatprep.mubr.msk.f32.mxu0 %vm110_vm2, %v1189_v31  ;;  %4623 = vmatpush3.msk.msra.mxu0 %vm1301_vm10, %v5116_v42 }
 0xe84   :  { %4632 = vmatprep.subr.mxu0 %v4912_v0 }
 0xf3e   :  { %v1052_v58 = vpop.f32.mrf.mxu0 }
 0xf3f   :  { %v1056_v21 = vadd.f32 %v1052_v58, %v380_v39 }
 0xf40   :  { %v4598_v32 = vpop.f32.mrf.mxu0 }
 0xf41   :  { %v1057_v33 = vmul.f32 %v1056_v21, %v5002_v23 }
 0xf42   :  { %v5137_v46 = vpop.f32.mrf.mxu0 }
 0xf43   :  { %4813 = vtanh.f32 %v1057_v33 }
 0xf44   :  { %v1279_v47 = vpop.f32.mrf.mxu0 }
 0xf45   :  { %v1280_v51 = vadd.f32 %v5139_v49, %v1279_v47  ;;  %v1285_v47 = vadd.f32 %v5137_v46, %v5139_v49 }
 0xf50   :  { %v4814_v34 = vpop.eup %4813 }
 0xf51   :  { %v1059_v35 = vmul.f32 %v4814_v34, %v5002_v23 }
 0xf53   :  { %v1060_v36 = vadd.f32 %v1059_v35, %v5006_v29 }
 0xf55   :  { %1066 = vrot.lane.b32.xlu0 %v1060_v36, %s4915_s0  ;;  %v1064_v41 = vmul.f32 %v1062_v40, %v1060_v36 }
 0xfc7   :  { %v1067_v37 = vpop.permute.xlu0 %1066 }
 0xfc8   :  { %v1069_v38 = vmul.f32 %v1067_v37, %v1060_v36 }
 0xfca   :  { %1071 = vrot.lane.b32.xlu1 %v1069_v38, %s4915_s0 }
0x103c   :  { %v1072_v18 = vpop.permute.xlu1 %1071 }
0x103d   :  { %v1074_v60 = vadd.f32 %v1072_v18, %v1064_v41 }
0x103f   :  { %4815 = vtanh.f32 %v1074_v60  ;;  %v1163_v12 = vrot.slane %v1074_v60, 4 }
0x104c   :  { %v4816_v43 = vpop.eup %4815 }
0x104d   :  { %1077 = vrot.lane.b32.xlu0 %v4816_v43, %s4915_s0 }
0x10bf   :  { %v1078_v44 = vpop.permute.xlu0 %1077 }
0x10c0   :  { %v5122_v45 = vmul.f32 %v1078_v44, %v1060_v36 }
0x10c2   :  { %4602 = vmatmul.mubr.msk.f32.vlgmr.msra.gmra.mxu1 %vm110_vm2, %v5122_v45 }
0x10c3   :  { %4613 = vmatpush3.msk.msra.mxu1 %vm1301_vm10, %v5116_v42  ;;  %4614 = vmatprep.mubr.msk.f32.mxu1 %vm4913_vm0, %v4912_v0 }
0x10c4   :  { %4617 = vmatprep.subr.mxu1 %v4912_v0 }
0x10c6   :  { %4615 = vmatmul.mubr.f32.vlgmr.msra.gmra.mxu1 %v4912_v0 }
0x10c7   :  { %4618 = vmatpush3.msk.msra.mxu1 %vm1301_vm10, %v5116_v42  ;;  %4619 = vmatprep.mubr.msk.f32.mxu1 %vm4913_vm0, %v4912_v0 }
0x10c8   :  { %4627 = vmatprep.subr.mxu1 %v4912_v0 }
0x1182   :  { %v1150_v48 = vpop.f32.mrf.mxu1 }
0x1183   :  { %v1155_v62 = vrot.slane %v1150_v48, 4 }
0x1184   :  { %v4603_v50 = vpop.f32.mrf.mxu1 }
0x1185   :  { %v1157_v63 = vadd.f32 %v1155_v62, %v380_v39 }
0x1186   :  { %v1371_v52 = vpop.f32.mrf.mxu1 }
0x1187   :  { %v1375_v53 = vadd.f32 %v1371_v52, %v1280_v51  ;;  %v1158_v1 = vmul.f32 %v1157_v63, %v5002_v23 }
0x1188   :  { %v4616_v54 = vpop.f32.mrf.mxu1 }
0x1189   :  { %v1376_v55 = vmul.f32 %v1375_v53, %v4992_v16 }
0x118b   :  { %4817 = vtanh.f32 %v1376_v55 }
0x118c   :  { %4819 = vtanh.f32 %v1158_v1 }
0x1198   :  { %v4818_v56 = vpop.eup %4817 }
0x1199   :  { %v1378_v59 = vmul.f32 %v4818_v56, %v4992_v16  ;;  %v4820_v2 = vpop.eup %4819 }
0x119a   :  { %v1160_v5 = vmul.f32 %v4820_v2, %v5002_v23 }
0x119b   :  { %v1379_v61 = vadd.f32 %v1378_v59, %v5146_v57 }
0x119c   :  { %v1161_v14 = vadd.f32 %v1160_v5, %v5006_v29 }
0x119d   :  { %1382 = vrot.lane.b32.xlu1 %v1379_v61, %s4916_s1  ;;  %v1380_v6 = vmul.f32 0.0, %v1379_v61 }
0x119e   :  { %v1165_v15 = vmul.f32 %v1163_v12, %v1161_v14 }
0x120f   :  { %v1383_v3 = vpop.permute.xlu1 %1382 }
0x1210   :  { %v1385_v4 = vmul.f32 %v1383_v3, %v1379_v61 }
0x1212   :  { %1387 = vrot.lane.b32.xlu0 %v1385_v4, %s4916_s1 }
0x1216   :  { %1167 = vrot.lane.b32.xlu0 %v1161_v14, %s4915_s0 }
0x1284   :  { %v1388_v7 = vpop.permute.xlu0 %1387 }
0x1285   :  { %v1390_v8 = vadd.f32 %v1388_v7, %v1380_v6 }
0x1287   :  { %4821 = vtanh.f32 %v1390_v8  ;;  %v1479_v36 = vrot.slane %v1390_v8, 4 }
0x1288   :  { %v1168_v9 = vpop.permute.xlu0 %1167 }
0x1289   :  { %v1170_v10 = vmul.f32 %v1168_v9, %v1161_v14 }
0x128b   :  { %1172 = vrot.lane.b32.xlu0 %v1170_v10, %s4915_s0 }
0x1294   :  { %v4822_v11 = vpop.eup %4821 }
0x1295   :  { %1393 = vrot.lane.b32.xlu1 %v4822_v11, %s4916_s1 }
0x12fd   :  { %v1173_v23 = vpop.permute.xlu0 %1172 }
0x12fe   :  { %v1175_v17 = vadd.f32 %v1173_v23, %v1165_v15 }
0x1300   :  { %4823 = vtanh.f32 %v1175_v17 }
0x1307   :  { %v1394_v20 = vpop.permute.xlu1 %1393 }
0x1308   :  { %v1396_v29 = vmul.f32 %v1394_v20, %v1379_v61 }
0x130a   :  { %4620 = vmatmul.mubr.msk.f32.vlgmr.msra.gmra.mxu1 %vm1298_vm11, %v1396_v29 }
0x130b   :  { %4628 = vmatpush3.msk.msra.mxu1 %vm1301_vm10, %v5116_v42  ;;  %4629 = vmatprep.mubr.msk.f32.mxu1 %vm4913_vm0, %v4912_v0 }
0x130c   :  { %4637 = vmatprep.subr.mxu1 %v4912_v0 }
0x130d   :  { %v4824_v22 = vpop.eup %4823 }
0x130e   :  { %1178 = vrot.lane.b32.xlu0 %v4824_v22, %s4915_s0 }
0x1380   :  { %v1179_v24 = vpop.permute.xlu0 %1178 }
0x1381   :  { %v1181_v25 = vmul.f32 %v1179_v24, %v1161_v14 }
0x1383   :  { %v1186_v26 = vsel %vm1182_vm9, %v5122_v45, %v1181_v25 }
0x1384   :  { %v1190_v27 = vmax.f32 %v1186_v26, 0.0 }
0x1386   :  { %4610 = vmatmul.mubr.msk.f32.gmra.mxu0 %vm110_vm2, %v1190_v27  ;;  %vm2668_vm2 = vcmask 64512  }
0x1387   :  { %4624 = vmatprep.mubr.msk.f32.mxu0 %vm4913_vm0, %v4912_v0 }
0x13ca   :  { %v1466_v28 = vpop.f32.mrf.mxu1 }
0x13cb   :  { %v1471_v30 = vrot.slane %v1466_v28, 4 }
0x13cc   :  { %v4621_v31 = vpop.f32.mrf.mxu1 }
0x13cd   :  { %v1473_v39 = vadd.f32 %v1471_v30, %v1280_v51 }
0x13cf   :  { %v1474_v58 = vmul.f32 %v1473_v39, %v4992_v16 }
0x13d1   :  { %4825 = vtanh.f32 %v1474_v58 }
0x13de   :  { %v4826_v21 = vpop.eup %4825 }
0x13df   :  { %v1476_v32 = vmul.f32 %v4826_v21, %v4992_v16 }
0x13e1   :  { %v1477_v33 = vadd.f32 %v1476_v32, %v5146_v57 }
0x13e3   :  { %1483 = vrot.lane.b32.xlu1 %v1477_v33, %s4916_s1  ;;  %v1481_v37 = vmul.f32 %v1479_v36, %v1477_v33 }
0x1446   :  { %v5182_v44 = vpop.f32.mrf.mxu0 }
0x1448   :  { %v1289_v45 = vpop.f32.mrf.mxu0 }
0x1449   :  { %v1290_v26 = vadd.f32 %v5139_v49, %v1289_v45 }
0x1455   :  { %v1484_v34 = vpop.permute.xlu1 %1483 }
0x1456   :  { %v1486_v35 = vmul.f32 %v1484_v34, %v1477_v33 }
0x1458   :  { %1488 = vrot.lane.b32.xlu1 %v1486_v35, %s4916_s1 }
0x14ca   :  { %v1489_v38 = vpop.permute.xlu1 %1488 }
0x14cb   :  { %v1491_v40 = vadd.f32 %v1489_v38, %v1481_v37 }
0x14cd   :  { %4827 = vtanh.f32 %v1491_v40  ;;  %v1578_v61 = vrot.slane %v1491_v40, 4 }
0x14da   :  { %v4828_v41 = vpop.eup %4827 }
0x14db   :  { %1494 = vrot.lane.b32.xlu1 %v4828_v41, %s4916_s1 }
0x154d   :  { %v1495_v18 = vpop.permute.xlu1 %1494 }
0x154e   :  { %v1497_v60 = vmul.f32 %v1495_v18, %v1477_v33 }
0x1550   :  { %v1499_v43 = vrot.slane %v1497_v60, 4 }
0x1552   :  { %4625 = vmatmul.mubr.msk.f32.vlgmr.msra.gmra.mxu0 %vm1298_vm11, %v1499_v43 }
0x1553   :  { %4633 = vmatpush3.msk.msra.mxu0 %vm1301_vm10, %v5116_v42  ;;  %4634 = vmatprep.mubr.msk.f32.mxu0 %vm4913_vm0, %v4912_v0 }
0x1554   :  { %4642 = vmatprep.subr.mxu0 %v4912_v0 }
0x1612   :  { %v1568_v48 = vpop.f32.mrf.mxu0 }
0x1613   :  { %v1572_v50 = vadd.f32 %v1568_v48, %v1285_v47 }
0x1614   :  { %v4626_v51 = vpop.f32.mrf.mxu0 }
0x1615   :  { %v1573_v52 = vmul.f32 %v1572_v50, %v4992_v16 }
0x1617   :  { %4829 = vtanh.f32 %v1573_v52 }
0x1624   :  { %v4830_v53 = vpop.eup %4829 }
0x1625   :  { %v1575_v54 = vmul.f32 %v4830_v53, %v4992_v16 }
0x1627   :  { %v1576_v55 = vadd.f32 %v1575_v54, %v5146_v57 }
0x1629   :  { %1582 = vrot.lane.b32.xlu0 %v1576_v55, %s4916_s1  ;;  %v1580_v62 = vmul.f32 %v1578_v61, %v1576_v55 }
0x169b   :  { %v1583_v56 = vpop.permute.xlu0 %1582 }
0x169c   :  { %v1585_v59 = vmul.f32 %v1583_v56, %v1576_v55 }
0x169e   :  { %1587 = vrot.lane.b32.xlu1 %v1585_v59, %s4916_s1 }
0x1710   :  { %v1588_v46 = vpop.permute.xlu1 %1587 }
0x1711   :  { %v1590_v63 = vadd.f32 %v1588_v46, %v1580_v62 }
0x1713   :  { %4831 = vtanh.f32 %v1590_v63  ;;  %v1679_v15 = vrot.slane %v1590_v63, 4  ;;  %v1295_v63 = vadd.f32 %v5182_v44, %v5139_v49 }
0x1720   :  { %v4832_v1 = vpop.eup %4831 }
0x1721   :  { %1593 = vrot.lane.b32.xlu0 %v4832_v1, %s4916_s1 }
0x1793   :  { %v1594_v2 = vpop.permute.xlu0 %1593 }
0x1794   :  { %v1596_v3 = vmul.f32 %v1594_v2, %v1576_v55 }
0x1796   :  { %4630 = vmatmul.mubr.msk.f32.vlgmr.msra.gmra.mxu1 %vm1298_vm11, %v1596_v3 }
0x1797   :  { %4638 = vmatpush3.msk.msra.mxu1 %vm1301_vm10, %v5116_v42  ;;  %4639 = vmatprep.mubr.msk.f32.mxu1 %vm4913_vm0, %v4912_v0 }
0x1798   :  { %4647 = vmatprep.subr.mxu1 %v4912_v0 }
0x1856   :  { %v1666_v4 = vpop.f32.mrf.mxu1 }
0x1857   :  { %v1671_v5 = vrot.slane %v1666_v4, 4 }
0x1858   :  { %v4631_v14 = vpop.f32.mrf.mxu1 }
0x1859   :  { %v1673_v6 = vadd.f32 %v1671_v5, %v1285_v47 }
0x185b   :  { %v1674_v7 = vmul.f32 %v1673_v6, %v4992_v16 }
0x185d   :  { %4833 = vtanh.f32 %v1674_v7 }
0x186a   :  { %v4834_v8 = vpop.eup %4833 }
0x186b   :  { %v1676_v9 = vmul.f32 %v4834_v8, %v4992_v16 }
0x186d   :  { %v1677_v10 = vadd.f32 %v1676_v9, %v5146_v57 }
0x186f   :  { %1683 = vrot.lane.b32.xlu1 %v1677_v10, %s4916_s1  ;;  %v1681_v23 = vmul.f32 %v1679_v15, %v1677_v10 }
0x18e1   :  { %v1684_v11 = vpop.permute.xlu1 %1683 }
0x18e2   :  { %v1686_v12 = vmul.f32 %v1684_v11, %v1677_v10 }
0x18e4   :  { %1688 = vrot.lane.b32.xlu0 %v1686_v12, %s4916_s1  ;;  %v4346_v12 = vld [vmem:[#allocation2 + $0x30] ss:$0 sm:$0xff] }
0x1956   :  { %v1689_v17 = vpop.permute.xlu0 %1688 }
0x1957   :  { %v1691_v20 = vadd.f32 %v1689_v17, %v1681_v23  ;;  %v268_v23 = vadd.f32 %v4346_v12, %v4998_v19 }
0x1959   :  { %4835 = vtanh.f32 %v1691_v20  ;;  %v1778_v34 = vrot.slane %v1691_v20, 4  ;;  %v67_v20 = vld [vmem:[#allocation2 + $0x120] sm:$0xff] }
0x1966   :  { %v4836_v29 = vpop.eup %4835 }
0x1967   :  { %1694 = vrot.lane.b32.xlu1 %v4836_v29, %s4916_s1  ;;  %v271_v29 = vmax.f32 %v268_v23, 0.0 }
0x19d9   :  { %v1695_v22 = vpop.permute.xlu1 %1694 }
0x19da   :  { %v1697_v24 = vmul.f32 %v1695_v22, %v1677_v10 }
0x19dc   :  { %v1699_v25 = vrot.slane %v1697_v24, 4 }
0x19de   :  { %4635 = vmatmul.mubr.msk.f32.vlgmr.msra.gmra.mxu0 %vm1298_vm11, %v1699_v25 }
0x19df   :  { %4643 = vmatpush3.msk.msra.mxu0 %vm1301_vm10, %v5116_v42  ;;  %4644 = vmatprep.mubr.msk.f32.mxu0 %vm4913_vm0, %v4912_v0 }
0x19e0   :  { %4652 = vmatprep.subr.mxu0 %v4912_v0 }
0x1a9e   :  { %v1768_v27 = vpop.f32.mrf.mxu0 }
0x1a9f   :  { %v1772_v28 = vadd.f32 %v1768_v27, %v1290_v26 }
0x1aa0   :  { %v4636_v30 = vpop.f32.mrf.mxu0 }
0x1aa1   :  { %v1773_v31 = vmul.f32 %v1772_v28, %v4992_v16 }
0x1aa3   :  { %4837 = vtanh.f32 %v1773_v31 }
0x1ab0   :  { %v4838_v39 = vpop.eup %4837 }
0x1ab1   :  { %v1775_v58 = vmul.f32 %v4838_v39, %v4992_v16 }
0x1ab3   :  { %v1776_v21 = vadd.f32 %v1775_v58, %v5146_v57 }
0x1ab5   :  { %1782 = vrot.lane.b32.xlu0 %v1776_v21, %s4916_s1  ;;  %v1780_v35 = vmul.f32 %v1778_v34, %v1776_v21 }
0x1b27   :  { %v1783_v32 = vpop.permute.xlu0 %1782 }
0x1b28   :  { %v1785_v33 = vmul.f32 %v1783_v32, %v1776_v21 }
0x1b2a   :  { %1787 = vrot.lane.b32.xlu1 %v1785_v33, %s4916_s1 }
0x1b9c   :  { %v1788_v36 = vpop.permute.xlu1 %1787 }
0x1b9d   :  { %v1790_v37 = vadd.f32 %v1788_v36, %v1780_v35  ;;  %v2104_v36 = vrot.slane %v67_v20, 6 }
0x1b9f   :  { %4839 = vtanh.f32 %v1790_v37  ;;  %v1879_v53 = vrot.slane %v1790_v37, 4  ;;  %v68_v37 = vld [vmem:[#allocation2 + $0x128] sm:$0xf] }
0x1bac   :  { %v4840_v38 = vpop.eup %4839 }
0x1bad   :  { %1793 = vrot.lane.b32.xlu0 %v4840_v38, %s4916_s1  ;;  %v2105_v38 = vrot.slane %v68_v37, 6 }
0x1c1f   :  { %v1794_v40 = vpop.permute.xlu0 %1793 }
0x1c20   :  { %v1796_v41 = vmul.f32 %v1794_v40, %v1776_v21  ;;  %v2106_v40 = vsel %vm2103_vm12, %v2104_v36, %v2105_v38  ;;  %v5317_v38 = vld [vmem:[#allocation2 + $0x190] sm:$0x3f] }
0x1c22   :  { %4640 = vmatmul.mubr.msk.f32.vlgmr.msra.gmra.mxu1 %vm1298_vm11, %v1796_v41  ;;  %v39_v41 = vld [vmem:[#allocation2 + $0x40] sm:$0x3] }
0x1c23   :  { %4648 = vmatpush3.msk.msra.mxu1 %vm1301_vm10, %v5116_v42  ;;  %4649 = vmatprep.mubr.msk.f32.mxu1 %vm4913_vm0, %v4912_v0 }
0x1c24   :  { %4657 = vmatprep.subr.mxu1 %v4912_v0 }
0x1ce2   :  { %v1866_v18 = vpop.f32.mrf.mxu1 }
0x1ce3   :  { %v1871_v60 = vrot.slane %v1866_v18, 4  ;;  %v105_v18 = vld [vmem:[%s5523_s2] sm:$0xf]  ;;  %s4917_s2 = smov 24  }
0x1ce4   :  { %v4641_v43 = vpop.f32.mrf.mxu1 }
0x1ce5   :  { %v1873_v45 = vadd.f32 %v1871_v60, %v1290_v26 }
0x1ce7   :  { %v1874_v47 = vmul.f32 %v1873_v45, %v4992_v16 }
0x1ce9   :  { %4841 = vtanh.f32 %v1874_v47 }
0x1cf6   :  { %v4842_v48 = vpop.eup %4841 }
0x1cf7   :  { %v1876_v50 = vmul.f32 %v4842_v48, %v4992_v16 }
0x1cf9   :  { %v1877_v51 = vadd.f32 %v1876_v50, %v5146_v57  ;;  %v73_v50 = vld [vmem:[#allocation2 + $0x148] sm:$0xff] }
0x1cfb   :  { %1883 = vrot.lane.b32.xlu1 %v1877_v51, %s4916_s1  ;;  %v1881_v54 = vmul.f32 %v1879_v53, %v1877_v51 }
0x1d6d   :  { %v1884_v42 = vpop.permute.xlu1 %1883 }
0x1d6e   :  { %v1886_v52 = vmul.f32 %v1884_v42, %v1877_v51 }
0x1d70   :  { %1888 = vrot.lane.b32.xlu0 %v1886_v52, %s4916_s1  ;;  %v72_v52 = vld [vmem:[#allocation2 + $0x140] sm:$0xff] }
0x1de2   :  { %v1889_v55 = vpop.permute.xlu0 %1888 }
0x1de3   :  { %v1891_v56 = vadd.f32 %v1889_v55, %v1881_v54  ;;  %v85_v54 = vld [vmem:[#allocation2 + $0x1a0] sm:$0x3f]  ;;  %v4395_v55 = vld [vmem:[#allocation2 + $0x130] ss:$0 sm:$0xff] }
0x1de5   :  { %4843 = vtanh.f32 %v1891_v56  ;;  %v1978_v9 = vrot.slane %v1891_v56, 4 }
0x1df2   :  { %v4844_v59 = vpop.eup %4843 }
0x1df3   :  { %1894 = vrot.lane.b32.xlu1 %v4844_v59, %s4916_s1  ;;  %v4398_v59 = vld [vmem:[#allocation2 + $0x50] ss:$0 sm:$0xff] }
0x1e65   :  { %v1895_v61 = vpop.permute.xlu1 %1894 }
0x1e66   :  { %v1897_v62 = vmul.f32 %v1895_v61, %v1877_v51  ;;  %v47_v51 = vld [vmem:[#allocation2 + $0x80] sm:$0x3] }
0x1e68   :  { %v1899_v46 = vrot.slane %v1897_v62, 4 }
0x1e6a   :  { %4645 = vmatmul.mubr.msk.f32.vlgmr.msra.gmra.mxu0 %vm1298_vm11, %v1899_v46 }
0x1e6b   :  { %4654 = vmatprep.mubr.msk.f32.mxu0 %vm4913_vm0, %v4912_v0  ;;  %4653 = vmatpush3.msk.msra.mxu0 %vm1301_vm10, %v2106_v40 }
0x1e6c   :  { %4662 = vmatprep.subr.mxu0 %v4912_v0 }
0x1f2a   :  { %v1968_v1 = vpop.f32.mrf.mxu0 }
0x1f2b   :  { %v1972_v2 = vadd.f32 %v1968_v1, %v1295_v63 }
0x1f2c   :  { %v4646_v3 = vpop.f32.mrf.mxu0 }
0x1f2d   :  { %v1973_v4 = vmul.f32 %v1972_v2, %v4992_v16  ;;  %v43_v2 = vld [vmem:[#allocation2 + $0x60] sm:$0xf] }
0x1f2f   :  { %4845 = vtanh.f32 %v1973_v4  ;;  %v4404_v4 = vld [vmem:[#allocation2 + $0x90] ss:$0 sm:$0xff] }
0x1f3c   :  { %v4846_v5 = vpop.eup %4845 }
0x1f3d   :  { %v1975_v14 = vmul.f32 %v4846_v5, %v4992_v16 }
0x1f3f   :  { %v1976_v6 = vadd.f32 %v1975_v14, %v5146_v57 }
0x1f41   :  { %1982 = vrot.lane.b32.xlu0 %v1976_v6, %s4916_s1  ;;  %v1980_v10 = vmul.f32 %v1978_v9, %v1976_v6  ;;  %v77_v9 = vld [vmem:[#allocation2 + $0x160] sm:$0xff] }
0x1fb3   :  { %v1983_v7 = vpop.permute.xlu0 %1982 }
0x1fb4   :  { %v1985_v8 = vmul.f32 %v1983_v7, %v1976_v6 }
0x1fb6   :  { %1987 = vrot.lane.b32.xlu1 %v1985_v8, %s4916_s1  ;;  %v51_v8 = vld [vmem:[#allocation2 + $0xa0] sm:$0xf] }
0x2028   :  { %v1988_v49 = vpop.permute.xlu1 %1987 }
0x2029   :  { %v1990_v44 = vadd.f32 %v1988_v49, %v1980_v10  ;;  %v79_v10 = vld [vmem:[#allocation2 + $0x170] sm:$0x3f] }
0x202b   :  { %4847 = vtanh.f32 %v1990_v44  ;;  %v2079_v32 = vrot.slane %v1990_v44, 4 }
0x2038   :  { %v4848_v11 = vpop.eup %4847 }
0x2039   :  { %1993 = vrot.lane.b32.xlu0 %v4848_v11, %s4916_s1  ;;  %v4396_v11 = vld [vmem:[#allocation2 + $0x150] ss:$0 sm:$0xff] }
0x20ab   :  { %v1994_v15 = vpop.permute.xlu0 %1993 }
0x20ac   :  { %v1996_v17 = vmul.f32 %v1994_v15, %v1976_v6 }
0x20ae   :  { %4650 = vmatmul.mubr.msk.f32.vlgmr.msra.gmra.mxu1 %vm1298_vm11, %v1996_v17  ;;  %v4401_v17 = vld [vmem:[#allocation2 + $0x70] ss:$0 sm:$0xff] }
0x20af   :  { %4658 = vmatpush3.msk.msra.mxu1 %vm1301_vm10, %v67_v20  ;;  %4659 = vmatprep.mubr.msk.f32.mxu1 %vm4913_vm0, %v4912_v0 }
0x20b0   :  { %4669 = vmatprep.subr.mxu1 %v4912_v0 }
0x20b2   :  { %4660 = vmatmul.mubr.msk.f32.vlgmr.msra.gmra.mxu1 %vm1298_vm11, %v271_v29 }
0x20b3   :  { %4671 = vmatprep.mubr.msk.f32.mxu1 %vm4913_vm0, %v4912_v0  ;;  %4670 = vmatpush3.msk.msra.mxu1 %vm2103_vm12, %v39_v41 }
0x20b4   :  { %4679 = vmatprep.subr.mxu1 %v4912_v0 }
0x20b6   :  { %4672 = vmatmul.mubr.msk.f32.vlgmr.msra.gmra.mxu1 %vm2344_vm13, %v105_v18 }
0x20b7   :  { %4681 = vmatprep.mubr.msk.f32.mxu1 %vm4913_vm0, %v4912_v0  ;;  %4680 = vmatpush3.msk.msra.mxu1 %vm2103_vm12, %v47_v51 }
0x20b8   :  { %4689 = vmatprep.subr.mxu1 %v4912_v0 }
0x20ba   :  { %4682 = vmatmul.mubr.msk.f32.vlgmr.msra.gmra.mxu1 %vm2344_vm13, %v105_v18 }
0x20bb   :  { %4691 = vmatprep.mubr.msk.f32.mxu1 %vm4913_vm0, %v4912_v0  ;;  %4690 = vmatpush3.msra.mxu1 %v77_v9 }
0x20bc   :  { %4699 = vmatprep.subr.mxu1 %v4912_v0 }
0x216e   :  { %v2066_v22 = vpop.f32.mrf.mxu1 }
0x216f   :  { %v2071_v24 = vrot.slane %v2066_v22, 4 }
0x2170   :  { %v4651_v19 = vpop.f32.mrf.mxu1 }
0x2171   :  { %v2073_v25 = vadd.f32 %v2071_v24, %v1295_v63 }
0x2172   :  { %v2252_v26 = vpop.f32.mrf.mxu1 }
0x2173   :  { %v2074_v27 = vmul.f32 %v2073_v25, %v4992_v16 }
0x2174   :  { %v4661_v28 = vpop.f32.mrf.mxu1 }
0x2175   :  { %4849 = vtanh.f32 %v2074_v27  ;;  %v5305_v27 = vshrl.u32 %v272_v13, 7  ;;  %v4410_v28 = vld [vmem:[#allocation2 + $0x180] ss:$0 sm:$0xff] }
0x2176   :  { %v2417_v42 = vpop.f32.mrf.mxu1 }
0x2177   :  { %v2418_v63 = vadd.f32 %v4398_v59, %v2417_v42  ;;  %v3025_v59 = vsub.s32 1, %v5305_v27 }
0x2178   :  { %v4673_v53 = vpop.f32.mrf.mxu1 }
0x2179   :  { %v2421_v3 = vmax.f32 %v2418_v63, 0.0 }
0x217a   :  { %v2577_v5 = vpop.f32.mrf.mxu1 }
0x217b   :  { %v2578_v14 = vadd.f32 %v4404_v4, %v2577_v5 }
0x217c   :  { %v4683_v6 = vpop.f32.mrf.mxu1 }
0x217d   :  { %v2581_v7 = vmax.f32 %v2578_v14, 0.0 }
0x2182   :  { %v4850_v30 = vpop.eup %4849 }
0x2183   :  { %v2076_v31 = vmul.f32 %v4850_v30, %v4992_v16  ;;  %v2826_v30 = vsub.s32 0, %v5305_v27 }
0x2185   :  { %v2077_v39 = vadd.f32 %v2076_v31, %v5146_v57 }
0x2187   :  { %2083 = vrot.lane.b32.xlu1 %v2077_v39, %s4916_s1  ;;  %v2081_v33 = vmul.f32 %v2079_v32, %v2077_v39 }
0x21f9   :  { %v2084_v58 = vpop.permute.xlu1 %2083 }
0x21fa   :  { %v2086_v21 = vmul.f32 %v2084_v58, %v2077_v39 }
0x21fc   :  { %2088 = vrot.lane.b32.xlu0 %v2086_v21, %s4916_s1 }
0x2200   :  { %2743 = vrot.lane.b32.xlu0 %v85_v54, %s4917_s2 }
0x226e   :  { %v2089_v34 = vpop.permute.xlu0 %2088 }
0x226f   :  { %v2091_v35 = vadd.f32 %v2089_v34, %v2081_v33 }
0x2271   :  { %4851 = vtanh.f32 %v2091_v35 }
0x2272   :  { %v2744_v49 = vpop.permute.xlu0 %2743 }
0x2273   :  { %v5286_v44 = vsel %vm2746_vm1, %v79_v10, %v2744_v49 }
0x227e   :  { %v4852_v60 = vpop.eup %4851 }
0x227f   :  { %2094 = vrot.lane.b32.xlu1 %v4852_v60, %s4916_s1 }
0x22f1   :  { %v2095_v43 = vpop.permute.xlu1 %2094 }
0x22f2   :  { %v2097_v45 = vmul.f32 %v2095_v43, %v2077_v39 }
0x22f4   :  { %v2098_v47 = vmax.f32 %v2097_v45, 0.0 }
0x22f6   :  { %v2100_v48 = vrot.slane %v2098_v47, 4  ;;  %v4416_v47 = vld [vmem:[#allocation2 + $0x1b0] ss:$0 sm:$0xff] }
0x22f8   :  { %4655 = vmatmul.mubr.msk.f32.vlgmr.msra.gmra.mxu0 %vm1298_vm11, %v2100_v48 }
0x22f9   :  { %4666 = vmatprep.mubr.msk.f32.mxu0 %vm4913_vm0, %v4912_v0  ;;  %4663 = vmatpush3.msra.mxu0 %v73_v50 }
0x22fa   :  { %4664 = vmatprep.subr.mxu0 %v4912_v0 }
0x22fb   :  { %4665 = vmatpush3.msra.mxu0 %v72_v52 }
0x22fc   :  { %4674 = vmatprep.subr.mxu0 %v4912_v0 }
0x23b8   :  { %v2177_v56 = vpop.f32.mrf.mxu0 }
0x23b9   :  { %v2253_v61 = vadd.f32 %v2252_v26, %v2177_v56 }
0x23ba   :  { %v4656_v62 = vpop.f32.mrf.mxu0 }
0x23bb   :  { %v2260_v46 = vadd.f32 %v4395_v55, %v2253_v61 }
0x23bd   :  { %v2261_v1 = vmax.f32 %v2260_v46, 0.0 }
0x23bf   :  { %4667 = vmatmul.mubr.msk.f32.vlgmr.msra.gmra.mxu0 %vm2266_vm14, %v2261_v1 }
0x23c0   :  { %4675 = vmatpush3.msk.msra.mxu0 %vm1182_vm9, %v43_v2  ;;  %4676 = vmatprep.mubr.msk.f32.mxu0 %vm4913_vm0, %v4912_v0 }
0x23c1   :  { %4684 = vmatprep.subr.mxu0 %v4912_v0 }
0x23c3   :  { %4677 = vmatmul.mubr.msk.f32.vlgmr.msra.gmra.mxu0 %vm2426_vm15, %v2421_v3 }
0x23c4   :  { %4686 = vmatprep.mubr.msk.f32.mxu0 %vm4913_vm0, %v4912_v0  ;;  %4685 = vmatpush3.msk.msra.mxu0 %vm1182_vm9, %v51_v8 }
0x23c5   :  { %4694 = vmatprep.subr.mxu0 %v4912_v0 }
0x23c7   :  { %4687 = vmatmul.mubr.msk.f32.vlgmr.msra.gmra.mxu0 %vm2426_vm15, %v2581_v7 }
0x23c8   :  { %4696 = vmatprep.mubr.msk.f32.mxu0 %vm4913_vm0, %v4912_v0  ;;  %4695 = vmatpush3.msk.msra.mxu0 %vm1301_vm10, %v5286_v44 }
0x23c9   :  { %4704 = vmatprep.subr.mxu0 %v4912_v0 }
0x247f   :  { %v2336_v12 = vpop.f32.mrf.mxu0 }
0x2480   :  { %v2337_v15 = vadd.f32 %v4396_v11, %v2336_v12 }
0x2481   :  { %v4668_v23 = vpop.f32.mrf.mxu0 }
0x2482   :  { %v2663_v20 = vmax.f32 %v2337_v15, 0.0 }
0x2483   :  { %v2499_v29 = vpop.f32.mrf.mxu0 }
0x2484   :  { %v2500_v22 = vadd.f32 %v4401_v17, %v2499_v29  ;;  %4692 = vmatmul.mubr.msk.f32.vlgmr.msra.gmra.mxu1 %vm2668_vm2, %v2663_v20 }
0x2485   :  { %v4678_v24 = vpop.f32.mrf.mxu0  ;;  %4701 = vmatprep.mubr.msk.f32.mxu1 %vm4913_vm0, %v4912_v0  ;;  %4700 = vmatpush3.msk.msra.mxu1 %vm1301_vm10, %v5317_v38 }
0x2486   :  { %v2503_v19 = vmax.f32 %v2500_v22, 0.0  ;;  %4709 = vmatprep.subr.mxu1 %v4912_v0 }
0x2487   :  { %v5302_v25 = vpop.f32.mrf.mxu0 }
0x2488   :  { %4697 = vmatmul.mubr.msk.f32.vlgmr.msra.gmra.mxu0 %vm1298_vm11, %v2503_v19 }
0x2489   :  { %4705 = vmatpush3.msk.msra.mxu0 %vm1301_vm10, %v5286_v44  ;;  %4706 = vmatprep.mubr.msk.f32.mxu0 %vm4913_vm0, %v4912_v0  ;;  %v4688_v26 = vpop.f32.mrf.mxu0 }
0x248a   :  { %4714 = vmatprep.subr.mxu0 %v4912_v0 }
0x2544   :  { %v2738_v31 = vpop.f32.mrf.mxu1 }
0x2545   :  { %v5308_v39 = vadd.f32 %v4410_v28, %v2738_v31 }
0x2546   :  { %v4693_v58 = vpop.f32.mrf.mxu1 }
0x2547   :  { %v2827_v21 = vrot.slane %v5308_v39, %v2826_v30  ;;  %v3026_v61 = vrot.slane %v5308_v39, %v3025_v59 }
0x2548   :  { %v2820_v32 = vpop.f32.mrf.mxu0 }
0x2549   :  { %v2828_v33 = vadd.f32 %v2827_v21, %v2820_v32 }
0x254a   :  { %v4698_v34 = vpop.f32.mrf.mxu0 }
0x254b   :  { %v2829_v35 = vmul.f32 %v2828_v33, %v4992_v16 }
0x254d   :  { %4853 = vtanh.f32 %v2829_v35 }
0x255a   :  { %v4854_v36 = vpop.eup %4853 }
0x255b   :  { %v2831_v13 = vmul.f32 %v4854_v36, %v4992_v16 }
0x255d   :  { %v2832_v37 = vadd.f32 %v2831_v13, %v5146_v57 }
0x255f   :  { %2835 = vrot.lane.b32.xlu1 %v2832_v37, %s4916_s1  ;;  %v2833_v18 = vmul.f32 0.0, %v2832_v37 }
0x25d1   :  { %v2836_v40 = vpop.permute.xlu1 %2835 }
0x25d2   :  { %v2838_v41 = vmul.f32 %v2836_v40, %v2832_v37 }
0x25d4   :  { %2840 = vrot.lane.b32.xlu0 %v2838_v41, %s4916_s1 }
0x2646   :  { %v2841_v60 = vpop.permute.xlu0 %2840 }
0x2647   :  { %v2843_v43 = vadd.f32 %v2841_v60, %v2833_v18 }
0x2649   :  { %2845 = vrot.lane.b32.xlu1 %v2843_v43, %s4916_s1 }
0x264d   :  { %2932 = vrot.lane.b32.xlu1 %v4416_v47, %s4917_s2 }
0x26bb   :  { %v2846_v45 = vpop.permute.xlu1 %2845 }
0x26bc   :  { %4702 = vmatmul.mubr.msk.f32.vlgmr.msra.gmra.mxu1 %vm1298_vm11, %v2846_v45 }
0x26bd   :  { %4710 = vmatpush3.msk.msra.mxu1 %vm1301_vm10, %v5317_v38  ;;  %4711 = vmatprep.mubr.msk.f32.mxu1 %vm4913_vm0, %v4912_v0 }
0x26be   :  { %4719 = vmatprep.subr.mxu1 %v4912_v0 }
0x26bf   :  { %v5332_v42 = vpop.permute.xlu1 %2932 }
0x277c   :  { %v2918_v48 = vpop.f32.mrf.mxu1 }
0x277d   :  { %2923 = vrot.lane.b32.xlu0 %v2918_v48, %s4917_s2 }
0x277e   :  { %v4703_v50 = vpop.f32.mrf.mxu1 }
0x27ef   :  { %v2924_v51 = vpop.permute.xlu0 %2923 }
0x27f0   :  { %v2926_v52 = vadd.f32 %v2924_v51, %v2820_v32 }
0x27f2   :  { %v2935_v53 = vadd.f32 %v5332_v42, %v2926_v52 }
0x27f4   :  { %4855 = vtanh.f32 %v2935_v53 }
0x2801   :  { %v4856_v54 = vpop.eup %4855 }
0x2802   :  { %2938 = vrot.lane.b32.xlu0 %v4856_v54, %s4918_s7 }
0x2874   :  { %v2939_v55 = vpop.permute.xlu0 %2938 }
0x2875   :  { %v2941_v56 = vmul.f32 %v2939_v55, %v2832_v37  ;;  %v3212_v37 = vsub.s32 2, %v5305_v27 }
0x2877   :  { %4707 = vmatmul.mubr.msk.f32.vlgmr.msra.gmra.mxu0 %vm1298_vm11, %v2941_v56  ;;  %v2943_v17 = vsel %vm2942_vm4, %v2941_v56, 0.0 }
0x2878   :  { %4715 = vmatpush3.msk.msra.mxu0 %vm1301_vm10, %v5286_v44  ;;  %4716 = vmatprep.mubr.msk.f32.mxu0 %vm4913_vm0, %v4912_v0  ;;  %v2944_v20 = vrot.slane %v2943_v17, 4 }
0x2879   :  { %4724 = vmatprep.subr.mxu0 %v4912_v0 }
0x287a   :  { %v2945_v29 = vadd.f32 %v2944_v20, %v2943_v17 }
0x287c   :  { %v2946_v19 = vrot.slane %v2945_v29, 2 }
0x287e   :  { %v2947_v31 = vadd.f32 %v2946_v19, %v2945_v29 }
0x2880   :  { %v2948_v32 = vrot.slane %v2947_v31, 1 }
0x2882   :  { %v2949_v35 = vadd.f32 %v2948_v32, %v2947_v31 }
0x2937   :  { %v3019_v62 = vpop.f32.mrf.mxu0 }
0x2938   :  { %v3027_v46 = vadd.f32 %v3026_v61, %v3019_v62 }
0x2939   :  { %v4708_v63 = vpop.f32.mrf.mxu0 }
0x293a   :  { %v3028_v1 = vmul.f32 %v3027_v46, %v4992_v16 }
0x293c   :  { %4857 = vtanh.f32 %v3028_v1 }
0x2949   :  { %v4858_v2 = vpop.eup %4857 }
0x294a   :  { %v3030_v3 = vmul.f32 %v4858_v2, %v4992_v16 }
0x294c   :  { %v3031_v4 = vadd.f32 %v3030_v3, %v5146_v57 }
0x294e   :  { %3034 = vrot.lane.b32.xlu1 %v3031_v4, %s4916_s1  ;;  %v3032_v6 = vmul.f32 %v3031_v4, %v2843_v43 }
0x29c0   :  { %v3035_v5 = vpop.permute.xlu1 %3034 }
0x29c1   :  { %v3037_v14 = vmul.f32 %v3035_v5, %v3031_v4 }
0x29c3   :  { %3039 = vrot.lane.b32.xlu0 %v3037_v14, %s4916_s1 }
0x2a35   :  { %v3040_v7 = vpop.permute.xlu0 %3039 }
0x2a36   :  { %v3042_v8 = vadd.f32 %v3040_v7, %v3032_v6 }
0x2a38   :  { %3044 = vrot.lane.b32.xlu1 %v3042_v8, %s4916_s1 }
0x2aaa   :  { %v3045_v9 = vpop.permute.xlu1 %3044 }
0x2aab   :  { %4712 = vmatmul.mubr.msk.f32.vlgmr.msra.gmra.mxu1 %vm1298_vm11, %v3045_v9  ;;  %v3399_v9 = vsub.s32 3, %v5305_v27 }
0x2aac   :  { %4720 = vmatpush3.msk.msra.mxu1 %vm1301_vm10, %v5317_v38  ;;  %4721 = vmatprep.mubr.msk.f32.mxu1 %vm4913_vm0, %v4912_v0 }
0x2aad   :  { %4729 = vmatprep.subr.mxu1 %v4912_v0 }
0x2b6b   :  { %v3114_v10 = vpop.f32.mrf.mxu1 }
0x2b6c   :  { %3119 = vrot.lane.b32.xlu0 %v3114_v10, %s4917_s2  ;;  %v3400_v10 = vrot.slane %v5308_v39, %v3399_v9 }
0x2b6d   :  { %v4713_v49 = vpop.f32.mrf.mxu1 }
0x2bde   :  { %v3120_v11 = vpop.permute.xlu0 %3119 }
0x2bdf   :  { %v3122_v12 = vadd.f32 %v3120_v11, %v3019_v62 }
0x2be1   :  { %v3123_v15 = vadd.f32 %v3122_v12, %v5332_v42 }
0x2be3   :  { %4859 = vtanh.f32 %v3123_v15 }
0x2bf0   :  { %v4860_v23 = vpop.eup %4859 }
0x2bf1   :  { %3126 = vrot.lane.b32.xlu1 %v4860_v23, %s4918_s7 }
0x2c63   :  { %v3127_v22 = vpop.permute.xlu1 %3126 }
0x2c64   :  { %v3129_v24 = vmul.f32 %v3127_v22, %v3031_v4 }
0x2c66   :  { %v3130_v26 = vsel %vm2942_vm4, %v3129_v24, 0.0  ;;  %4717 = vmatmul.mubr.msk.f32.vlgmr.msra.gmra.mxu0 %vm1298_vm11, %v3129_v24 }
0x2c67   :  { %v3131_v28 = vrot.slane %v3130_v26, 4  ;;  %4725 = vmatpush3.msk.msra.mxu0 %vm1301_vm10, %v5286_v44  ;;  %4726 = vmatprep.mubr.msk.f32.mxu0 %vm4913_vm0, %v4912_v0  ;;  %v3213_v44 = vrot.slane %v5308_v39, %v3212_v37 }
0x2c68   :  { %4734 = vmatprep.subr.mxu0 %v4912_v0 }
0x2c69   :  { %v3132_v58 = vadd.f32 %v3131_v28, %v3130_v26 }
0x2c6b   :  { %v3133_v21 = vrot.slane %v3132_v58, 2 }
0x2c6d   :  { %v3134_v33 = vadd.f32 %v3133_v21, %v3132_v58  ;;  %v97_v58 = vld [vmem:[#allocation2 + $0x200] sm:$0x3f]  ;;  %v4407_v21 = vld [vmem:[#allocation2 + $0xb0] ss:$0 sm:$0xff] }
0x2c6f   :  { %v3135_v34 = vrot.slane %v3134_v33, 1 }
0x2c71   :  { %v3136_v36 = vadd.f32 %v3135_v34, %v3134_v33  ;;  %v2659_v33 = vadd.f32 %v4407_v21, %v5302_v25 }
0x2c73   :  { %v3512_v13 = vsel %vm3511_vm5, %v2949_v35, %v3136_v36  ;;  %v91_v35 = vld [vmem:[#allocation2 + $0x1d0] sm:$0x3f] }
0x2d26   :  { %v3206_v40 = vpop.f32.mrf.mxu0 }
0x2d27   :  { %v3214_v41 = vadd.f32 %v3213_v44, %v3206_v40  ;;  %v2662_v44 = vmax.f32 %v2659_v33, 0.0 }
0x2d28   :  { %v4718_v18 = vpop.f32.mrf.mxu0 }
0x2d29   :  { %v3215_v60 = vmul.f32 %v3214_v41, %v4992_v16 }
0x2d2b   :  { %4861 = vtanh.f32 %v3215_v60 }
0x2d38   :  { %v4862_v43 = vpop.eup %4861 }
0x2d39   :  { %v3217_v45 = vmul.f32 %v4862_v43, %v4992_v16 }
0x2d3b   :  { %v3218_v47 = vadd.f32 %v3217_v45, %v5146_v57 }
0x2d3d   :  { %3221 = vrot.lane.b32.xlu0 %v3218_v47, %s4916_s1  ;;  %v3219_v51 = vmul.f32 %v3218_v47, %v3042_v8 }
0x2daf   :  { %v3222_v48 = vpop.permute.xlu0 %3221 }
0x2db0   :  { %v3224_v50 = vmul.f32 %v3222_v48, %v3218_v47 }
0x2db2   :  { %3226 = vrot.lane.b32.xlu1 %v3224_v50, %s4916_s1 }
0x2e24   :  { %v3227_v52 = vpop.permute.xlu1 %3226 }
0x2e25   :  { %v3229_v53 = vadd.f32 %v3227_v52, %v3219_v51 }
0x2e27   :  { %3231 = vrot.lane.b32.xlu0 %v3229_v53, %s4916_s1 }
0x2e99   :  { %v3232_v54 = vpop.permute.xlu0 %3231 }
0x2e9a   :  { %4722 = vmatmul.mubr.msk.f32.vlgmr.msra.gmra.mxu1 %vm1298_vm11, %v3232_v54 }
0x2e9b   :  { %4730 = vmatpush3.msk.msra.mxu1 %vm1301_vm10, %v5317_v38  ;;  %4731 = vmatprep.mubr.msk.f32.mxu1 %vm4913_vm0, %v4912_v0 }
0x2e9c   :  { %4739 = vmatprep.subr.mxu1 %v4912_v0 }
0x2f5a   :  { %v3301_v55 = vpop.f32.mrf.mxu1 }
0x2f5b   :  { %3306 = vrot.lane.b32.xlu1 %v3301_v55, %s4917_s2 }
0x2f5c   :  { %v4723_v56 = vpop.f32.mrf.mxu1 }
0x2f5d   :  { %v4429_v56 = vld [vmem:[#allocation2 + $0x1e0] ss:$0 sm:$0xff] }
0x2fcd   :  { %v3307_v61 = vpop.permute.xlu1 %3306 }
0x2fce   :  { %v3309_v62 = vadd.f32 %v3307_v61, %v3206_v40 }
0x2fd0   :  { %v3310_v46 = vadd.f32 %v3309_v62, %v5332_v42 }
0x2fd2   :  { %4863 = vtanh.f32 %v3310_v46 }
0x2fdf   :  { %v4864_v63 = vpop.eup %4863 }
0x2fe0   :  { %3313 = vrot.lane.b32.xlu0 %v4864_v63, %s4918_s7 }
0x3052   :  { %v3314_v1 = vpop.permute.xlu0 %3313 }
0x3053   :  { %v3316_v2 = vmul.f32 %v3314_v1, %v3218_v47 }
0x3055   :  { %v3317_v38 = vsel %vm2942_vm4, %v3316_v2, 0.0  ;;  %4727 = vmatmul.mubr.msk.f32.vlgmr.msra.gmra.mxu0 %vm1298_vm11, %v3316_v2 }
0x3056   :  { %v3318_v3 = vrot.slane %v3317_v38, 4  ;;  %4736 = vmatprep.mubr.msk.f32.mxu0 %vm4913_vm0, %v4912_v0 }
0x3058   :  { %v3319_v4 = vadd.f32 %v3318_v3, %v3317_v38 }
0x305a   :  { %v3320_v5 = vrot.slane %v3319_v4, 2 }
0x305c   :  { %v3321_v14 = vadd.f32 %v3320_v5, %v3319_v4  ;;  %v5439_v5 = vld [vmem:[#allocation2 + $0x1f0] sm:$0x3f] }
0x305e   :  { %v3322_v6 = vrot.slane %v3321_v14, 1 }
0x3060   :  { %v3323_v7 = vadd.f32 %v3322_v6, %v3321_v14 }
0x3062   :  { %v3513_v8 = vsel %vm2103_vm12, %v3512_v13, %v3323_v7 }
0x3115   :  { %v3393_v49 = vpop.f32.mrf.mxu0 }
0x3116   :  { %v3401_v11 = vadd.f32 %v3400_v10, %v3393_v49 }
0x3117   :  { %v4728_v12 = vpop.f32.mrf.mxu0 }
0x3118   :  { %v3402_v15 = vmul.f32 %v3401_v11, %v4992_v16 }
0x311a   :  { %4865 = vtanh.f32 %v3402_v15 }
0x3127   :  { %v4866_v23 = vpop.eup %4865 }
0x3128   :  { %v3404_v17 = vmul.f32 %v4866_v23, %v4992_v16 }
0x312a   :  { %v3405_v20 = vadd.f32 %v3404_v17, %v5146_v57 }
0x312c   :  { %3408 = vrot.lane.b32.xlu1 %v3405_v20, %s4916_s1  ;;  %v3406_v24 = vmul.f32 %v3405_v20, %v3229_v53 }
0x319e   :  { %v3409_v29 = vpop.permute.xlu1 %3408 }
0x319f   :  { %v3411_v22 = vmul.f32 %v3409_v29, %v3405_v20 }
0x31a1   :  { %3413 = vrot.lane.b32.xlu0 %v3411_v22, %s4916_s1 }
0x3213   :  { %v3414_v19 = vpop.permute.xlu0 %3413 }
0x3214   :  { %v3416_v39 = vadd.f32 %v3414_v19, %v3406_v24 }
0x3216   :  { %3418 = vrot.lane.b32.xlu1 %v3416_v39, %s4916_s1 }
0x3288   :  { %v3419_v26 = vpop.permute.xlu1 %3418 }
0x3289   :  { %4732 = vmatmul.mubr.msk.f32.vlgmr.msra.gmra.mxu1 %vm1298_vm11, %v3419_v26 }
0x328a   :  { %4741 = vmatprep.mubr.msk.f32.mxu1 %vm4913_vm0, %v4912_v0 }
0x3349   :  { %v3488_v28 = vpop.f32.mrf.mxu1 }
0x334a   :  { %3493 = vrot.lane.b32.xlu0 %v3488_v28, %s4917_s2 }
0x334b   :  { %v4733_v31 = vpop.f32.mrf.mxu1 }
0x334e   :  { %3597 = vrot.lane.b32.xlu0 %v97_v58, %s4917_s2 }
0x33bc   :  { %v3494_v32 = vpop.permute.xlu0 %3493 }
0x33bd   :  { %v3496_v34 = vadd.f32 %v3494_v32, %v3393_v49  ;;  %v4436_v49 = vld [vmem:[#allocation2 + $0x210] ss:$0 sm:$0xff] }
0x33bf   :  { %v3497_v36 = vadd.f32 %v3496_v34, %v5332_v42  ;;  %v89_v42 = vld [vmem:[#allocation2 + $0x1c0] sm:$0x3f] }
0x33c0   :  { %v3598_v13 = vpop.permute.xlu0 %3597  ;;  %4735 = vmatpush3.msk.msra.mxu0 %vm1301_vm10, %v89_v42 }
0x33c1   :  { %4867 = vtanh.f32 %v3497_v36  ;;  %v5411_v40 = vsel %vm2746_vm1, %v91_v35, %v3598_v13  ;;  %4744 = vmatprep.subr.mxu0 %v4912_v0 }
0x33c2   :  { %4740 = vmatpush3.msk.msra.mxu1 %vm1301_vm10, %v5411_v40 }
0x33c3   :  { %4742 = vmatmul.mubr.msk.f32.vlgmr.msra.gmra.mxu1 %vm1298_vm11, %v2662_v44  ;;  %4749 = vmatprep.subr.mxu1 %v4912_v0 }
0x33c4   :  { %4750 = vmatpush3.msk.msra.mxu1 %vm1301_vm10, %v5411_v40  ;;  %4751 = vmatprep.mubr.msk.f32.mxu1 %vm4913_vm0, %v4912_v0 }
0x33c5   :  { %4759 = vmatprep.subr.mxu1 %v4912_v0 }
0x33ce   :  { %v4868_v25 = vpop.eup %4867 }
0x33cf   :  { %3500 = vrot.lane.b32.xlu1 %v4868_v25, %s4918_s7 }
0x3441   :  { %v3501_v41 = vpop.permute.xlu1 %3500 }
0x3442   :  { %v3503_v18 = vmul.f32 %v3501_v41, %v3405_v20 }
0x3444   :  { %v3504_v60 = vsel %vm2942_vm4, %v3503_v18, 0.0 }
0x3445   :  { %v3505_v43 = vrot.slane %v3504_v60, 4 }
0x3447   :  { %v3506_v45 = vadd.f32 %v3505_v43, %v3504_v60 }
0x3449   :  { %v3507_v47 = vrot.slane %v3506_v45, 2 }
0x344b   :  { %v3508_v48 = vadd.f32 %v3507_v47, %v3506_v45 }
0x344d   :  { %v3509_v50 = vrot.slane %v3508_v48, 1 }
0x344f   :  { %v3510_v51 = vadd.f32 %v3509_v50, %v3508_v48 }
0x3451   :  { %v3514_v52 = vsel %vm294_vm3, %v3513_v8, %v3510_v51 }
0x3452   :  { %v3515_v53 = vmax.f32 %v3514_v52, 0.0 }
0x3454   :  { %4737 = vmatmul.mubr.msk.f32.vlgmr.msra.gmra.mxu0 %vm1298_vm11, %v3515_v53 }
0x3455   :  { %4746 = vmatprep.mubr.msk.f32.mxu0 %vm4913_vm0, %v4912_v0  ;;  %4745 = vmatpush3.msk.msra.mxu0 %vm1301_vm10, %v5439_v5 }
0x3456   :  { %4754 = vmatprep.subr.mxu0 %v4912_v0 }
0x3483   :  { %v3673_v54 = vpop.f32.mrf.mxu1 }
0x3485   :  { %v4743_v55 = vpop.f32.mrf.mxu1 }
0x3514   :  { %v3592_v61 = vpop.f32.mrf.mxu0 }
0x3515   :  { %v5430_v62 = vadd.f32 %v4429_v56, %v3592_v61 }
0x3516   :  { %v4738_v46 = vpop.f32.mrf.mxu0 }
0x3517   :  { %v3680_v63 = vrot.slane %v5430_v62, %v2826_v30  ;;  %v3871_v19 = vrot.slane %v5430_v62, %v3025_v59  ;;  %v4051_v47 = vrot.slane %v5430_v62, %v3212_v37 }
0x3519   :  { %v3681_v1 = vadd.f32 %v3680_v63, %v3673_v54 }
0x351b   :  { %v3682_v2 = vmul.f32 %v3681_v1, %v4992_v16 }
0x351d   :  { %4869 = vtanh.f32 %v3682_v2 }
0x352a   :  { %v4870_v38 = vpop.eup %4869 }
0x352b   :  { %v3684_v3 = vmul.f32 %v4870_v38, %v4992_v16 }
0x352d   :  { %v3685_v4 = vadd.f32 %v3684_v3, %v5146_v57 }
0x352f   :  { %3688 = vrot.lane.b32.xlu1 %v3685_v4, %s4916_s1  ;;  %v3686_v6 = vmul.f32 0.0, %v3685_v4 }
0x35a1   :  { %v3689_v14 = vpop.permute.xlu1 %3688 }
0x35a2   :  { %v3691_v30 = vmul.f32 %v3689_v14, %v3685_v4 }
0x35a4   :  { %3693 = vrot.lane.b32.xlu0 %v3691_v30, %s4916_s1 }
0x3616   :  { %v3694_v7 = vpop.permute.xlu0 %3693 }
0x3617   :  { %v3696_v8 = vadd.f32 %v3694_v7, %v3686_v6 }
0x3619   :  { %3698 = vrot.lane.b32.xlu1 %v3696_v8, %s4916_s1 }
0x361d   :  { %3785 = vrot.lane.b32.xlu1 %v4436_v49, %s4917_s2 }
0x368b   :  { %v3699_v10 = vpop.permute.xlu1 %3698 }
0x368c   :  { %4747 = vmatmul.mubr.msk.f32.vlgmr.msra.gmra.mxu0 %vm1298_vm11, %v3699_v10 }
0x368d   :  { %4755 = vmatpush3.msk.msra.mxu0 %vm1301_vm10, %v5439_v5  ;;  %4756 = vmatprep.mubr.msk.f32.mxu0 %vm4913_vm0, %v4912_v0 }
0x368e   :  { %4764 = vmatprep.subr.mxu0 %v4912_v0 }
0x368f   :  { %v5454_v23 = vpop.permute.xlu1 %3785 }
0x374c   :  { %v3771_v11 = vpop.f32.mrf.mxu0 }
0x374d   :  { %3776 = vrot.lane.b32.xlu0 %v3771_v11, %s4917_s2 }
0x374e   :  { %v4748_v12 = vpop.f32.mrf.mxu0 }
0x37bf   :  { %v3777_v15 = vpop.permute.xlu0 %3776 }
0x37c0   :  { %v3779_v17 = vadd.f32 %v3777_v15, %v3673_v54 }
0x37c2   :  { %v3788_v20 = vadd.f32 %v5454_v23, %v3779_v17 }
0x37c4   :  { %4871 = vtanh.f32 %v3788_v20 }
0x37d1   :  { %v4872_v29 = vpop.eup %4871 }
0x37d2   :  { %3791 = vrot.lane.b32.xlu0 %v4872_v29, %s4918_s7 }
0x3844   :  { %v3792_v22 = vpop.permute.xlu0 %3791 }
0x3845   :  { %v3794_v24 = vmul.f32 %v3792_v22, %v3685_v4 }
0x3847   :  { %4752 = vmatmul.mubr.msk.f32.vlgmr.msra.gmra.mxu1 %vm1298_vm11, %v3794_v24 }
0x3848   :  { %4760 = vmatpush3.msk.msra.mxu1 %vm1301_vm10, %v5411_v40  ;;  %4761 = vmatprep.mubr.msk.f32.mxu1 %vm4913_vm0, %v4912_v0 }
0x3849   :  { %4769 = vmatprep.subr.mxu1 %v4912_v0 }
0x3907   :  { %v3864_v39 = vpop.f32.mrf.mxu1 }
0x3908   :  { %v3872_v26 = vadd.f32 %v3871_v19, %v3864_v39 }
0x3909   :  { %v4753_v28 = vpop.f32.mrf.mxu1 }
0x390a   :  { %v3873_v31 = vmul.f32 %v3872_v26, %v4992_v16 }
0x390c   :  { %4873 = vtanh.f32 %v3873_v31 }
0x3919   :  { %v4874_v58 = vpop.eup %4873 }
0x391a   :  { %v3875_v21 = vmul.f32 %v4874_v58, %v4992_v16 }
0x391c   :  { %v3876_v32 = vadd.f32 %v3875_v21, %v5146_v57 }
0x391e   :  { %3879 = vrot.lane.b32.xlu1 %v3876_v32, %s4916_s1  ;;  %v3877_v35 = vmul.f32 %v3876_v32, %v3696_v8 }
0x3990   :  { %v3880_v33 = vpop.permute.xlu1 %3879 }
0x3991   :  { %v3882_v34 = vmul.f32 %v3880_v33, %v3876_v32 }
0x3993   :  { %3884 = vrot.lane.b32.xlu0 %v3882_v34, %s4916_s1 }
0x3a05   :  { %v3885_v36 = vpop.permute.xlu0 %3884 }
0x3a06   :  { %v3887_v59 = vadd.f32 %v3885_v36, %v3877_v35 }
0x3a08   :  { %3889 = vrot.lane.b32.xlu1 %v3887_v59, %s4916_s1 }
0x3a7a   :  { %v3890_v13 = vpop.permute.xlu1 %3889 }
0x3a7b   :  { %4757 = vmatmul.mubr.msk.f32.vlgmr.msra.gmra.mxu0 %vm1298_vm11, %v3890_v13 }
0x3a7c   :  { %4765 = vmatpush3.msk.msra.mxu0 %vm1301_vm10, %v5439_v5  ;;  %4766 = vmatprep.mubr.msk.f32.mxu0 %vm4913_vm0, %v4912_v0 }
0x3a7d   :  { %4774 = vmatprep.subr.mxu0 %v4912_v0 }
0x3b3b   :  { %v3959_v44 = vpop.f32.mrf.mxu0 }
0x3b3c   :  { %3964 = vrot.lane.b32.xlu0 %v3959_v44, %s4917_s2 }
0x3b3d   :  { %v4758_v25 = vpop.f32.mrf.mxu0 }
0x3bae   :  { %v3965_v42 = vpop.permute.xlu0 %3964 }
0x3baf   :  { %v3967_v41 = vadd.f32 %v3965_v42, %v3864_v39 }
0x3bb1   :  { %v3968_v18 = vadd.f32 %v3967_v41, %v5454_v23 }
0x3bb3   :  { %4875 = vtanh.f32 %v3968_v18 }
0x3bc0   :  { %v4876_v60 = vpop.eup %4875 }
0x3bc1   :  { %3971 = vrot.lane.b32.xlu1 %v4876_v60, %s4918_s7 }
0x3c33   :  { %v3972_v43 = vpop.permute.xlu1 %3971 }
0x3c34   :  { %v3974_v45 = vmul.f32 %v3972_v43, %v3876_v32 }
0x3c36   :  { %4762 = vmatmul.mubr.msk.f32.vlgmr.msra.gmra.mxu1 %vm1298_vm11, %v3974_v45 }
0x3c37   :  { %4770 = vmatpush3.msk.msra.mxu1 %vm1301_vm10, %v5411_v40  ;;  %4771 = vmatprep.mubr.msk.f32.mxu1 %vm4913_vm0, %v4912_v0 }
0x3cf6   :  { %v4044_v48 = vpop.f32.mrf.mxu1 }
0x3cf7   :  { %v4052_v50 = vadd.f32 %v4051_v47, %v4044_v48 }
0x3cf8   :  { %v4763_v51 = vpop.f32.mrf.mxu1 }
0x3cf9   :  { %v4053_v52 = vmul.f32 %v4052_v50, %v4992_v16 }
0x3cfb   :  { %4877 = vtanh.f32 %v4053_v52 }
0x3d08   :  { %v4878_v53 = vpop.eup %4877 }
0x3d09   :  { %v4055_v54 = vmul.f32 %v4878_v53, %v4992_v16 }
0x3d0b   :  { %v4056_v55 = vadd.f32 %v4055_v54, %v5146_v57 }
0x3d0d   :  { %4059 = vrot.lane.b32.xlu0 %v4056_v55, %s4916_s1  ;;  %v4057_v61 = vmul.f32 %v4056_v55, %v3887_v59 }
0x3d7f   :  { %v4060_v40 = vpop.permute.xlu0 %4059 }
0x3d80   :  { %v4062_v56 = vmul.f32 %v4060_v40, %v4056_v55 }
0x3d82   :  { %4064 = vrot.lane.b32.xlu1 %v4062_v56, %s4916_s1 }
0x3df4   :  { %v4065_v46 = vpop.permute.xlu1 %4064 }
0x3df5   :  { %v4067_v37 = vadd.f32 %v4065_v46, %v4057_v61 }
0x3df7   :  { %4069 = vrot.lane.b32.xlu0 %v4067_v37, %s4916_s1 }
0x3e69   :  { %v4070_v63 = vpop.permute.xlu0 %4069 }
0x3e6a   :  { %4767 = vmatmul.mubr.msk.f32.vlgmr.msra.gmra.mxu0 %vm1298_vm11, %v4070_v63 }
0x3e6b   :  { %4775 = vmatpush3.msk.msra.mxu0 %vm1301_vm10, %v5439_v5  ;;  %4776 = vmatprep.mubr.msk.f32.mxu0 %vm4913_vm0, %v4912_v0  ;;  %v4231_v0 = vrot.slane %v5430_v62, %v3399_v9  ;;  %vm4336_vm0 = vcmask 44035  }
0x3f2a   :  { %v4139_v1 = vpop.f32.mrf.mxu0 }
0x3f2b   :  { %4144 = vrot.lane.b32.xlu1 %v4139_v1, %s4917_s2 }
0x3f2c   :  { %v4768_v2 = vpop.f32.mrf.mxu0 }
0x3f9d   :  { %v4145_v38 = vpop.permute.xlu1 %4144 }
0x3f9e   :  { %v4147_v3 = vadd.f32 %v4145_v38, %v4044_v48 }
0x3fa0   :  { %v4148_v4 = vadd.f32 %v4147_v3, %v5454_v23 }
0x3fa2   :  { %4879 = vtanh.f32 %v4148_v4 }
0x3faf   :  { %v4880_v14 = vpop.eup %4879 }
0x3fb0   :  { %4151 = vrot.lane.b32.xlu0 %v4880_v14, %s4918_s7 }
0x4022   :  { %v4152_v30 = vpop.permute.xlu0 %4151 }
0x4023   :  { %v4154_v6 = vmul.f32 %v4152_v30, %v4056_v55 }
0x4025   :  { %4772 = vmatmul.mubr.msk.f32.vlgmr.msra.gmra.mxu1 %vm1298_vm11, %v4154_v6 }
0x40e5   :  { %v4224_v5 = vpop.f32.mrf.mxu1 }
0x40e6   :  { %v4232_v7 = vadd.f32 %v4231_v0, %v4224_v5 }
0x40e7   :  { %v4773_v8 = vpop.f32.mrf.mxu1 }
0x40e8   :  { %v4233_v10 = vmul.f32 %v4232_v7, %v4992_v16 }
0x40ea   :  { %4881 = vtanh.f32 %v4233_v10 }
0x40f7   :  { %v4882_v49 = vpop.eup %4881 }
0x40f8   :  { %v4235_v11 = vmul.f32 %v4882_v49, %v4992_v16 }
0x40fa   :  { %v4236_v12 = vadd.f32 %v4235_v11, %v5146_v57 }
0x40fc   :  { %4239 = vrot.lane.b32.xlu1 %v4236_v12, %s4916_s1  ;;  %v4237_v27 = vmul.f32 %v4236_v12, %v4067_v37 }
0x416e   :  { %v4240_v15 = vpop.permute.xlu1 %4239 }
0x416f   :  { %v4242_v17 = vmul.f32 %v4240_v15, %v4236_v12 }
0x4171   :  { %4244 = vrot.lane.b32.xlu0 %v4242_v17, %s4916_s1 }
0x41e3   :  { %v4245_v20 = vpop.permute.xlu0 %4244 }
0x41e4   :  { %v4247_v9 = vadd.f32 %v4245_v20, %v4237_v27 }
0x41e6   :  { %4249 = vrot.lane.b32.xlu1 %v4247_v9, %s4916_s1 }
0x4258   :  { %v4250_v62 = vpop.permute.xlu1 %4249 }
0x4259   :  { %4777 = vmatmul.mubr.msk.f32.vlgmr.msra.gmra.mxu0 %vm1298_vm11, %v4250_v62 }
0x4319   :  { %v4319_v29 = vpop.f32.mrf.mxu0 }
0x431a   :  { %4324 = vrot.lane.b32.xlu0 %v4319_v29, %s4917_s2 }
0x431b   :  { %v4778_v16 = vpop.f32.mrf.mxu0 }
0x438c   :  { %v4325_v22 = vpop.permute.xlu0 %4324 }
0x438d   :  { %v4327_v57 = vadd.f32 %v4325_v22, %v4224_v5 }
0x438f   :  { %v4328_v24 = vadd.f32 %v4327_v57, %v5454_v23 }
0x4391   :  { %4883 = vtanh.f32 %v4328_v24 }
0x439e   :  { %v4884_v19 = vpop.eup %4883 }
0x439f   :  { %4331 = vrot.lane.b32.xlu1 %v4884_v19, %s4918_s7 }
0x4411   :  { %v4332_v39 = vpop.permute.xlu1 %4331 }
0x4412   :  { %v4334_v26 = vmul.f32 %v4332_v39, %v4236_v12 }
0x4414   :  { %4885 = vtanh.f32 %v4334_v26 }
0x4421   :  { %v4886_v28 = vpop.eup %4885 }
0x4422   :  { %4337 = vst.msk [vmem:[%s5525_s4 - $0x3] sm:$0x8] %vm4336_vm0, %v4886_v28 }
0x4423   :  { %4342 = vsyncpa [#allocation3], 1 }

</bundles_post_ra>
